<compile_context>
chip_gen: v6e
topology: v6e:2x2x1
jax: 0.10.0
libtpu: 0.0.40
codegen_flags: <defaults>
</compile_context>

<pallas_src>
import functools

import jax
import jax.numpy as jnp
import numpy as np
from jax import lax
from jax.experimental import pallas as pl
from jax.experimental.pallas import tpu as pltpu

# ---------------- config (mirrors the C config object) ----------------
BLOCK_DIM = 32                # d_model
BLOCK_NHEAD = 4               # nhead
BLOCK_DIM_FEEDFORWARD = 64    # dim_feedforward
BLOCK_NUM_ENCODER_LAYERS = 2  # num_layers
LAYER_NORM_EPS = 1e-5
# BLOCK_DROPOUT_RATE is irrelevant in eval semantics (dropout == identity)

BATCH = 2
SEQ = 8

MASK_VALUE = -1e30            # additive mask value; safe in float32 score path


def _layer_norm(x, gamma, beta, eps):
    mu = jnp.mean(x, axis=-1, keepdims=True)
    xc = x - mu
    var = jnp.mean(xc * xc, axis=-1, keepdims=True)
    return xc * lax.rsqrt(var + eps) * gamma + beta


def _erf_f32(x):
    # Abramowitz & Stegun 7.1.26 rational approximation, max abs error 1.5e-7
    # (float32-exact for this forward pass).  Uses only mul/add/div/exp/abs/
    # where, which all lower cleanly in Pallas TPU.
    a1, a2, a3, a4, a5 = (0.254829592, -0.284496736, 1.421413741,
                          -1.453152027, 1.061405429)
    p = 0.3275911
    sgn = jnp.where(x >= 0.0, 1.0, -1.0)
    ax = jnp.abs(x)
    t = 1.0 / (1.0 + p * ax)
    poly = ((((a5 * t + a4) * t + a3) * t + a2) * t + a1) * t
    return sgn * (1.0 - poly * jnp.exp(-ax * ax))


def _gelu_exact(x):
    # F.gelu with approximate='none':  x * Phi(x)
    return 0.5 * x * (1.0 + _erf_f32(x * float(1.0 / np.sqrt(2.0))))


def _denoising_block_kernel(x_ref, bias_ref, wa_ref, wf_ref, vec_ref, out_ref,
                            *, num_layers: int, nhead: int, eps: float):
    N, D = x_ref.shape                 # N = batch*seq rows, D = d_model (lanes)
    HD = D // nhead
    F = wf_ref.shape[-1]
    scale = 1.0 / float(np.sqrt(HD))

    x = x_ref[...]                     # (N, D) float32, lane-dense
    bias = bias_ref[...]               # (N, N) block-diagonal causal additive bias

    for li in range(num_layers):       # static unroll (L == 2)
        wa = wa_ref[li]                # (D, 4D)  = [wqkv | wo]
        wf = wf_ref[li]                # (D+F, F) = [w1 ; w2 (lanes 0:D)]
        vec = vec_ref[li]              # (8, 128) packed biases / norm params

        w_qkv = wa[:, :3 * D]          # (D, 3D)
        w_o = wa[:, 3 * D:]            # (D, D)
        w_1 = wf[:D, :]                # (D, F)
        w_2 = wf[D:, :D]               # (F, D)
        b_qkv = vec[0:1, :3 * D]
        b_o = vec[1:2, :D]
        b_1 = vec[2:3, :F]
        b_2 = vec[3:4, :D]
        g1, be1 = vec[4:5, :D], vec[5:6, :D]
        g2, be2 = vec[6:7, :D], vec[7:8, :D]

        # ---- fused QKV projection: one lane-dense MXU matmul ----
        qkv = jnp.dot(x, w_qkv, preferred_element_type=jnp.float32) + b_qkv  # (N, 3D)

        # ---- per-head causal self-attention on the flattened row axis ----
        # Cross-batch score entries are killed by the block-diagonal causal
        # bias, so no (B, nhead, S, HD) transposes are ever materialized.
        heads = []
        for h in range(nhead):         # static loop, nhead == 4
            qh = qkv[:, h * HD:(h + 1) * HD]               # (N, HD)
            kh = qkv[:, D + h * HD:D + (h + 1) * HD]       # (N, HD)
            vh = qkv[:, 2 * D + h * HD:2 * D + (h + 1) * HD]
            s = jnp.einsum("nd,md->nm", qh, kh,
                           preferred_element_type=jnp.float32)
            s = s * scale + bias                           # (N, N)
            m = jnp.max(s, axis=-1, keepdims=True)
            p = jnp.exp(s - m)
            p = p / jnp.sum(p, axis=-1, keepdims=True)     # exact softmax
            heads.append(jnp.dot(p, vh, preferred_element_type=jnp.float32))
        o = jnp.concatenate(heads, axis=-1)                # (N, D), PyTorch head order

        # ---- single output projection (K = nhead*HD = D) ----
        attn = jnp.dot(o, w_o, preferred_element_type=jnp.float32) + b_o

        # ---- residual + LayerNorm 1 (post-norm) ----
        y = _layer_norm(x + attn, g1, be1, eps)

        # ---- feed-forward (flat matmuls, exact-erf GELU) ----
        hmid = jnp.dot(y, w_1, preferred_element_type=jnp.float32) + b_1
        hmid = _gelu_exact(hmid)
        ffn = jnp.dot(hmid, w_2, preferred_element_type=jnp.float32) + b_2

        # ---- residual + LayerNorm 2 ----
        x = _layer_norm(y + ffn, g2, be2, eps)

    out_ref[...] = x.astype(out_ref.dtype)


def _pack_params(layer_params):
    """Pack the per-layer weights into 3 lane-dense, layer-stacked slabs."""
    D, F = BLOCK_DIM, BLOCK_DIM_FEEDFORWARD

    def attn_slab(p):                              # (D, 4D) = [wqkv | wo]
        return jnp.concatenate([p["wqkv"], p["wo"]], axis=1)

    def ffn_slab(p):                               # (D+F, F) = [w1 ; w2 zero-padded]
        w2p = jnp.pad(p["w2"], ((0, 0), (0, F - D)))
        return jnp.concatenate([p["w1"], w2p], axis=0)

    def vec_slab(p):                               # (8, 128): one vector per row
        def row(v):
            v = v.reshape(-1)
            return jnp.pad(v, (0, 128 - v.shape[0]))
        return jnp.stack([row(p["bqkv"]), row(p["bo"]), row(p["b1"]), row(p["b2"]),
                          row(p["g1"]), row(p["be1"]), row(p["g2"]), row(p["be2"])])

    w_attn = jnp.stack([attn_slab(p) for p in layer_params])   # (L, D, 4D)
    w_ffn = jnp.stack([ffn_slab(p) for p in layer_params])     # (L, D+F, F)
    vecs = jnp.stack([vec_slab(p) for p in layer_params])      # (L, 8, 128)
    return w_attn, w_ffn, vecs


def _block_causal_bias(batch, seq):
    """Additive bias over the flattened (batch*seq) row axis:
    0 where (same batch AND key_pos <= query_pos), MASK_VALUE otherwise."""
    n = batch * seq
    r = np.arange(n)[:, None]
    c = np.arange(n)[None, :]
    ok = (c <= r) & ((r // seq) == (c // seq))
    return jnp.asarray(np.where(ok, 0.0, MASK_VALUE), dtype=jnp.float32)


def denoising_block_forward(x, layer_params):
    """Full DenoisingBlock forward: fused stack of causal post-norm encoder layers."""
    B, S, D = x.shape
    L = len(layer_params)
    w_attn, w_ffn, vecs = _pack_params(layer_params)
    bias = _block_causal_bias(B, S)

    kernel = functools.partial(
        _denoising_block_kernel,
        num_layers=L, nhead=BLOCK_NHEAD, eps=LAYER_NORM_EPS,
    )
    # Single grid-less pallas_call: every operand fully VMEM-resident (~100 KB),
    # 5 input DMA descriptors total.  No pipelining machinery on purpose.
    out2d = pl.pallas_call(
        kernel,
        out_shape=jax.ShapeDtypeStruct((B * S, D), x.dtype),
        in_specs=[pl.BlockSpec(memory_space=pltpu.MemorySpace.VMEM)] * 5,
        out_specs=pl.BlockSpec(memory_space=pltpu.MemorySpace.VMEM),
    )(x.reshape(B * S, D), bias, w_attn, w_ffn, vecs)
    return out2d.reshape(B, S, D)


# ---------------- pure-JAX reference (for sanity check) ----------------
def _ref_layer(x, p):
    B, S, D = x.shape
    hd = D // BLOCK_NHEAD
    qkv = x @ p["wqkv"] + p["bqkv"]             # (B,S,3D)
    q, k, v = qkv[..., :D], qkv[..., D:2 * D], qkv[..., 2 * D:]

    def split(t):
        return t.reshape(B, S, BLOCK_NHEAD, hd).transpose(0, 2, 1, 3)

    qh, kh, vh = split(q), split(k), split(v)
    s = jnp.einsum("bhqd,bhkd->bhqk", qh, kh) / (hd ** 0.5)
    mask = jnp.tril(jnp.ones((S, S), bool))
    s = jnp.where(mask, s, MASK_VALUE)
    a = jax.nn.softmax(s, axis=-1)
    o = jnp.einsum("bhqk,bhkd->bhqd", a, vh).transpose(0, 2, 1, 3).reshape(B, S, D)
    o = o @ p["wo"] + p["bo"]

    def ln(t, g, b):
        mu = t.mean(-1, keepdims=True)
        var = ((t - mu) ** 2).mean(-1, keepdims=True)
        return (t - mu) / jnp.sqrt(var + LAYER_NORM_EPS) * g + b

    y = ln(x + o, p["g1"], p["be1"])
    h = jax.nn.gelu(y @ p["w1"] + p["b1"], approximate=False) @ p["w2"] + p["b2"]
    return ln(y + h, p["g2"], p["be2"])


def _ref_forward(x, layer_params):
    for p in layer_params:
        x = _ref_layer(x, p)
    return x


# ---------------- deterministic parameter construction ----------------
def make_params(key):
    D, Dff = BLOCK_DIM, BLOCK_DIM_FEEDFORWARD
    layers = []
    for _ in range(BLOCK_NUM_ENCODER_LAYERS):
        key, k1, k2, k3, k4 = jax.random.split(key, 5)
        layers.append({
            # Linear weights stored pre-transposed for x @ W form.
            "wqkv": 0.02 * jax.random.normal(k1, (D, 3 * D), jnp.float32),
            "bqkv": jnp.zeros((1, 3 * D), jnp.float32),
            "wo":   0.02 * jax.random.normal(k2, (D, D), jnp.float32),
            "bo":   jnp.zeros((1, D), jnp.float32),
            "w1":   0.02 * jax.random.normal(k3, (D, Dff), jnp.float32),
            "b1":   jnp.zeros((1, Dff), jnp.float32),
            "w2":   0.02 * jax.random.normal(k4, (Dff, D), jnp.float32),
            "b2":   jnp.zeros((1, D), jnp.float32),
            "g1":   jnp.ones((1, D), jnp.float32),
            "be1":  jnp.zeros((1, D), jnp.float32),
            "g2":   jnp.ones((1, D), jnp.float32),
            "be2":  jnp.zeros((1, D), jnp.float32),
        })
    return layers


if __name__ == "__main__":
    # Keep the XLA reference matmuls in full f32 so the comparison is tight.
    jax.config.update("jax_default_matmul_precision", "highest")

    key = jax.random.PRNGKey(0)
    kx, kp = jax.random.split(key)
    # block_input_embeddings: (batch, seq, d_model)
    x = jax.random.normal(kx, (BATCH, SEQ, BLOCK_DIM), jnp.float32)
    params = make_params(kp)

    fwd = jax.jit(denoising_block_forward)
    out = jax.block_until_ready(fwd(x, params))

    ref = _ref_forward(x, params)
    assert out.shape == x.shape
    # Only residual differences: MXU accumulation order and the 1.5e-7-accurate
    # in-kernel erf polynomial.
    assert jnp.allclose(out, ref, atol=1e-3, rtol=1e-3), "mismatch vs reference"

    print("KERNEL_OK")
</pallas_src>

<mosaic_0001>
module attributes {stable_mosaic.version = 11 : i64} {
  func.func @_denoising_block_kernel(%arg0: memref<16x32xf32, #tpu.memory_space<vmem>>, %arg1: memref<16x16xf32, #tpu.memory_space<vmem>>, %arg2: memref<2x32x128xf32, #tpu.memory_space<vmem>>, %arg3: memref<2x96x64xf32, #tpu.memory_space<vmem>>, %arg4: memref<2x8x128xf32, #tpu.memory_space<vmem>>, %arg5: memref<16x32xf32, #tpu.memory_space<vmem>>) attributes {dimension_semantics = [], scalar_prefetch = 0 : i64, scratch_operands = 0 : i64, tpu.core_type = #tpu.core_type<tc>} {
    %c0 = arith.constant 0 : index
    %c0_0 = arith.constant 0 : index
    %0 = vector.load %arg0[%c0, %c0_0] : memref<16x32xf32, #tpu.memory_space<vmem>>, vector<16x32xf32>
    %c0_1 = arith.constant 0 : index
    %c0_2 = arith.constant 0 : index
    %1 = vector.load %arg1[%c0_1, %c0_2] : memref<16x16xf32, #tpu.memory_space<vmem>>, vector<16x16xf32>
    %c0_3 = arith.constant 0 : index
    %c0_4 = arith.constant 0 : index
    %c0_5 = arith.constant 0 : index
    %2 = vector.load %arg2[%c0_3, %c0_4, %c0_5] : memref<2x32x128xf32, #tpu.memory_space<vmem>>, vector<1x32x128xf32>
    %3 = vector.shape_cast %2 : vector<1x32x128xf32> to vector<32x128xf32>
    %c0_6 = arith.constant 0 : index
    %c0_7 = arith.constant 0 : index
    %c0_8 = arith.constant 0 : index
    %4 = vector.load %arg3[%c0_6, %c0_7, %c0_8] : memref<2x96x64xf32, #tpu.memory_space<vmem>>, vector<1x96x64xf32>
    %5 = vector.shape_cast %4 : vector<1x96x64xf32> to vector<96x64xf32>
    %c0_9 = arith.constant 0 : index
    %c0_10 = arith.constant 0 : index
    %c0_11 = arith.constant 0 : index
    %6 = vector.load %arg4[%c0_9, %c0_10, %c0_11] : memref<2x8x128xf32, #tpu.memory_space<vmem>>, vector<1x8x128xf32>
    %7 = vector.shape_cast %6 : vector<1x8x128xf32> to vector<8x128xf32>
    %8 = vector.extract_strided_slice %3 {offsets = [0, 0], sizes = [32, 96], strides = [1, 1]} : vector<32x128xf32> to vector<32x96xf32>
    %9 = vector.extract_strided_slice %3 {offsets = [0, 96], sizes = [32, 32], strides = [1, 1]} : vector<32x128xf32> to vector<32x32xf32>
    %10 = vector.extract_strided_slice %5 {offsets = [0, 0], sizes = [32, 64], strides = [1, 1]} : vector<96x64xf32> to vector<32x64xf32>
    %11 = vector.extract_strided_slice %5 {offsets = [32, 0], sizes = [64, 32], strides = [1, 1]} : vector<96x64xf32> to vector<64x32xf32>
    %12 = vector.extract_strided_slice %7 {offsets = [0, 0], sizes = [1, 96], strides = [1, 1]} : vector<8x128xf32> to vector<1x96xf32>
    %13 = vector.extract_strided_slice %7 {offsets = [1, 0], sizes = [1, 32], strides = [1, 1]} : vector<8x128xf32> to vector<1x32xf32>
    %14 = vector.extract_strided_slice %7 {offsets = [2, 0], sizes = [1, 64], strides = [1, 1]} : vector<8x128xf32> to vector<1x64xf32>
    %15 = vector.extract_strided_slice %7 {offsets = [3, 0], sizes = [1, 32], strides = [1, 1]} : vector<8x128xf32> to vector<1x32xf32>
    %16 = vector.extract_strided_slice %7 {offsets = [4, 0], sizes = [1, 32], strides = [1, 1]} : vector<8x128xf32> to vector<1x32xf32>
    %17 = vector.extract_strided_slice %7 {offsets = [5, 0], sizes = [1, 32], strides = [1, 1]} : vector<8x128xf32> to vector<1x32xf32>
    %18 = vector.extract_strided_slice %7 {offsets = [6, 0], sizes = [1, 32], strides = [1, 1]} : vector<8x128xf32> to vector<1x32xf32>
    %19 = vector.extract_strided_slice %7 {offsets = [7, 0], sizes = [1, 32], strides = [1, 1]} : vector<8x128xf32> to vector<1x32xf32>
    %cst = arith.constant dense<0.000000e+00> : vector<16x96xf32>
    %20 = tpu.matmul %0, %8, %cst {dimension_numbers = #tpu.dot_dimension_numbers<[1], [0], [0], [1], [0, 0, 1, 1], [], []>, precision = #tpu.contract_precision<fp32>} : vector<16x32xf32>, vector<32x96xf32>, vector<16x96xf32> -> vector<16x96xf32>
    %21 = vector.broadcast %12 : vector<1x96xf32> to vector<16x96xf32>
    %22 = arith.addf %20, %21 : vector<16x96xf32>
    %23 = vector.extract_strided_slice %22 {offsets = [0, 0], sizes = [16, 8], strides = [1, 1]} : vector<16x96xf32> to vector<16x8xf32>
    %24 = vector.extract_strided_slice %22 {offsets = [0, 32], sizes = [16, 8], strides = [1, 1]} : vector<16x96xf32> to vector<16x8xf32>
    %25 = vector.extract_strided_slice %22 {offsets = [0, 64], sizes = [16, 8], strides = [1, 1]} : vector<16x96xf32> to vector<16x8xf32>
    "tpu.trace_start"() <{level = 10 : i32, message = "nd,md->nm"}> : () -> ()
    %cst_12 = arith.constant dense<0.000000e+00> : vector<16x16xf32>
    %26 = tpu.matmul %23, %24, %cst_12 {dimension_numbers = #tpu.dot_dimension_numbers<[1], [1], [0], [0], [0, 0, 1, 0], [], []>, precision = #tpu.contract_precision<fp32>} : vector<16x8xf32>, vector<16x8xf32>, vector<16x16xf32> -> vector<16x16xf32>
    "tpu.trace_stop"() : () -> ()
    %cst_13 = arith.constant 0.353553385 : f32
    %27 = vector.broadcast %cst_13 : f32 to vector<16x16xf32>
    %28 = arith.mulf %26, %27 : vector<16x16xf32>
    %29 = arith.addf %28, %1 : vector<16x16xf32>
    %cst_14 = arith.constant dense<0xFF800000> : vector<16xf32>
    %30 = vector.multi_reduction <maximumf>, %29, %cst_14 [1] : vector<16x16xf32> to vector<16xf32>
    %31 = vector.shape_cast %30 : vector<16xf32> to vector<16x1xf32>
    %32 = vector.broadcast %31 : vector<16x1xf32> to vector<16x16xf32>
    %33 = arith.subf %29, %32 : vector<16x16xf32>
    %34 = math.exp %33 : vector<16x16xf32>
    %cst_15 = arith.constant dense<0.000000e+00> : vector<16xf32>
    %35 = vector.multi_reduction <add>, %34, %cst_15 [1] : vector<16x16xf32> to vector<16xf32>
    %36 = vector.shape_cast %35 : vector<16xf32> to vector<16x1xf32>
    %37 = vector.broadcast %36 : vector<16x1xf32> to vector<16x16xf32>
    %38 = arith.divf %34, %37 : vector<16x16xf32>
    %cst_16 = arith.constant dense<0.000000e+00> : vector<16x8xf32>
    %39 = tpu.matmul %38, %25, %cst_16 {dimension_numbers = #tpu.dot_dimension_numbers<[1], [0], [0], [1], [0, 0, 1, 1], [], []>, precision = #tpu.contract_precision<fp32>} : vector<16x16xf32>, vector<16x8xf32>, vector<16x8xf32> -> vector<16x8xf32>
    %40 = vector.extract_strided_slice %22 {offsets = [0, 8], sizes = [16, 8], strides = [1, 1]} : vector<16x96xf32> to vector<16x8xf32>
    %41 = vector.extract_strided_slice %22 {offsets = [0, 40], sizes = [16, 8], strides = [1, 1]} : vector<16x96xf32> to vector<16x8xf32>
    %42 = vector.extract_strided_slice %22 {offsets = [0, 72], sizes = [16, 8], strides = [1, 1]} : vector<16x96xf32> to vector<16x8xf32>
    "tpu.trace_start"() <{level = 10 : i32, message = "nd,md->nm"}> : () -> ()
    %cst_17 = arith.constant dense<0.000000e+00> : vector<16x16xf32>
    %43 = tpu.matmul %40, %41, %cst_17 {dimension_numbers = #tpu.dot_dimension_numbers<[1], [1], [0], [0], [0, 0, 1, 0], [], []>, precision = #tpu.contract_precision<fp32>} : vector<16x8xf32>, vector<16x8xf32>, vector<16x16xf32> -> vector<16x16xf32>
    "tpu.trace_stop"() : () -> ()
    %cst_18 = arith.constant 0.353553385 : f32
    %44 = vector.broadcast %cst_18 : f32 to vector<16x16xf32>
    %45 = arith.mulf %43, %44 : vector<16x16xf32>
    %46 = arith.addf %45, %1 : vector<16x16xf32>
    %cst_19 = arith.constant dense<0xFF800000> : vector<16xf32>
    %47 = vector.multi_reduction <maximumf>, %46, %cst_19 [1] : vector<16x16xf32> to vector<16xf32>
    %48 = vector.shape_cast %47 : vector<16xf32> to vector<16x1xf32>
    %49 = vector.broadcast %48 : vector<16x1xf32> to vector<16x16xf32>
    %50 = arith.subf %46, %49 : vector<16x16xf32>
    %51 = math.exp %50 : vector<16x16xf32>
    %cst_20 = arith.constant dense<0.000000e+00> : vector<16xf32>
    %52 = vector.multi_reduction <add>, %51, %cst_20 [1] : vector<16x16xf32> to vector<16xf32>
    %53 = vector.shape_cast %52 : vector<16xf32> to vector<16x1xf32>
    %54 = vector.broadcast %53 : vector<16x1xf32> to vector<16x16xf32>
    %55 = arith.divf %51, %54 : vector<16x16xf32>
    %cst_21 = arith.constant dense<0.000000e+00> : vector<16x8xf32>
    %56 = tpu.matmul %55, %42, %cst_21 {dimension_numbers = #tpu.dot_dimension_numbers<[1], [0], [0], [1], [0, 0, 1, 1], [], []>, precision = #tpu.contract_precision<fp32>} : vector<16x16xf32>, vector<16x8xf32>, vector<16x8xf32> -> vector<16x8xf32>
    %57 = vector.extract_strided_slice %22 {offsets = [0, 16], sizes = [16, 8], strides = [1, 1]} : vector<16x96xf32> to vector<16x8xf32>
    %58 = vector.extract_strided_slice %22 {offsets = [0, 48], sizes = [16, 8], strides = [1, 1]} : vector<16x96xf32> to vector<16x8xf32>
    %59 = vector.extract_strided_slice %22 {offsets = [0, 80], sizes = [16, 8], strides = [1, 1]} : vector<16x96xf32> to vector<16x8xf32>
    "tpu.trace_start"() <{level = 10 : i32, message = "nd,md->nm"}> : () -> ()
    %cst_22 = arith.constant dense<0.000000e+00> : vector<16x16xf32>
    %60 = tpu.matmul %57, %58, %cst_22 {dimension_numbers = #tpu.dot_dimension_numbers<[1], [1], [0], [0], [0, 0, 1, 0], [], []>, precision = #tpu.contract_precision<fp32>} : vector<16x8xf32>, vector<16x8xf32>, vector<16x16xf32> -> vector<16x16xf32>
    "tpu.trace_stop"() : () -> ()
    %cst_23 = arith.constant 0.353553385 : f32
    %61 = vector.broadcast %cst_23 : f32 to vector<16x16xf32>
    %62 = arith.mulf %60, %61 : vector<16x16xf32>
    %63 = arith.addf %62, %1 : vector<16x16xf32>
    %cst_24 = arith.constant dense<0xFF800000> : vector<16xf32>
    %64 = vector.multi_reduction <maximumf>, %63, %cst_24 [1] : vector<16x16xf32> to vector<16xf32>
    %65 = vector.shape_cast %64 : vector<16xf32> to vector<16x1xf32>
    %66 = vector.broadcast %65 : vector<16x1xf32> to vector<16x16xf32>
    %67 = arith.subf %63, %66 : vector<16x16xf32>
    %68 = math.exp %67 : vector<16x16xf32>
    %cst_25 = arith.constant dense<0.000000e+00> : vector<16xf32>
    %69 = vector.multi_reduction <add>, %68, %cst_25 [1] : vector<16x16xf32> to vector<16xf32>
    %70 = vector.shape_cast %69 : vector<16xf32> to vector<16x1xf32>
    %71 = vector.broadcast %70 : vector<16x1xf32> to vector<16x16xf32>
    %72 = arith.divf %68, %71 : vector<16x16xf32>
    %cst_26 = arith.constant dense<0.000000e+00> : vector<16x8xf32>
    %73 = tpu.matmul %72, %59, %cst_26 {dimension_numbers = #tpu.dot_dimension_numbers<[1], [0], [0], [1], [0, 0, 1, 1], [], []>, precision = #tpu.contract_precision<fp32>} : vector<16x16xf32>, vector<16x8xf32>, vector<16x8xf32> -> vector<16x8xf32>
    %74 = vector.extract_strided_slice %22 {offsets = [0, 24], sizes = [16, 8], strides = [1, 1]} : vector<16x96xf32> to vector<16x8xf32>
    %75 = vector.extract_strided_slice %22 {offsets = [0, 56], sizes = [16, 8], strides = [1, 1]} : vector<16x96xf32> to vector<16x8xf32>
    %76 = vector.extract_strided_slice %22 {offsets = [0, 88], sizes = [16, 8], strides = [1, 1]} : vector<16x96xf32> to vector<16x8xf32>
    "tpu.trace_start"() <{level = 10 : i32, message = "nd,md->nm"}> : () -> ()
    %cst_27 = arith.constant dense<0.000000e+00> : vector<16x16xf32>
    %77 = tpu.matmul %74, %75, %cst_27 {dimension_numbers = #tpu.dot_dimension_numbers<[1], [1], [0], [0], [0, 0, 1, 0], [], []>, precision = #tpu.contract_precision<fp32>} : vector<16x8xf32>, vector<16x8xf32>, vector<16x16xf32> -> vector<16x16xf32>
    "tpu.trace_stop"() : () -> ()
    %cst_28 = arith.constant 0.353553385 : f32
    %78 = vector.broadcast %cst_28 : f32 to vector<16x16xf32>
    %79 = arith.mulf %77, %78 : vector<16x16xf32>
    %80 = arith.addf %79, %1 : vector<16x16xf32>
    %cst_29 = arith.constant dense<0xFF800000> : vector<16xf32>
    %81 = vector.multi_reduction <maximumf>, %80, %cst_29 [1] : vector<16x16xf32> to vector<16xf32>
    %82 = vector.shape_cast %81 : vector<16xf32> to vector<16x1xf32>
    %83 = vector.broadcast %82 : vector<16x1xf32> to vector<16x16xf32>
    %84 = arith.subf %80, %83 : vector<16x16xf32>
    %85 = math.exp %84 : vector<16x16xf32>
    %cst_30 = arith.constant dense<0.000000e+00> : vector<16xf32>
    %86 = vector.multi_reduction <add>, %85, %cst_30 [1] : vector<16x16xf32> to vector<16xf32>
    %87 = vector.shape_cast %86 : vector<16xf32> to vector<16x1xf32>
    %88 = vector.broadcast %87 : vector<16x1xf32> to vector<16x16xf32>
    %89 = arith.divf %85, %88 : vector<16x16xf32>
    %cst_31 = arith.constant dense<0.000000e+00> : vector<16x8xf32>
    %90 = tpu.matmul %89, %76, %cst_31 {dimension_numbers = #tpu.dot_dimension_numbers<[1], [0], [0], [1], [0, 0, 1, 1], [], []>, precision = #tpu.contract_precision<fp32>} : vector<16x16xf32>, vector<16x8xf32>, vector<16x8xf32> -> vector<16x8xf32>
    %91 = tpu.concatenate %39, %56, %73, %90 in 1 : vector<16x8xf32>, vector<16x8xf32>, vector<16x8xf32>, vector<16x8xf32> -> vector<16x32xf32>
    %cst_32 = arith.constant dense<0.000000e+00> : vector<16x32xf32>
    %92 = tpu.matmul %91, %9, %cst_32 {dimension_numbers = #tpu.dot_dimension_numbers<[1], [0], [0], [1], [0, 0, 1, 1], [], []>, precision = #tpu.contract_precision<fp32>} : vector<16x32xf32>, vector<32x32xf32>, vector<16x32xf32> -> vector<16x32xf32>
    %93 = vector.broadcast %13 : vector<1x32xf32> to vector<16x32xf32>
    %94 = arith.addf %92, %93 : vector<16x32xf32>
    %95 = arith.addf %0, %94 : vector<16x32xf32>
    %cst_33 = arith.constant dense<0.000000e+00> : vector<16xf32>
    %96 = vector.multi_reduction <add>, %95, %cst_33 [1] : vector<16x32xf32> to vector<16xf32>
    %97 = vector.shape_cast %96 : vector<16xf32> to vector<16x1xf32>
    %cst_34 = arith.constant 3.200000e+01 : f32
    %98 = vector.broadcast %cst_34 : f32 to vector<16x1xf32>
    %99 = arith.divf %97, %98 : vector<16x1xf32>
    %100 = vector.broadcast %99 : vector<16x1xf32> to vector<16x32xf32>
    %101 = arith.subf %95, %100 : vector<16x32xf32>
    %102 = arith.mulf %101, %101 : vector<16x32xf32>
    %cst_35 = arith.constant dense<0.000000e+00> : vector<16xf32>
    %103 = vector.multi_reduction <add>, %102, %cst_35 [1] : vector<16x32xf32> to vector<16xf32>
    %104 = vector.shape_cast %103 : vector<16xf32> to vector<16x1xf32>
    %cst_36 = arith.constant 3.200000e+01 : f32
    %105 = vector.broadcast %cst_36 : f32 to vector<16x1xf32>
    %106 = arith.divf %104, %105 : vector<16x1xf32>
    %cst_37 = arith.constant 9.99999974E-6 : f32
    %107 = vector.broadcast %cst_37 : f32 to vector<16x1xf32>
    %108 = arith.addf %106, %107 : vector<16x1xf32>
    %109 = math.rsqrt %108 : vector<16x1xf32>
    %110 = vector.broadcast %109 : vector<16x1xf32> to vector<16x32xf32>
    %111 = arith.mulf %101, %110 : vector<16x32xf32>
    %112 = vector.broadcast %16 : vector<1x32xf32> to vector<16x32xf32>
    %113 = arith.mulf %111, %112 : vector<16x32xf32>
    %114 = vector.broadcast %17 : vector<1x32xf32> to vector<16x32xf32>
    %115 = arith.addf %113, %114 : vector<16x32xf32>
    %cst_38 = arith.constant dense<0.000000e+00> : vector<16x64xf32>
    %116 = tpu.matmul %115, %10, %cst_38 {dimension_numbers = #tpu.dot_dimension_numbers<[1], [0], [0], [1], [0, 0, 1, 1], [], []>, precision = #tpu.contract_precision<fp32>} : vector<16x32xf32>, vector<32x64xf32>, vector<16x64xf32> -> vector<16x64xf32>
    %117 = vector.broadcast %14 : vector<1x64xf32> to vector<16x64xf32>
    %118 = arith.addf %116, %117 : vector<16x64xf32>
    %cst_39 = arith.constant 5.000000e-01 : f32
    %119 = vector.broadcast %cst_39 : f32 to vector<16x64xf32>
    %120 = arith.mulf %119, %118 : vector<16x64xf32>
    %cst_40 = arith.constant 0.707106769 : f32
    %121 = vector.broadcast %cst_40 : f32 to vector<16x64xf32>
    %122 = arith.mulf %118, %121 : vector<16x64xf32>
    %cst_41 = arith.constant 0.000000e+00 : f32
    %123 = vector.broadcast %cst_41 : f32 to vector<16x64xf32>
    %124 = arith.cmpf oge, %122, %123 : vector<16x64xf32>
    %cst_42 = arith.constant 1.000000e+00 : f32
    %cst_43 = arith.constant -1.000000e+00 : f32
    %125 = vector.broadcast %cst_42 : f32 to vector<16x64xf32>
    %126 = vector.broadcast %cst_43 : f32 to vector<16x64xf32>
    %127 = arith.select %124, %125, %126 : vector<16x64xi1>, vector<16x64xf32>
    %128 = math.absf %122 : vector<16x64xf32>
    %cst_44 = arith.constant 0.327591091 : f32
    %129 = vector.broadcast %cst_44 : f32 to vector<16x64xf32>
    %130 = arith.mulf %129, %128 : vector<16x64xf32>
    %cst_45 = arith.constant 1.000000e+00 : f32
    %131 = vector.broadcast %cst_45 : f32 to vector<16x64xf32>
    %132 = arith.addf %131, %130 : vector<16x64xf32>
    %cst_46 = arith.constant 1.000000e+00 : f32
    %133 = vector.broadcast %cst_46 : f32 to vector<16x64xf32>
    %134 = arith.divf %133, %132 : vector<16x64xf32>
    %cst_47 = arith.constant 1.06140542 : f32
    %135 = vector.broadcast %cst_47 : f32 to vector<16x64xf32>
    %136 = arith.mulf %135, %134 : vector<16x64xf32>
    %cst_48 = arith.constant -1.45315206 : f32
    %137 = vector.broadcast %cst_48 : f32 to vector<16x64xf32>
    %138 = arith.addf %136, %137 : vector<16x64xf32>
    %139 = arith.mulf %138, %134 : vector<16x64xf32>
    %cst_49 = arith.constant 1.42141378 : f32
    %140 = vector.broadcast %cst_49 : f32 to vector<16x64xf32>
    %141 = arith.addf %139, %140 : vector<16x64xf32>
    %142 = arith.mulf %141, %134 : vector<16x64xf32>
    %cst_50 = arith.constant -0.284496725 : f32
    %143 = vector.broadcast %cst_50 : f32 to vector<16x64xf32>
    %144 = arith.addf %142, %143 : vector<16x64xf32>
    %145 = arith.mulf %144, %134 : vector<16x64xf32>
    %cst_51 = arith.constant 0.254829586 : f32
    %146 = vector.broadcast %cst_51 : f32 to vector<16x64xf32>
    %147 = arith.addf %145, %146 : vector<16x64xf32>
    %148 = arith.mulf %147, %134 : vector<16x64xf32>
    %cst_52 = arith.constant 0.000000e+00 : f32
    %149 = vector.broadcast %cst_52 : f32 to vector<16x64xf32>
    %150 = arith.subf %149, %128 : vector<16x64xf32>
    %151 = arith.mulf %150, %128 : vector<16x64xf32>
    %152 = math.exp %151 : vector<16x64xf32>
    %153 = arith.mulf %148, %152 : vector<16x64xf32>
    %cst_53 = arith.constant 1.000000e+00 : f32
    %154 = vector.broadcast %cst_53 : f32 to vector<16x64xf32>
    %155 = arith.subf %154, %153 : vector<16x64xf32>
    %156 = arith.mulf %127, %155 : vector<16x64xf32>
    %cst_54 = arith.constant 1.000000e+00 : f32
    %157 = vector.broadcast %cst_54 : f32 to vector<16x64xf32>
    %158 = arith.addf %157, %156 : vector<16x64xf32>
    %159 = arith.mulf %120, %158 : vector<16x64xf32>
    %cst_55 = arith.constant dense<0.000000e+00> : vector<16x32xf32>
    %160 = tpu.matmul %159, %11, %cst_55 {dimension_numbers = #tpu.dot_dimension_numbers<[1], [0], [0], [1], [0, 0, 1, 1], [], []>, precision = #tpu.contract_precision<fp32>} : vector<16x64xf32>, vector<64x32xf32>, vector<16x32xf32> -> vector<16x32xf32>
    %161 = vector.broadcast %15 : vector<1x32xf32> to vector<16x32xf32>
    %162 = arith.addf %160, %161 : vector<16x32xf32>
    %163 = arith.addf %115, %162 : vector<16x32xf32>
    %cst_56 = arith.constant dense<0.000000e+00> : vector<16xf32>
    %164 = vector.multi_reduction <add>, %163, %cst_56 [1] : vector<16x32xf32> to vector<16xf32>
    %165 = vector.shape_cast %164 : vector<16xf32> to vector<16x1xf32>
    %cst_57 = arith.constant 3.200000e+01 : f32
    %166 = vector.broadcast %cst_57 : f32 to vector<16x1xf32>
    %167 = arith.divf %165, %166 : vector<16x1xf32>
    %168 = vector.broadcast %167 : vector<16x1xf32> to vector<16x32xf32>
    %169 = arith.subf %163, %168 : vector<16x32xf32>
    %170 = arith.mulf %169, %169 : vector<16x32xf32>
    %cst_58 = arith.constant dense<0.000000e+00> : vector<16xf32>
    %171 = vector.multi_reduction <add>, %170, %cst_58 [1] : vector<16x32xf32> to vector<16xf32>
    %172 = vector.shape_cast %171 : vector<16xf32> to vector<16x1xf32>
    %cst_59 = arith.constant 3.200000e+01 : f32
    %173 = vector.broadcast %cst_59 : f32 to vector<16x1xf32>
    %174 = arith.divf %172, %173 : vector<16x1xf32>
    %cst_60 = arith.constant 9.99999974E-6 : f32
    %175 = vector.broadcast %cst_60 : f32 to vector<16x1xf32>
    %176 = arith.addf %174, %175 : vector<16x1xf32>
    %177 = math.rsqrt %176 : vector<16x1xf32>
    %178 = vector.broadcast %177 : vector<16x1xf32> to vector<16x32xf32>
    %179 = arith.mulf %169, %178 : vector<16x32xf32>
    %180 = vector.broadcast %18 : vector<1x32xf32> to vector<16x32xf32>
    %181 = arith.mulf %179, %180 : vector<16x32xf32>
    %182 = vector.broadcast %19 : vector<1x32xf32> to vector<16x32xf32>
    %183 = arith.addf %181, %182 : vector<16x32xf32>
    %c1 = arith.constant 1 : index
    %c0_61 = arith.constant 0 : index
    %c0_62 = arith.constant 0 : index
    %184 = vector.load %arg2[%c1, %c0_61, %c0_62] : memref<2x32x128xf32, #tpu.memory_space<vmem>>, vector<1x32x128xf32>
    %185 = vector.shape_cast %184 : vector<1x32x128xf32> to vector<32x128xf32>
    %c1_63 = arith.constant 1 : index
    %c0_64 = arith.constant 0 : index
    %c0_65 = arith.constant 0 : index
    %186 = vector.load %arg3[%c1_63, %c0_64, %c0_65] : memref<2x96x64xf32, #tpu.memory_space<vmem>>, vector<1x96x64xf32>
    %187 = vector.shape_cast %186 : vector<1x96x64xf32> to vector<96x64xf32>
    %c1_66 = arith.constant 1 : index
    %c0_67 = arith.constant 0 : index
    %c0_68 = arith.constant 0 : index
    %188 = vector.load %arg4[%c1_66, %c0_67, %c0_68] : memref<2x8x128xf32, #tpu.memory_space<vmem>>, vector<1x8x128xf32>
    %189 = vector.shape_cast %188 : vector<1x8x128xf32> to vector<8x128xf32>
    %190 = vector.extract_strided_slice %185 {offsets = [0, 0], sizes = [32, 96], strides = [1, 1]} : vector<32x128xf32> to vector<32x96xf32>
    %191 = vector.extract_strided_slice %185 {offsets = [0, 96], sizes = [32, 32], strides = [1, 1]} : vector<32x128xf32> to vector<32x32xf32>
    %192 = vector.extract_strided_slice %187 {offsets = [0, 0], sizes = [32, 64], strides = [1, 1]} : vector<96x64xf32> to vector<32x64xf32>
    %193 = vector.extract_strided_slice %187 {offsets = [32, 0], sizes = [64, 32], strides = [1, 1]} : vector<96x64xf32> to vector<64x32xf32>
    %194 = vector.extract_strided_slice %189 {offsets = [0, 0], sizes = [1, 96], strides = [1, 1]} : vector<8x128xf32> to vector<1x96xf32>
    %195 = vector.extract_strided_slice %189 {offsets = [1, 0], sizes = [1, 32], strides = [1, 1]} : vector<8x128xf32> to vector<1x32xf32>
    %196 = vector.extract_strided_slice %189 {offsets = [2, 0], sizes = [1, 64], strides = [1, 1]} : vector<8x128xf32> to vector<1x64xf32>
    %197 = vector.extract_strided_slice %189 {offsets = [3, 0], sizes = [1, 32], strides = [1, 1]} : vector<8x128xf32> to vector<1x32xf32>
    %198 = vector.extract_strided_slice %189 {offsets = [4, 0], sizes = [1, 32], strides = [1, 1]} : vector<8x128xf32> to vector<1x32xf32>
    %199 = vector.extract_strided_slice %189 {offsets = [5, 0], sizes = [1, 32], strides = [1, 1]} : vector<8x128xf32> to vector<1x32xf32>
    %200 = vector.extract_strided_slice %189 {offsets = [6, 0], sizes = [1, 32], strides = [1, 1]} : vector<8x128xf32> to vector<1x32xf32>
    %201 = vector.extract_strided_slice %189 {offsets = [7, 0], sizes = [1, 32], strides = [1, 1]} : vector<8x128xf32> to vector<1x32xf32>
    %cst_69 = arith.constant dense<0.000000e+00> : vector<16x96xf32>
    %202 = tpu.matmul %183, %190, %cst_69 {dimension_numbers = #tpu.dot_dimension_numbers<[1], [0], [0], [1], [0, 0, 1, 1], [], []>, precision = #tpu.contract_precision<fp32>} : vector<16x32xf32>, vector<32x96xf32>, vector<16x96xf32> -> vector<16x96xf32>
    %203 = vector.broadcast %194 : vector<1x96xf32> to vector<16x96xf32>
    %204 = arith.addf %202, %203 : vector<16x96xf32>
    %205 = vector.extract_strided_slice %204 {offsets = [0, 0], sizes = [16, 8], strides = [1, 1]} : vector<16x96xf32> to vector<16x8xf32>
    %206 = vector.extract_strided_slice %204 {offsets = [0, 32], sizes = [16, 8], strides = [1, 1]} : vector<16x96xf32> to vector<16x8xf32>
    %207 = vector.extract_strided_slice %204 {offsets = [0, 64], sizes = [16, 8], strides = [1, 1]} : vector<16x96xf32> to vector<16x8xf32>
    "tpu.trace_start"() <{level = 10 : i32, message = "nd,md->nm"}> : () -> ()
    %cst_70 = arith.constant dense<0.000000e+00> : vector<16x16xf32>
    %208 = tpu.matmul %205, %206, %cst_70 {dimension_numbers = #tpu.dot_dimension_numbers<[1], [1], [0], [0], [0, 0, 1, 0], [], []>, precision = #tpu.contract_precision<fp32>} : vector<16x8xf32>, vector<16x8xf32>, vector<16x16xf32> -> vector<16x16xf32>
    "tpu.trace_stop"() : () -> ()
    %cst_71 = arith.constant 0.353553385 : f32
    %209 = vector.broadcast %cst_71 : f32 to vector<16x16xf32>
    %210 = arith.mulf %208, %209 : vector<16x16xf32>
    %211 = arith.addf %210, %1 : vector<16x16xf32>
    %cst_72 = arith.constant dense<0xFF800000> : vector<16xf32>
    %212 = vector.multi_reduction <maximumf>, %211, %cst_72 [1] : vector<16x16xf32> to vector<16xf32>
    %213 = vector.shape_cast %212 : vector<16xf32> to vector<16x1xf32>
    %214 = vector.broadcast %213 : vector<16x1xf32> to vector<16x16xf32>
    %215 = arith.subf %211, %214 : vector<16x16xf32>
    %216 = math.exp %215 : vector<16x16xf32>
    %cst_73 = arith.constant dense<0.000000e+00> : vector<16xf32>
    %217 = vector.multi_reduction <add>, %216, %cst_73 [1] : vector<16x16xf32> to vector<16xf32>
    %218 = vector.shape_cast %217 : vector<16xf32> to vector<16x1xf32>
    %219 = vector.broadcast %218 : vector<16x1xf32> to vector<16x16xf32>
    %220 = arith.divf %216, %219 : vector<16x16xf32>
    %cst_74 = arith.constant dense<0.000000e+00> : vector<16x8xf32>
    %221 = tpu.matmul %220, %207, %cst_74 {dimension_numbers = #tpu.dot_dimension_numbers<[1], [0], [0], [1], [0, 0, 1, 1], [], []>, precision = #tpu.contract_precision<fp32>} : vector<16x16xf32>, vector<16x8xf32>, vector<16x8xf32> -> vector<16x8xf32>
    %222 = vector.extract_strided_slice %204 {offsets = [0, 8], sizes = [16, 8], strides = [1, 1]} : vector<16x96xf32> to vector<16x8xf32>
    %223 = vector.extract_strided_slice %204 {offsets = [0, 40], sizes = [16, 8], strides = [1, 1]} : vector<16x96xf32> to vector<16x8xf32>
    %224 = vector.extract_strided_slice %204 {offsets = [0, 72], sizes = [16, 8], strides = [1, 1]} : vector<16x96xf32> to vector<16x8xf32>
    "tpu.trace_start"() <{level = 10 : i32, message = "nd,md->nm"}> : () -> ()
    %cst_75 = arith.constant dense<0.000000e+00> : vector<16x16xf32>
    %225 = tpu.matmul %222, %223, %cst_75 {dimension_numbers = #tpu.dot_dimension_numbers<[1], [1], [0], [0], [0, 0, 1, 0], [], []>, precision = #tpu.contract_precision<fp32>} : vector<16x8xf32>, vector<16x8xf32>, vector<16x16xf32> -> vector<16x16xf32>
    "tpu.trace_stop"() : () -> ()
    %cst_76 = arith.constant 0.353553385 : f32
    %226 = vector.broadcast %cst_76 : f32 to vector<16x16xf32>
    %227 = arith.mulf %225, %226 : vector<16x16xf32>
    %228 = arith.addf %227, %1 : vector<16x16xf32>
    %cst_77 = arith.constant dense<0xFF800000> : vector<16xf32>
    %229 = vector.multi_reduction <maximumf>, %228, %cst_77 [1] : vector<16x16xf32> to vector<16xf32>
    %230 = vector.shape_cast %229 : vector<16xf32> to vector<16x1xf32>
    %231 = vector.broadcast %230 : vector<16x1xf32> to vector<16x16xf32>
    %232 = arith.subf %228, %231 : vector<16x16xf32>
    %233 = math.exp %232 : vector<16x16xf32>
    %cst_78 = arith.constant dense<0.000000e+00> : vector<16xf32>
    %234 = vector.multi_reduction <add>, %233, %cst_78 [1] : vector<16x16xf32> to vector<16xf32>
    %235 = vector.shape_cast %234 : vector<16xf32> to vector<16x1xf32>
    %236 = vector.broadcast %235 : vector<16x1xf32> to vector<16x16xf32>
    %237 = arith.divf %233, %236 : vector<16x16xf32>
    %cst_79 = arith.constant dense<0.000000e+00> : vector<16x8xf32>
    %238 = tpu.matmul %237, %224, %cst_79 {dimension_numbers = #tpu.dot_dimension_numbers<[1], [0], [0], [1], [0, 0, 1, 1], [], []>, precision = #tpu.contract_precision<fp32>} : vector<16x16xf32>, vector<16x8xf32>, vector<16x8xf32> -> vector<16x8xf32>
    %239 = vector.extract_strided_slice %204 {offsets = [0, 16], sizes = [16, 8], strides = [1, 1]} : vector<16x96xf32> to vector<16x8xf32>
    %240 = vector.extract_strided_slice %204 {offsets = [0, 48], sizes = [16, 8], strides = [1, 1]} : vector<16x96xf32> to vector<16x8xf32>
    %241 = vector.extract_strided_slice %204 {offsets = [0, 80], sizes = [16, 8], strides = [1, 1]} : vector<16x96xf32> to vector<16x8xf32>
    "tpu.trace_start"() <{level = 10 : i32, message = "nd,md->nm"}> : () -> ()
    %cst_80 = arith.constant dense<0.000000e+00> : vector<16x16xf32>
    %242 = tpu.matmul %239, %240, %cst_80 {dimension_numbers = #tpu.dot_dimension_numbers<[1], [1], [0], [0], [0, 0, 1, 0], [], []>, precision = #tpu.contract_precision<fp32>} : vector<16x8xf32>, vector<16x8xf32>, vector<16x16xf32> -> vector<16x16xf32>
    "tpu.trace_stop"() : () -> ()
    %cst_81 = arith.constant 0.353553385 : f32
    %243 = vector.broadcast %cst_81 : f32 to vector<16x16xf32>
    %244 = arith.mulf %242, %243 : vector<16x16xf32>
    %245 = arith.addf %244, %1 : vector<16x16xf32>
    %cst_82 = arith.constant dense<0xFF800000> : vector<16xf32>
    %246 = vector.multi_reduction <maximumf>, %245, %cst_82 [1] : vector<16x16xf32> to vector<16xf32>
    %247 = vector.shape_cast %246 : vector<16xf32> to vector<16x1xf32>
    %248 = vector.broadcast %247 : vector<16x1xf32> to vector<16x16xf32>
    %249 = arith.subf %245, %248 : vector<16x16xf32>
    %250 = math.exp %249 : vector<16x16xf32>
    %cst_83 = arith.constant dense<0.000000e+00> : vector<16xf32>
    %251 = vector.multi_reduction <add>, %250, %cst_83 [1] : vector<16x16xf32> to vector<16xf32>
    %252 = vector.shape_cast %251 : vector<16xf32> to vector<16x1xf32>
    %253 = vector.broadcast %252 : vector<16x1xf32> to vector<16x16xf32>
    %254 = arith.divf %250, %253 : vector<16x16xf32>
    %cst_84 = arith.constant dense<0.000000e+00> : vector<16x8xf32>
    %255 = tpu.matmul %254, %241, %cst_84 {dimension_numbers = #tpu.dot_dimension_numbers<[1], [0], [0], [1], [0, 0, 1, 1], [], []>, precision = #tpu.contract_precision<fp32>} : vector<16x16xf32>, vector<16x8xf32>, vector<16x8xf32> -> vector<16x8xf32>
    %256 = vector.extract_strided_slice %204 {offsets = [0, 24], sizes = [16, 8], strides = [1, 1]} : vector<16x96xf32> to vector<16x8xf32>
    %257 = vector.extract_strided_slice %204 {offsets = [0, 56], sizes = [16, 8], strides = [1, 1]} : vector<16x96xf32> to vector<16x8xf32>
    %258 = vector.extract_strided_slice %204 {offsets = [0, 88], sizes = [16, 8], strides = [1, 1]} : vector<16x96xf32> to vector<16x8xf32>
    "tpu.trace_start"() <{level = 10 : i32, message = "nd,md->nm"}> : () -> ()
    %cst_85 = arith.constant dense<0.000000e+00> : vector<16x16xf32>
    %259 = tpu.matmul %256, %257, %cst_85 {dimension_numbers = #tpu.dot_dimension_numbers<[1], [1], [0], [0], [0, 0, 1, 0], [], []>, precision = #tpu.contract_precision<fp32>} : vector<16x8xf32>, vector<16x8xf32>, vector<16x16xf32> -> vector<16x16xf32>
    "tpu.trace_stop"() : () -> ()
    %cst_86 = arith.constant 0.353553385 : f32
    %260 = vector.broadcast %cst_86 : f32 to vector<16x16xf32>
    %261 = arith.mulf %259, %260 : vector<16x16xf32>
    %262 = arith.addf %261, %1 : vector<16x16xf32>
    %cst_87 = arith.constant dense<0xFF800000> : vector<16xf32>
    %263 = vector.multi_reduction <maximumf>, %262, %cst_87 [1] : vector<16x16xf32> to vector<16xf32>
    %264 = vector.shape_cast %263 : vector<16xf32> to vector<16x1xf32>
    %265 = vector.broadcast %264 : vector<16x1xf32> to vector<16x16xf32>
    %266 = arith.subf %262, %265 : vector<16x16xf32>
    %267 = math.exp %266 : vector<16x16xf32>
    %cst_88 = arith.constant dense<0.000000e+00> : vector<16xf32>
    %268 = vector.multi_reduction <add>, %267, %cst_88 [1] : vector<16x16xf32> to vector<16xf32>
    %269 = vector.shape_cast %268 : vector<16xf32> to vector<16x1xf32>
    %270 = vector.broadcast %269 : vector<16x1xf32> to vector<16x16xf32>
    %271 = arith.divf %267, %270 : vector<16x16xf32>
    %cst_89 = arith.constant dense<0.000000e+00> : vector<16x8xf32>
    %272 = tpu.matmul %271, %258, %cst_89 {dimension_numbers = #tpu.dot_dimension_numbers<[1], [0], [0], [1], [0, 0, 1, 1], [], []>, precision = #tpu.contract_precision<fp32>} : vector<16x16xf32>, vector<16x8xf32>, vector<16x8xf32> -> vector<16x8xf32>
    %273 = tpu.concatenate %221, %238, %255, %272 in 1 : vector<16x8xf32>, vector<16x8xf32>, vector<16x8xf32>, vector<16x8xf32> -> vector<16x32xf32>
    %cst_90 = arith.constant dense<0.000000e+00> : vector<16x32xf32>
    %274 = tpu.matmul %273, %191, %cst_90 {dimension_numbers = #tpu.dot_dimension_numbers<[1], [0], [0], [1], [0, 0, 1, 1], [], []>, precision = #tpu.contract_precision<fp32>} : vector<16x32xf32>, vector<32x32xf32>, vector<16x32xf32> -> vector<16x32xf32>
    %275 = vector.broadcast %195 : vector<1x32xf32> to vector<16x32xf32>
    %276 = arith.addf %274, %275 : vector<16x32xf32>
    %277 = arith.addf %183, %276 : vector<16x32xf32>
    %cst_91 = arith.constant dense<0.000000e+00> : vector<16xf32>
    %278 = vector.multi_reduction <add>, %277, %cst_91 [1] : vector<16x32xf32> to vector<16xf32>
    %279 = vector.shape_cast %278 : vector<16xf32> to vector<16x1xf32>
    %cst_92 = arith.constant 3.200000e+01 : f32
    %280 = vector.broadcast %cst_92 : f32 to vector<16x1xf32>
    %281 = arith.divf %279, %280 : vector<16x1xf32>
    %282 = vector.broadcast %281 : vector<16x1xf32> to vector<16x32xf32>
    %283 = arith.subf %277, %282 : vector<16x32xf32>
    %284 = arith.mulf %283, %283 : vector<16x32xf32>
    %cst_93 = arith.constant dense<0.000000e+00> : vector<16xf32>
    %285 = vector.multi_reduction <add>, %284, %cst_93 [1] : vector<16x32xf32> to vector<16xf32>
    %286 = vector.shape_cast %285 : vector<16xf32> to vector<16x1xf32>
    %cst_94 = arith.constant 3.200000e+01 : f32
    %287 = vector.broadcast %cst_94 : f32 to vector<16x1xf32>
    %288 = arith.divf %286, %287 : vector<16x1xf32>
    %cst_95 = arith.constant 9.99999974E-6 : f32
    %289 = vector.broadcast %cst_95 : f32 to vector<16x1xf32>
    %290 = arith.addf %288, %289 : vector<16x1xf32>
    %291 = math.rsqrt %290 : vector<16x1xf32>
    %292 = vector.broadcast %291 : vector<16x1xf32> to vector<16x32xf32>
    %293 = arith.mulf %283, %292 : vector<16x32xf32>
    %294 = vector.broadcast %198 : vector<1x32xf32> to vector<16x32xf32>
    %295 = arith.mulf %293, %294 : vector<16x32xf32>
    %296 = vector.broadcast %199 : vector<1x32xf32> to vector<16x32xf32>
    %297 = arith.addf %295, %296 : vector<16x32xf32>
    %cst_96 = arith.constant dense<0.000000e+00> : vector<16x64xf32>
    %298 = tpu.matmul %297, %192, %cst_96 {dimension_numbers = #tpu.dot_dimension_numbers<[1], [0], [0], [1], [0, 0, 1, 1], [], []>, precision = #tpu.contract_precision<fp32>} : vector<16x32xf32>, vector<32x64xf32>, vector<16x64xf32> -> vector<16x64xf32>
    %299 = vector.broadcast %196 : vector<1x64xf32> to vector<16x64xf32>
    %300 = arith.addf %298, %299 : vector<16x64xf32>
    %cst_97 = arith.constant 5.000000e-01 : f32
    %301 = vector.broadcast %cst_97 : f32 to vector<16x64xf32>
    %302 = arith.mulf %301, %300 : vector<16x64xf32>
    %cst_98 = arith.constant 0.707106769 : f32
    %303 = vector.broadcast %cst_98 : f32 to vector<16x64xf32>
    %304 = arith.mulf %300, %303 : vector<16x64xf32>
    %cst_99 = arith.constant 0.000000e+00 : f32
    %305 = vector.broadcast %cst_99 : f32 to vector<16x64xf32>
    %306 = arith.cmpf oge, %304, %305 : vector<16x64xf32>
    %cst_100 = arith.constant 1.000000e+00 : f32
    %cst_101 = arith.constant -1.000000e+00 : f32
    %307 = vector.broadcast %cst_100 : f32 to vector<16x64xf32>
    %308 = vector.broadcast %cst_101 : f32 to vector<16x64xf32>
    %309 = arith.select %306, %307, %308 : vector<16x64xi1>, vector<16x64xf32>
    %310 = math.absf %304 : vector<16x64xf32>
    %cst_102 = arith.constant 0.327591091 : f32
    %311 = vector.broadcast %cst_102 : f32 to vector<16x64xf32>
    %312 = arith.mulf %311, %310 : vector<16x64xf32>
    %cst_103 = arith.constant 1.000000e+00 : f32
    %313 = vector.broadcast %cst_103 : f32 to vector<16x64xf32>
    %314 = arith.addf %313, %312 : vector<16x64xf32>
    %cst_104 = arith.constant 1.000000e+00 : f32
    %315 = vector.broadcast %cst_104 : f32 to vector<16x64xf32>
    %316 = arith.divf %315, %314 : vector<16x64xf32>
    %cst_105 = arith.constant 1.06140542 : f32
    %317 = vector.broadcast %cst_105 : f32 to vector<16x64xf32>
    %318 = arith.mulf %317, %316 : vector<16x64xf32>
    %cst_106 = arith.constant -1.45315206 : f32
    %319 = vector.broadcast %cst_106 : f32 to vector<16x64xf32>
    %320 = arith.addf %318, %319 : vector<16x64xf32>
    %321 = arith.mulf %320, %316 : vector<16x64xf32>
    %cst_107 = arith.constant 1.42141378 : f32
    %322 = vector.broadcast %cst_107 : f32 to vector<16x64xf32>
    %323 = arith.addf %321, %322 : vector<16x64xf32>
    %324 = arith.mulf %323, %316 : vector<16x64xf32>
    %cst_108 = arith.constant -0.284496725 : f32
    %325 = vector.broadcast %cst_108 : f32 to vector<16x64xf32>
    %326 = arith.addf %324, %325 : vector<16x64xf32>
    %327 = arith.mulf %326, %316 : vector<16x64xf32>
    %cst_109 = arith.constant 0.254829586 : f32
    %328 = vector.broadcast %cst_109 : f32 to vector<16x64xf32>
    %329 = arith.addf %327, %328 : vector<16x64xf32>
    %330 = arith.mulf %329, %316 : vector<16x64xf32>
    %cst_110 = arith.constant 0.000000e+00 : f32
    %331 = vector.broadcast %cst_110 : f32 to vector<16x64xf32>
    %332 = arith.subf %331, %310 : vector<16x64xf32>
    %333 = arith.mulf %332, %310 : vector<16x64xf32>
    %334 = math.exp %333 : vector<16x64xf32>
    %335 = arith.mulf %330, %334 : vector<16x64xf32>
    %cst_111 = arith.constant 1.000000e+00 : f32
    %336 = vector.broadcast %cst_111 : f32 to vector<16x64xf32>
    %337 = arith.subf %336, %335 : vector<16x64xf32>
    %338 = arith.mulf %309, %337 : vector<16x64xf32>
    %cst_112 = arith.constant 1.000000e+00 : f32
    %339 = vector.broadcast %cst_112 : f32 to vector<16x64xf32>
    %340 = arith.addf %339, %338 : vector<16x64xf32>
    %341 = arith.mulf %302, %340 : vector<16x64xf32>
    %cst_113 = arith.constant dense<0.000000e+00> : vector<16x32xf32>
    %342 = tpu.matmul %341, %193, %cst_113 {dimension_numbers = #tpu.dot_dimension_numbers<[1], [0], [0], [1], [0, 0, 1, 1], [], []>, precision = #tpu.contract_precision<fp32>} : vector<16x64xf32>, vector<64x32xf32>, vector<16x32xf32> -> vector<16x32xf32>
    %343 = vector.broadcast %197 : vector<1x32xf32> to vector<16x32xf32>
    %344 = arith.addf %342, %343 : vector<16x32xf32>
    %345 = arith.addf %297, %344 : vector<16x32xf32>
    %cst_114 = arith.constant dense<0.000000e+00> : vector<16xf32>
    %346 = vector.multi_reduction <add>, %345, %cst_114 [1] : vector<16x32xf32> to vector<16xf32>
    %347 = vector.shape_cast %346 : vector<16xf32> to vector<16x1xf32>
    %cst_115 = arith.constant 3.200000e+01 : f32
    %348 = vector.broadcast %cst_115 : f32 to vector<16x1xf32>
    %349 = arith.divf %347, %348 : vector<16x1xf32>
    %350 = vector.broadcast %349 : vector<16x1xf32> to vector<16x32xf32>
    %351 = arith.subf %345, %350 : vector<16x32xf32>
    %352 = arith.mulf %351, %351 : vector<16x32xf32>
    %cst_116 = arith.constant dense<0.000000e+00> : vector<16xf32>
    %353 = vector.multi_reduction <add>, %352, %cst_116 [1] : vector<16x32xf32> to vector<16xf32>
    %354 = vector.shape_cast %353 : vector<16xf32> to vector<16x1xf32>
    %cst_117 = arith.constant 3.200000e+01 : f32
    %355 = vector.broadcast %cst_117 : f32 to vector<16x1xf32>
    %356 = arith.divf %354, %355 : vector<16x1xf32>
    %cst_118 = arith.constant 9.99999974E-6 : f32
    %357 = vector.broadcast %cst_118 : f32 to vector<16x1xf32>
    %358 = arith.addf %356, %357 : vector<16x1xf32>
    %359 = math.rsqrt %358 : vector<16x1xf32>
    %360 = vector.broadcast %359 : vector<16x1xf32> to vector<16x32xf32>
    %361 = arith.mulf %351, %360 : vector<16x32xf32>
    %362 = vector.broadcast %200 : vector<1x32xf32> to vector<16x32xf32>
    %363 = arith.mulf %361, %362 : vector<16x32xf32>
    %364 = vector.broadcast %201 : vector<1x32xf32> to vector<16x32xf32>
    %365 = arith.addf %363, %364 : vector<16x32xf32>
    %c0_119 = arith.constant 0 : index
    %c0_120 = arith.constant 0 : index
    %366 = vector.load %arg5[%c0_119, %c0_120] : memref<16x32xf32, #tpu.memory_space<vmem>>, vector<16x32xf32>
    tpu.vector_store %arg5[%c0_119, %c0_120], %365 {strides = array<i32>} : memref<16x32xf32, #tpu.memory_space<vmem>>, vector<16x32xf32>,
    return
  }
}

</mosaic_0001>

<bundles_post_ra>
// kernel: denoising_block_forward.1
= control target key start
LH: loop header
LB: loop body
LE: loop exit
PB: predicated region body
PF: predicated region fallthrough
CT: control target
= control target key end

     0   :  { %vm46_vm0 = vcmask 261120   ;;  %s17481_s0 = inlined_call_operand.vmem [shape: f32[16,32], index: 0, kind: input, shape index: {}]   ;;  %s17482_s1 = inlined_call_operand.vmem [shape: f32[16,16], index: 1, kind: input, shape index: {}]   ;;  %s17483_s2 = inlined_call_operand.vmem [shape: f32[2,32,128], index: 2, kind: input, shape index: {}]   ;;  %s17484_s3 = inlined_call_operand.vmem [shape: f32[2,96,64], index: 3, kind: input, shape index: {}]   ;;  %s17485_s4 = inlined_call_operand.vmem [shape: f32[2,8,128], index: 4, kind: input, shape index: {}]   ;;  %s17486_s5 = inlined_call_operand.hbm [shape: f32[16,32], index: 5, kind: output, shape index: {}]  }
   0x1   :  { %v28_v0 = vld [vmem:[%s17483_s2 + $0x18] sm:$0xff]  ;;  %v27_v1 = vld [vmem:[%s17483_s2 + $0x10] sm:$0xff]  ;;  %v26_v2 = vld [vmem:[%s17483_s2 + $0x8] sm:$0xff] }
   0x2   :  { %v15558_v3 = vand.u32 4294901760, %v28_v0  ;;  %v15560_v4 = vand.u32 4294901760, %v27_v1  ;;  %v15562_v5 = vand.u32 4294901760, %v26_v2  ;;  %v25_v6 = vld [vmem:[%s17483_s2] sm:$0xff]  ;;  %v22_v8 = vld [vmem:[%s17481_s0 + $0x8] sm:$0xff] }
   0x3   :  { %v21_v7 = vld [vmem:[%s17481_s0] sm:$0xff]  ;;  %v15573_v9 = vand.u32 4294901760, %v25_v6  ;;  %v51_v11 = vsel %vm46_vm0, %v22_v8, 0 }
   0x4   :  { %v48_v10 = vsel %vm46_vm0, %v21_v7, 0  ;;  %14051 = vmatprep.subr.mxu0 %v15558_v3  ;;  %v168_v12 = vsub.f32 %v28_v0, %v15558_v3  ;;  %v175_v14 = vsub.f32 %v27_v1, %v15560_v4  ;;  %v15582_v15 = vand.u32 4294901760, %v51_v11 }
   0x5   :  { %v15579_v13 = vand.u32 4294901760, %v48_v10 }
   0x6   :  { %10 = vsyncpa [#allocation3], 0  ;;  %14052 = vmatpush3.msra.mxu0 %v15558_v3  ;;  %v182_v16 = vsub.f32 %v26_v2, %v15562_v5  ;;  %v189_v17 = vsub.f32 %v25_v6, %v15573_v9  ;;  %v169_v18 = vand.u32 4294901760, %v168_v12  ;;  %v176_v20 = vand.u32 4294901760, %v175_v14  ;;  %v41_v41 = vld [vmem:[%s17485_s4] sm:$0xff]  ;;  %s15501_s7 = smov 96  }
   0x7   :  { %14053 = vmatprep.subr.mxu0 %v15560_v4  ;;  %v123_v19 = vsub.f32 %v48_v10, %v15579_v13  ;;  %v133_v21 = vsub.f32 %v51_v11, %v15582_v15  ;;  %14070 = vmatprep.mubr.f32.mxu1 %v15579_v13  ;;  %v42_v38 = vlaneseq  ;;  %vm587_vm1 = vcmask 64512   ;;  %s15502_s12 = smov 64   ;;  %s15503_s13 = smov 120  }
   0x8   :  { %14054 = vmatpush3.msra.mxu0 %v15560_v4  ;;  %v183_v22 = vand.u32 4294901760, %v182_v16  ;;  %v190_v23 = vand.u32 4294901760, %v189_v17  ;;  %v170_v24 = vsub.f32 %v168_v12, %v169_v18  ;;  %v177_v26 = vsub.f32 %v175_v14, %v176_v20  ;;  %s15504_s14 = smov 88   ;;  %s15505_s15 = smov 56  }
   0x9   :  { %14055 = vmatprep.subr.mxu0 %v15562_v5  ;;  %v124_v25 = vand.u32 4294901760, %v123_v19  ;;  %v134_v27 = vand.u32 4294901760, %v133_v21  ;;  %v15617_v39 = vshrl.u32 %v42_v38, 7  ;;  %vm1102_vm2 = vcmask 130048   ;;  %s15506_s16 = smov 112   ;;  %s15507_s17 = smov 80  }
   0xa   :  { %14056 = vmatpush3.msra.mxu0 %v15562_v5  ;;  %v184_v28 = vsub.f32 %v182_v16, %v183_v22  ;;  %v191_v29 = vsub.f32 %v189_v17, %v190_v23  ;;  %v171_v30 = vand.u32 4294901760, %v170_v24  ;;  %v178_v32 = vand.u32 4294901760, %v177_v26  ;;  %s15508_s18 = smov 48   ;;  %s15509_s19 = smov 72  }
   0xb   :  { %14057 = vmatprep.subr.mxu0 %v15573_v9  ;;  %v125_v31 = vsub.f32 %v123_v19, %v124_v25  ;;  %v135_v33 = vsub.f32 %v133_v21, %v134_v27  ;;  %v44_v40 = vsub.s32 0, %v15617_v39  ;;  %s15510_s20 = smov 104   ;;  %s15511_s25 = smov 40   ;;  %vm4841_vm3 = vcmask 195584  }
   0xc   :  { %14058 = vmatpush3.msra.mxu0 %v15573_v9  ;;  %14062 = vmatprep.subr.mxu1 %v171_v30  ;;  %v185_v36 = vand.u32 4294901760, %v184_v28  ;;  %v192_v37 = vand.u32 4294901760, %v191_v29  ;;  %s15512_s28 = smov 32   ;;  %s15513_s29 = smov 8   ;;  %vm6035_vm6 = vcmask 523264  }
   0xd   :  { %v126_v34 = vand.u32 4294901760, %v125_v31  ;;  %14073 = vmatprep.subr.mxu0 %v168_v12  ;;  %v136_v35 = vand.u32 4294901760, %v135_v33  ;;  %14063 = vmatpush3.msra.mxu1 %v171_v30  ;;  %v45_v43 = vrot.slane %v41_v41, %v44_v40  ;;  %s15514_s30 = smov 16   ;;  %s15515_s22 = smov 24  }
   0xe   :  { %14064 = vmatprep.subr.mxu1 %v178_v32 }
   0xf   :  { %14059 = vmatprep.mubr.f32.mxu0 %v126_v34  ;;  %14065 = vmatpush3.msra.mxu1 %v178_v32 }
  0x10   :  { %14060 = vmatmul.mubr.f32.vlgmr.msra.gmra.mxu0 %v136_v35  ;;  %14066 = vmatprep.subr.mxu1 %v185_v36 }
  0x11   :  { %14074 = vmatpush3.msra.mxu0 %v168_v12  ;;  %14067 = vmatpush3.msra.mxu1 %v185_v36 }
  0x12   :  { %14075 = vmatprep.subr.mxu0 %v175_v14  ;;  %14068 = vmatprep.subr.mxu1 %v192_v37 }
  0x13   :  { %14076 = vmatpush3.msra.mxu0 %v175_v14  ;;  %14069 = vmatpush3.msra.mxu1 %v192_v37 }
  0x14   :  { %14077 = vmatprep.subr.mxu0 %v182_v16  ;;  %14071 = vmatmul.mubr.f32.vlgmr.msra.gmra.mxu1 %v15582_v15 }
  0x15   :  { %14078 = vmatpush3.msra.mxu0 %v182_v16  ;;  %14084 = vmatprep.subr.mxu1 %v15558_v3 }
  0x16   :  { %14079 = vmatprep.subr.mxu0 %v189_v17  ;;  %14081 = vmatprep.mubr.f32.mxu0 %v123_v19 }
  0x17   :  { %14080 = vmatpush3.msra.mxu0 %v189_v17  ;;  %14085 = vmatpush3.msra.mxu1 %v15558_v3 }
  0x18   :  { %14082 = vmatmul.mubr.f32.vlgmr.msra.gmra.mxu0 %v133_v21  ;;  %14086 = vmatprep.subr.mxu1 %v15560_v4 }
  0x19   :  { %14095 = vmatprep.subr.mxu0 %v169_v18  ;;  %14087 = vmatpush3.msra.mxu1 %v15560_v4 }
  0x1a   :  { %14096 = vmatpush3.msra.mxu0 %v169_v18  ;;  %14088 = vmatprep.subr.mxu1 %v15562_v5 }
  0x1b   :  { %14097 = vmatprep.subr.mxu0 %v176_v20  ;;  %14089 = vmatpush3.msra.mxu1 %v15562_v5 }
  0x1c   :  { %14098 = vmatpush3.msra.mxu0 %v176_v20  ;;  %14090 = vmatprep.subr.mxu1 %v15573_v9 }
  0x1d   :  { %14099 = vmatprep.subr.mxu0 %v183_v22  ;;  %14091 = vmatpush3.msra.mxu1 %v15573_v9 }
  0x1e   :  { %14092 = vmatprep.mubr.f32.mxu1 %v124_v25  ;;  %14100 = vmatpush3.msra.mxu0 %v183_v22 }
  0x1f   :  { %14093 = vmatmul.mubr.f32.vlgmr.msra.gmra.mxu1 %v134_v27  ;;  %14101 = vmatprep.subr.mxu0 %v190_v23 }
  0x20   :  { %14106 = vmatprep.subr.mxu1 %v15558_v3  ;;  %14102 = vmatpush3.msra.mxu0 %v190_v23 }
  0x21   :  { %14103 = vmatprep.mubr.f32.mxu0 %v15579_v13  ;;  %14107 = vmatpush3.msra.mxu1 %v15558_v3 }
  0x22   :  { %14104 = vmatmul.mubr.f32.vlgmr.msra.gmra.mxu0 %v15582_v15  ;;  %14108 = vmatprep.subr.mxu1 %v15560_v4 }
  0x23   :  { %14114 = vmatprep.mubr.f32.mxu1 %v15579_v13  ;;  %14109 = vmatpush3.msra.mxu1 %v15560_v4 }
  0x24   :  { %14110 = vmatprep.subr.mxu1 %v15562_v5 }
  0x25   :  { %14111 = vmatpush3.msra.mxu1 %v15562_v5 }
  0x26   :  { %14112 = vmatprep.subr.mxu1 %v15573_v9 }
  0x27   :  { %14113 = vmatpush3.msra.mxu1 %v15573_v9 }
  0x28   :  { %14115 = vmatmul.mubr.f32.vlgmr.msra.gmra.mxu1 %v15582_v15 }
  0xd0   :  { %v14061_v42 = vpop.f32.mrf.mxu0 }
  0xd1   :  { %v139_v46 = vadd.f32 %v14061_v42, %v45_v43 }
  0xd2   :  { %v128_v44 = vpop.f32.mrf.mxu0 }
  0xd3   :  { %v129_v47 = vadd.f32 %v128_v44, %v45_v43 }
  0xd4   :  { %v14072_v45 = vpop.f32.mrf.mxu1 }
  0xd5   :  { %v236_v50 = vadd.f32 %v14072_v45, %v139_v46 }
  0xd6   :  { %v229_v48 = vpop.f32.mrf.mxu1 }
  0xd7   :  { %v230_v52 = vadd.f32 %v229_v48, %v129_v47 }
  0xd8   :  { %v14083_v49 = vpop.f32.mrf.mxu0 }
  0xd9   :  { %v323_v54 = vadd.f32 %v14083_v49, %v236_v50 }
  0xda   :  { %v315_v53 = vpop.f32.mrf.mxu0 }
  0xdb   :  { %v316_v57 = vadd.f32 %v315_v53, %v230_v52  ;;  %v15642_v53 = vld [vmem:[%s17482_s1] sm:$0xff] }
  0xdf   :  { %v14094_v51 = vpop.f32.mrf.mxu1 }
  0xe0   :  { %v408_v58 = vadd.f32 %v14094_v51, %v323_v54 }
  0xe1   :  { %v399_v55 = vpop.f32.mrf.mxu1 }
  0xe2   :  { %v14105_v56 = vpop.f32.mrf.mxu0  ;;  %v400_v59 = vadd.f32 %v399_v55, %v316_v57 }
  0xe3   :  { %v497_v61 = vadd.f32 %v14105_v56, %v408_v58  ;;  %v15647_v56 = vld [vmem:[%s17482_s1 + $0x8] sm:$0xff] }
  0xe4   :  { %v490_v60 = vpop.f32.mrf.mxu0 }
  0xe5   :  { %v491_v63 = vadd.f32 %v490_v60, %v400_v59 }
  0xe8   :  { %v14116_v62 = vpop.f32.mrf.mxu1 }
  0xe9   :  { %v15625_v0 = vadd.f32 %v14116_v62, %v497_v61 }
  0xea   :  { %v571_v1 = vpop.f32.mrf.mxu1 }
  0xeb   :  { %v15627_v2 = vadd.f32 %v571_v1, %v491_v63  ;;  %585 = vrot.lane.b32.xlu0 %v15625_v0, %s15501_s7  ;;  %v590_v9 = vsel %vm587_vm1, %v15625_v0, 0 }
  0xec   :  { %v673_v10 = vand.u32 4294901760, %v590_v9 }
  0xed   :  { %v588_v3 = vsel %vm587_vm1, %v15627_v2, 0 }
  0xee   :  { %v663_v4 = vand.u32 4294901760, %v588_v3  ;;  %v674_v11 = vsub.f32 %v590_v9, %v673_v10 }
  0xef   :  { %583 = vrot.lane.b32.xlu0 %v15627_v2, %s15501_s7 }
  0xf0   :  { %14128 = vmatprep.mubr.f32.mxu1 %v663_v4  ;;  %v664_v5 = vsub.f32 %v588_v3, %v663_v4  ;;  %v675_v15 = vand.u32 4294901760, %v674_v11 }
  0xf2   :  { %v665_v6 = vand.u32 4294901760, %v664_v5  ;;  %v676_v20 = vsub.f32 %v674_v11, %v675_v15 }
  0xf4   :  { %v666_v7 = vsub.f32 %v664_v5, %v665_v6  ;;  %v677_v24 = vand.u32 4294901760, %v676_v20 }
  0xf6   :  { %v667_v8 = vand.u32 4294901760, %v666_v7 }
  0xf8   :  { %14121 = vmatprep.mubr.f32.mxu0 %v667_v8 }
 0x15d   :  { %v586_v12 = vpop.permute.xlu0 %585 }
 0x15e   :  { %v594_v13 = vsel %vm587_vm1, %v586_v12, 0 }
 0x15f   :  { %v625_v14 = vand.u32 4294901760, %v594_v13 }
 0x161   :  { %v713_v16 = vsub.f32 %v594_v13, %v625_v14  ;;  %14117 = vmatprep.subr.mxu0 %v625_v14  ;;  %v584_v17 = vpop.permute.xlu0 %583 }
 0x162   :  { %v592_v18 = vsel %vm587_vm1, %v584_v17, 0  ;;  %14118 = vmatpush3.xpose.msra.mxu0 %v625_v14 }
 0x163   :  { %v628_v19 = vand.u32 4294901760, %v592_v18  ;;  %v714_v21 = vand.u32 4294901760, %v713_v16 }
 0x165   :  { %v720_v22 = vsub.f32 %v592_v18, %v628_v19  ;;  %14119 = vmatprep.subr.mxu0 %v628_v19  ;;  %v715_v23 = vsub.f32 %v713_v16, %v714_v21 }
 0x166   :  { %14120 = vmatpush3.xpose.msra.mxu0 %v628_v19 }
 0x167   :  { %14131 = vmatprep.subr.mxu0 %v713_v16  ;;  %v716_v25 = vand.u32 4294901760, %v715_v23  ;;  %v721_v26 = vand.u32 4294901760, %v720_v22 }
 0x169   :  { %14122 = vmatmul.mubr.f32.vlgmr.msra.gmra.mxu0 %v677_v24  ;;  %14124 = vmatprep.subr.mxu1 %v716_v25  ;;  %v722_v27 = vsub.f32 %v720_v22, %v721_v26 }
 0x16a   :  { %14125 = vmatpush3.xpose.msra.mxu1 %v716_v25  ;;  %14132 = vmatpush3.xpose.msra.mxu0 %v713_v16 }
 0x16b   :  { %14135 = vmatprep.mubr.f32.mxu0 %v664_v5  ;;  %14133 = vmatprep.subr.mxu0 %v720_v22  ;;  %v723_v28 = vand.u32 4294901760, %v722_v27 }
 0x16d   :  { %14126 = vmatprep.subr.mxu1 %v723_v28 }
 0x16e   :  { %14127 = vmatpush3.xpose.msra.mxu1 %v723_v28  ;;  %14134 = vmatpush3.xpose.msra.mxu0 %v720_v22 }
 0x16f   :  { %14138 = vmatprep.subr.mxu1 %v625_v14  ;;  %14145 = vmatprep.subr.mxu0 %v714_v21 }
 0x171   :  { %14129 = vmatmul.mubr.f32.vlgmr.msra.gmra.mxu1 %v673_v10  ;;  %14136 = vmatmul.mubr.f32.vlgmr.msra.gmra.mxu0 %v674_v11 }
 0x172   :  { %14139 = vmatpush3.xpose.msra.mxu1 %v625_v14  ;;  %14142 = vmatprep.mubr.f32.mxu1 %v665_v6 }
 0x173   :  { %14146 = vmatpush3.xpose.msra.mxu0 %v714_v21  ;;  %14149 = vmatprep.mubr.f32.mxu0 %v663_v4 }
 0x174   :  { %14140 = vmatprep.subr.mxu1 %v628_v19  ;;  %14147 = vmatprep.subr.mxu0 %v721_v26 }
 0x176   :  { %14141 = vmatpush3.xpose.msra.mxu1 %v628_v19 }
 0x177   :  { %14148 = vmatpush3.xpose.msra.mxu0 %v721_v26  ;;  %14152 = vmatprep.subr.mxu1 %v625_v14 }
 0x179   :  { %14143 = vmatmul.mubr.f32.vlgmr.msra.gmra.mxu1 %v675_v15 }
 0x17a   :  { %14150 = vmatmul.mubr.f32.vlgmr.msra.gmra.mxu0 %v673_v10  ;;  %14153 = vmatpush3.xpose.msra.mxu1 %v625_v14 }
 0x17b   :  { %14156 = vmatprep.mubr.f32.mxu1 %v663_v4  ;;  %14154 = vmatprep.subr.mxu1 %v628_v19 }
 0x17e   :  { %14155 = vmatpush3.xpose.msra.mxu1 %v628_v19 }
 0x181   :  { %14157 = vmatmul.mubr.f32.vlgmr.msra.gmra.mxu1 %v673_v10 }
 0x229   :  { %v14123_v29 = vpop.f32.mrf.mxu0 }
 0x22b   :  { %v669_v31 = vpop.f32.mrf.mxu0 }
 0x231   :  { %v14130_v30 = vpop.f32.mrf.mxu1  ;;  %v14137_v34 = vpop.f32.mrf.mxu0 }
 0x232   :  { %v767_v33 = vadd.f32 %v14130_v30, %v14123_v29 }
 0x233   :  { %v760_v32 = vpop.f32.mrf.mxu1  ;;  %v842_v38 = vpop.f32.mrf.mxu0 }
 0x234   :  { %v761_v35 = vadd.f32 %v760_v32, %v669_v31  ;;  %v850_v37 = vadd.f32 %v14137_v34, %v767_v33 }
 0x236   :  { %v843_v42 = vadd.f32 %v842_v38, %v761_v35 }
 0x239   :  { %v14144_v36 = vpop.f32.mrf.mxu1 }
 0x23a   :  { %v933_v43 = vadd.f32 %v14144_v36, %v850_v37  ;;  %v14151_v44 = vpop.f32.mrf.mxu0 }
 0x23b   :  { %v924_v41 = vpop.f32.mrf.mxu1 }
 0x23c   :  { %v925_v45 = vadd.f32 %v924_v41, %v843_v42  ;;  %v1016_v46 = vadd.f32 %v14151_v44, %v933_v43  ;;  %v1009_v47 = vpop.f32.mrf.mxu0 }
 0x23e   :  { %v1010_v49 = vadd.f32 %v1009_v47, %v925_v45 }
 0x241   :  { %v14158_v48 = vpop.f32.mrf.mxu1 }
 0x242   :  { %v1095_v50 = vadd.f32 %v14158_v48, %v1016_v46 }
 0x243   :  { %v1088_v51 = vpop.f32.mrf.mxu1 }
 0x244   :  { %v1089_v52 = vadd.f32 %v1088_v51, %v1010_v49  ;;  %v1099_v54 = vmul.f32 0.35355338, %v1095_v50 }
 0x246   :  { %v1098_v55 = vmul.f32 0.35355338, %v1089_v52  ;;  %v1101_v59 = vadd.f32 %v1099_v54, %v15647_v56 }
 0x248   :  { %v1100_v57 = vadd.f32 %v1098_v55, %v15642_v53  ;;  %v1106_v60 = vsel %vm1102_vm2, %v1101_v59, -inf }
 0x24a   :  { %v1103_v58 = vsel %vm1102_vm2, %v1100_v57, -inf }
 0x24b   :  { %1104 = vmax.xlane.f32.xlu1 %v1103_v58 }
 0x24f   :  { %1107 = vmax.xlane.f32.xlu1 %v1106_v60 }
 0x2d4   :  { %v1105_v61 = vpop.xlane.xlu1 %1104 }
 0x2d5   :  { %v1109_v62 = vsub.f32 %v1100_v57, %v1105_v61 }
 0x2d7   :  { %v1111_v63 = vmul.f32 1.442695, %v1109_v62 }
 0x2d8   :  { %v1108_v1 = vpop.xlane.xlu1 %1107 }
 0x2d9   :  { %15365 = vpow2.f32 %v1111_v63  ;;  %v1110_v3 = vsub.f32 %v1101_v59, %v1108_v1 }
 0x2db   :  { %v1113_v4 = vmul.f32 1.442695, %v1110_v3 }
 0x2dd   :  { %15367 = vpow2.f32 %v1113_v4 }
 0x2e6   :  { %v15366_v5 = vpop.eup %15365 }
 0x2e7   :  { %v1115_v6 = vsel %vm1102_vm2, %v15366_v5, 0.0 }
 0x2e8   :  { %1116 = vadd.xlane.f32.xlu0 %v1115_v6 }
 0x2ea   :  { %v15368_v7 = vpop.eup %15367 }
 0x2eb   :  { %v1118_v8 = vsel %vm1102_vm2, %v15368_v7, 0.0 }
 0x2ec   :  { %1119 = vadd.xlane.f32.xlu1 %v1118_v8 }
 0x2fd   :  { %1127 = vrot.lane.b32.xlu1 %v15625_v0, %s15502_s12 }
 0x2fe   :  { %1639 = vrot.lane.b32.xlu0 %v15627_v2, %s15503_s13 }
 0x301   :  { %1125 = vrot.lane.b32.xlu1 %v15627_v2, %s15502_s12 }
 0x305   :  { %1645 = vrot.lane.b32.xlu1 %v15625_v0, %s15504_s14 }
 0x309   :  { %1643 = vrot.lane.b32.xlu1 %v15627_v2, %s15504_s14 }
 0x30d   :  { %1641 = vrot.lane.b32.xlu1 %v15625_v0, %s15503_s13 }
 0x371   :  { %v1117_v9 = vpop.xlane.xlu0 %1116 }
 0x372   :  { %15369 = vrcp.f32 %v1117_v9 }
 0x375   :  { %v1120_v10 = vpop.xlane.xlu1 %1119  ;;  %v1640_v29 = vpop.permute.xlu0 %1639 }
 0x376   :  { %15371 = vrcp.f32 %v1120_v10  ;;  %v1647_v38 = vsel %vm587_vm1, %v1640_v29, 0 }
 0x377   :  { %v15706_v47 = vand.u32 4294901760, %v1647_v38 }
 0x379   :  { %v1128_v11 = vpop.permute.xlu1 %1127  ;;  %v1723_v55 = vsub.f32 %v1647_v38, %v15706_v47 }
 0x37a   :  { %v1166_v12 = vand.u32 4294901760, %v1128_v11 }
 0x37b   :  { %v1724_v63 = vand.u32 4294901760, %v1723_v55 }
 0x37c   :  { %v15667_v13 = vsub.f32 %v1128_v11, %v1166_v12  ;;  %14159 = vmatprep.subr.mxu0 %v1166_v12 }
 0x37d   :  { %14160 = vmatpush3.msra.mxu0 %v1166_v12  ;;  %v1126_v14 = vpop.permute.xlu1 %1125  ;;  %v1725_v4 = vsub.f32 %v1723_v55, %v1724_v63 }
 0x37e   :  { %v15669_v15 = vand.u32 4294901760, %v1126_v14  ;;  %v15672_v16 = vand.u32 4294901760, %v15667_v13 }
 0x37f   :  { %v15370_v17 = vpop.eup %15369  ;;  %v1726_v6 = vand.u32 4294901760, %v1725_v4 }
 0x380   :  { %v15675_v18 = vsub.f32 %v1126_v14, %v15669_v15  ;;  %14161 = vmatprep.subr.mxu0 %v15669_v15  ;;  %v1256_v19 = vsub.f32 %v15667_v13, %v15672_v16  ;;  %v1122_v20 = vmul.f32 %v15370_v17, %v15366_v5 }
 0x381   :  { %14162 = vmatpush3.msra.mxu0 %v15669_v15  ;;  %v1646_v21 = vpop.permute.xlu1 %1645 }
 0x382   :  { %v1653_v22 = vsel %vm587_vm1, %v1646_v21, 0  ;;  %14173 = vmatprep.subr.mxu0 %v15667_v13  ;;  %v1257_v23 = vand.u32 4294901760, %v1256_v19  ;;  %v1132_v24 = vsel %vm1102_vm2, %v1122_v20, 0  ;;  %v15685_v25 = vand.u32 4294901760, %v15675_v18 }
 0x383   :  { %v15372_v26 = vpop.eup %15371  ;;  %v15687_v27 = vand.u32 4294901760, %v1653_v22  ;;  %v15689_v28 = vand.u32 4294901760, %v1132_v24 }
 0x384   :  { %14166 = vmatprep.subr.mxu1 %v1257_v23  ;;  %v1263_v30 = vsub.f32 %v15675_v18, %v15685_v25  ;;  %v1124_v31 = vmul.f32 %v15372_v26, %v15368_v7 }
 0x385   :  { %14167 = vmatpush3.msra.mxu1 %v1257_v23  ;;  %14170 = vmatprep.mubr.f32.mxu1 %v15689_v28  ;;  %v1644_v32 = vpop.permute.xlu1 %1643  ;;  %v1205_v33 = vsub.f32 %v1132_v24, %v15689_v28  ;;  %v15696_v34 = vsub.f32 %v1653_v22, %v15687_v27 }
 0x386   :  { %v1651_v35 = vsel %vm587_vm1, %v1644_v32, 0  ;;  %v1264_v36 = vand.u32 4294901760, %v1263_v30  ;;  %v1135_v37 = vsel %vm1102_vm2, %v1124_v31, 0 }
 0x387   :  { %v15701_v41 = vand.u32 4294901760, %v1651_v35  ;;  %v1214_v42 = vand.u32 4294901760, %v1135_v37  ;;  %v1206_v43 = vand.u32 4294901760, %v1205_v33  ;;  %v15709_v48 = vand.u32 4294901760, %v15696_v34 }
 0x388   :  { %14168 = vmatprep.subr.mxu1 %v1264_v36 }
 0x389   :  { %v15704_v44 = vsub.f32 %v1651_v35, %v15701_v41  ;;  %14169 = vmatpush3.msra.mxu1 %v1264_v36  ;;  %v1215_v45 = vsub.f32 %v1135_v37, %v1214_v42  ;;  %v1207_v46 = vsub.f32 %v1205_v33, %v1206_v43  ;;  %v1642_v49 = vpop.permute.xlu1 %1641  ;;  %v1774_v58 = vsub.f32 %v15696_v34, %v15709_v48 }
 0x38a   :  { %14171 = vmatmul.mubr.f32.vlgmr.msra.gmra.mxu1 %v1214_v42  ;;  %14180 = vmatprep.subr.mxu1 %v1166_v12  ;;  %v1649_v57 = vsel %vm587_vm1, %v1642_v49, 0 }
 0x38b   :  { %14181 = vmatpush3.msra.mxu1 %v1166_v12  ;;  %14184 = vmatprep.mubr.f32.mxu1 %v1206_v43  ;;  %v1208_v50 = vand.u32 4294901760, %v1207_v46  ;;  %v1216_v51 = vand.u32 4294901760, %v1215_v45  ;;  %v15713_v52 = vand.u32 4294901760, %v15704_v44  ;;  %v1732_v61 = vand.u32 4294901760, %v1649_v57 }
 0x38c   :  { %14182 = vmatprep.subr.mxu1 %v15669_v15  ;;  %v1775_v62 = vand.u32 4294901760, %v1774_v58 }
 0x38d   :  { %14163 = vmatprep.mubr.f32.mxu0 %v1208_v50  ;;  %14183 = vmatpush3.msra.mxu1 %v15669_v15  ;;  %v1217_v54 = vsub.f32 %v1215_v45, %v1216_v51  ;;  %v1781_v60 = vsub.f32 %v15704_v44, %v15713_v52  ;;  %v1733_v3 = vsub.f32 %v1649_v57, %v1732_v61 }
 0x38e   :  { %14185 = vmatmul.mubr.f32.vlgmr.msra.gmra.mxu1 %v1216_v51  ;;  %14194 = vmatprep.subr.mxu1 %v1166_v12 }
 0x38f   :  { %14195 = vmatpush3.msra.mxu1 %v1166_v12  ;;  %14198 = vmatprep.mubr.f32.mxu1 %v15689_v28  ;;  %v1218_v59 = vand.u32 4294901760, %v1217_v54  ;;  %v1782_v1 = vand.u32 4294901760, %v1781_v60  ;;  %v1734_v5 = vand.u32 4294901760, %v1733_v3 }
 0x390   :  { %14196 = vmatprep.subr.mxu1 %v15669_v15 }
 0x391   :  { %14164 = vmatmul.mubr.f32.vlgmr.msra.gmra.mxu0 %v1218_v59  ;;  %14197 = vmatpush3.msra.mxu1 %v15669_v15  ;;  %v1735_v7 = vsub.f32 %v1733_v3, %v1734_v5 }
 0x392   :  { %14174 = vmatpush3.msra.mxu0 %v15667_v13  ;;  %14177 = vmatprep.mubr.f32.mxu0 %v1205_v33 }
 0x393   :  { %14175 = vmatprep.subr.mxu0 %v15675_v18  ;;  %14199 = vmatmul.mubr.f32.vlgmr.msra.gmra.mxu1 %v1214_v42  ;;  %v1736_v8 = vand.u32 4294901760, %v1735_v7 }
 0x394   :  { %14208 = vmatprep.subr.mxu1 %v1775_v62  ;;  %14176 = vmatpush3.msra.mxu0 %v15675_v18 }
 0x395   :  { %14209 = vmatpush3.xpose.msra.mxu1 %v1775_v62  ;;  %14212 = vmatprep.mubr.f32.mxu1 %v15706_v47 }
 0x396   :  { %14187 = vmatprep.subr.mxu0 %v15672_v16  ;;  %14210 = vmatprep.subr.mxu1 %v1782_v1 }
 0x397   :  { %14178 = vmatmul.mubr.f32.vlgmr.msra.gmra.mxu0 %v1215_v45 }
 0x398   :  { %14188 = vmatpush3.msra.mxu0 %v15672_v16  ;;  %14191 = vmatprep.mubr.f32.mxu0 %v15689_v28 }
 0x399   :  { %14189 = vmatprep.subr.mxu0 %v15685_v25  ;;  %14211 = vmatpush3.xpose.msra.mxu1 %v1782_v1 }
 0x39a   :  { %14190 = vmatpush3.msra.mxu0 %v15685_v25  ;;  %14222 = vmatprep.subr.mxu1 %v15687_v27 }
 0x39b   :  { %14201 = vmatprep.subr.mxu0 %v15687_v27  ;;  %14192 = vmatmul.mubr.f32.vlgmr.msra.gmra.mxu0 %v1214_v42 }
 0x39c   :  { %14202 = vmatpush3.xpose.msra.mxu0 %v15687_v27  ;;  %14205 = vmatprep.mubr.f32.mxu0 %v1726_v6 }
 0x39d   :  { %14203 = vmatprep.subr.mxu0 %v15701_v41  ;;  %14213 = vmatmul.mubr.f32.vlgmr.msra.gmra.mxu1 %v1732_v61 }
 0x39e   :  { %14223 = vmatpush3.xpose.msra.mxu1 %v15687_v27  ;;  %14226 = vmatprep.mubr.f32.mxu1 %v1724_v63 }
 0x39f   :  { %14224 = vmatprep.subr.mxu1 %v15701_v41 }
 0x3a0   :  { %14204 = vmatpush3.xpose.msra.mxu0 %v15701_v41 }
 0x3a1   :  { %14215 = vmatprep.subr.mxu0 %v15696_v34 }
 0x3a2   :  { %14225 = vmatpush3.xpose.msra.mxu1 %v15701_v41 }
 0x3a3   :  { %14206 = vmatmul.mubr.f32.vlgmr.msra.gmra.mxu0 %v1736_v8  ;;  %14236 = vmatprep.subr.mxu1 %v15687_v27 }
 0x3a4   :  { %14216 = vmatpush3.xpose.msra.mxu0 %v15696_v34  ;;  %14219 = vmatprep.mubr.f32.mxu0 %v1723_v55 }
 0x3a5   :  { %14217 = vmatprep.subr.mxu0 %v15704_v44  ;;  %14227 = vmatmul.mubr.f32.vlgmr.msra.gmra.mxu1 %v1734_v5 }
 0x3a6   :  { %14237 = vmatpush3.xpose.msra.mxu1 %v15687_v27  ;;  %14240 = vmatprep.mubr.f32.mxu1 %v15706_v47 }
 0x3a7   :  { %14238 = vmatprep.subr.mxu1 %v15701_v41 }
 0x3a8   :  { %14218 = vmatpush3.xpose.msra.mxu0 %v15704_v44 }
 0x3a9   :  { %14229 = vmatprep.subr.mxu0 %v15709_v48 }
 0x3aa   :  { %14239 = vmatpush3.xpose.msra.mxu1 %v15701_v41 }
 0x3ab   :  { %14220 = vmatmul.mubr.f32.vlgmr.msra.gmra.mxu0 %v1733_v3 }
 0x3ac   :  { %14230 = vmatpush3.xpose.msra.mxu0 %v15709_v48  ;;  %14233 = vmatprep.mubr.f32.mxu0 %v15706_v47 }
 0x3ad   :  { %14231 = vmatprep.subr.mxu0 %v15713_v52  ;;  %14241 = vmatmul.mubr.f32.vlgmr.msra.gmra.mxu1 %v1732_v61 }
 0x3b0   :  { %14232 = vmatpush3.xpose.msra.mxu0 %v15713_v52 }
 0x3b3   :  { %14234 = vmatmul.mubr.f32.vlgmr.msra.gmra.mxu0 %v1732_v61 }
 0x44a   :  { %v14172_v9 = vpop.f32.mrf.mxu1 }
 0x44c   :  { %v15756_v10 = vpop.f32.mrf.mxu1 }
 0x44e   :  { %v14186_v14 = vpop.f32.mrf.mxu1 }
 0x450   :  { %v15760_v17 = vpop.f32.mrf.mxu1 }
 0x451   :  { %v14165_v11 = vpop.f32.mrf.mxu0 }
 0x452   :  { %v1308_v12 = vadd.f32 %v14172_v9, %v14165_v11 }
 0x453   :  { %v15758_v13 = vpop.f32.mrf.mxu0  ;;  %v14200_v22 = vpop.f32.mrf.mxu1 }
 0x455   :  { %v15768_v25 = vpop.f32.mrf.mxu1 }
 0x457   :  { %v14179_v15 = vpop.f32.mrf.mxu0 }
 0x458   :  { %v1391_v16 = vadd.f32 %v14179_v15, %v1308_v12 }
 0x459   :  { %v15762_v18 = vpop.f32.mrf.mxu0 }
 0x45a   :  { %v1474_v19 = vadd.f32 %v14186_v14, %v1391_v16 }
 0x45b   :  { %v14193_v20 = vpop.f32.mrf.mxu0 }
 0x45c   :  { %v1557_v21 = vadd.f32 %v14193_v20, %v1474_v19 }
 0x45d   :  { %v15766_v24 = vpop.f32.mrf.mxu0  ;;  %v14214_v27 = vpop.f32.mrf.mxu1 }
 0x45e   :  { %v15764_v23 = vadd.f32 %v14200_v22, %v1557_v21 }
 0x45f   :  { %v1819_v29 = vpop.f32.mrf.mxu1 }
 0x463   :  { %v14207_v26 = vpop.f32.mrf.mxu0 }
 0x464   :  { %v1826_v31 = vadd.f32 %v14214_v27, %v14207_v26 }
 0x465   :  { %v1728_v28 = vpop.f32.mrf.mxu0  ;;  %v14228_v32 = vpop.f32.mrf.mxu1 }
 0x466   :  { %v1820_v34 = vadd.f32 %v1819_v29, %v1728_v28 }
 0x467   :  { %v1983_v37 = vpop.f32.mrf.mxu1 }
 0x46b   :  { %v14221_v30 = vpop.f32.mrf.mxu0 }
 0x46c   :  { %v1909_v35 = vadd.f32 %v14221_v30, %v1826_v31 }
 0x46d   :  { %v1901_v33 = vpop.f32.mrf.mxu0  ;;  %v14242_v41 = vpop.f32.mrf.mxu1 }
 0x46e   :  { %v1902_v36 = vadd.f32 %v1901_v33, %v1820_v34  ;;  %v1992_v38 = vadd.f32 %v14228_v32, %v1909_v35 }
 0x46f   :  { %v2147_v48 = vpop.f32.mrf.mxu1 }
 0x470   :  { %v1984_v44 = vadd.f32 %v1983_v37, %v1902_v36 }
 0x473   :  { %v14235_v42 = vpop.f32.mrf.mxu0 }
 0x474   :  { %v2075_v43 = vadd.f32 %v14235_v42, %v1992_v38 }
 0x475   :  { %v2068_v45 = vpop.f32.mrf.mxu0 }
 0x476   :  { %v2154_v46 = vadd.f32 %v14242_v41, %v2075_v43  ;;  %v2069_v47 = vadd.f32 %v2068_v45, %v1984_v44 }
 0x478   :  { %v2158_v49 = vmul.f32 0.35355338, %v2154_v46  ;;  %v2148_v50 = vadd.f32 %v2147_v48, %v2069_v47 }
 0x47a   :  { %v2157_v51 = vmul.f32 0.35355338, %v2148_v50  ;;  %v2160_v52 = vadd.f32 %v2158_v49, %v15647_v56 }
 0x47c   :  { %v2164_v54 = vsel %vm1102_vm2, %v2160_v52, -inf  ;;  %v2159_v55 = vadd.f32 %v2157_v51, %v15642_v53 }
 0x47d   :  { %2165 = vmax.xlane.f32.xlu0 %v2164_v54 }
 0x47e   :  { %v2161_v57 = vsel %vm1102_vm2, %v2159_v55, -inf }
 0x47f   :  { %2162 = vmax.xlane.f32.xlu1 %v2161_v57 }
 0x493   :  { %2183 = vrot.lane.b32.xlu0 %v15627_v2, %s15505_s15 }
 0x497   :  { %2697 = vrot.lane.b32.xlu0 %v15627_v2, %s15506_s16 }
 0x506   :  { %v2166_v58 = vpop.xlane.xlu0 %2165 }
 0x507   :  { %v2168_v59 = vsub.f32 %v2160_v52, %v2166_v58 }
 0x508   :  { %v2163_v60 = vpop.xlane.xlu1 %2162 }
 0x509   :  { %v2171_v61 = vmul.f32 1.442695, %v2168_v59  ;;  %v2167_v62 = vsub.f32 %v2159_v55, %v2163_v60 }
 0x50a   :  { %v2184_v6 = vpop.permute.xlu0 %2183 }
 0x50b   :  { %15373 = vpow2.f32 %v2171_v61  ;;  %v2169_v63 = vmul.f32 1.442695, %v2167_v62  ;;  %v15788_v8 = vand.u32 4294901760, %v2184_v6 }
 0x50d   :  { %15375 = vpow2.f32 %v2169_v63  ;;  %v15791_v11 = vsub.f32 %v2184_v6, %v15788_v8 }
 0x50e   :  { %v2698_v43 = vpop.permute.xlu0 %2697 }
 0x50f   :  { %v15796_v16 = vand.u32 4294901760, %v15791_v11  ;;  %v2705_v49 = vsel %vm587_vm1, %v2698_v43, 0 }
 0x510   :  { %v15833_v54 = vand.u32 4294901760, %v2705_v49 }
 0x511   :  { %v2321_v28 = vsub.f32 %v15791_v11, %v15796_v16 }
 0x512   :  { %v2781_v63 = vsub.f32 %v2705_v49, %v15833_v54 }
 0x513   :  { %v2322_v38 = vand.u32 4294901760, %v2321_v28 }
 0x514   :  { %v2782_v6 = vand.u32 4294901760, %v2781_v63 }
 0x518   :  { %v15374_v1 = vpop.eup %15373 }
 0x519   :  { %v2176_v3 = vsel %vm1102_vm2, %v15374_v1, 0.0 }
 0x51a   :  { %v15376_v4 = vpop.eup %15375  ;;  %2177 = vadd.xlane.f32.xlu1 %v2176_v3 }
 0x51b   :  { %v2173_v5 = vsel %vm1102_vm2, %v15376_v4, 0.0 }
 0x51e   :  { %2174 = vadd.xlane.f32.xlu1 %v2173_v5 }
 0x52f   :  { %2185 = vrot.lane.b32.xlu1 %v15625_v0, %s15505_s15 }
 0x533   :  { %2703 = vrot.lane.b32.xlu1 %v15625_v0, %s15507_s17 }
 0x537   :  { %2701 = vrot.lane.b32.xlu1 %v15627_v2, %s15507_s17 }
 0x53b   :  { %2699 = vrot.lane.b32.xlu1 %v15625_v0, %s15506_s16 }
 0x5a3   :  { %v2178_v7 = vpop.xlane.xlu1 %2177 }
 0x5a4   :  { %15377 = vrcp.f32 %v2178_v7 }
 0x5a7   :  { %v2175_v9 = vpop.xlane.xlu1 %2174 }
 0x5a8   :  { %15379 = vrcp.f32 %v2175_v9 }
 0x5ab   :  { %v2186_v12 = vpop.permute.xlu1 %2185 }
 0x5ac   :  { %v2224_v14 = vand.u32 4294901760, %v2186_v12 }
 0x5ae   :  { %v15793_v15 = vsub.f32 %v2186_v12, %v2224_v14  ;;  %14243 = vmatprep.subr.mxu0 %v2224_v14 }
 0x5af   :  { %14244 = vmatpush3.msra.mxu0 %v2224_v14  ;;  %v2704_v19 = vpop.permute.xlu1 %2703 }
 0x5b0   :  { %v2711_v20 = vsel %vm587_vm1, %v2704_v19, 0  ;;  %14245 = vmatprep.subr.mxu0 %v15788_v8  ;;  %v15801_v21 = vand.u32 4294901760, %v15793_v15 }
 0x5b1   :  { %v15378_v22 = vpop.eup %15377  ;;  %14246 = vmatpush3.msra.mxu0 %v15788_v8  ;;  %v15804_v26 = vand.u32 4294901760, %v2711_v20 }
 0x5b2   :  { %14257 = vmatprep.subr.mxu0 %v15793_v15  ;;  %v2314_v27 = vsub.f32 %v15793_v15, %v15801_v21  ;;  %v2182_v29 = vmul.f32 %v15378_v22, %v15374_v1 }
 0x5b3   :  { %v2702_v30 = vpop.permute.xlu1 %2701  ;;  %v15818_v37 = vsub.f32 %v2711_v20, %v15804_v26 }
 0x5b4   :  { %v2709_v31 = vsel %vm587_vm1, %v2702_v30, 0  ;;  %v2315_v32 = vand.u32 4294901760, %v2314_v27  ;;  %v2193_v33 = vsel %vm1102_vm2, %v2182_v29, 0 }
 0x5b5   :  { %v15380_v34 = vpop.eup %15379  ;;  %v15813_v35 = vand.u32 4294901760, %v2709_v31  ;;  %v15815_v36 = vand.u32 4294901760, %v2193_v33  ;;  %v15826_v48 = vand.u32 4294901760, %v15818_v37 }
 0x5b6   :  { %14250 = vmatprep.subr.mxu1 %v2315_v32  ;;  %v2180_v41 = vmul.f32 %v15380_v34, %v15376_v4 }
 0x5b7   :  { %14251 = vmatpush3.msra.mxu1 %v2315_v32  ;;  %v2273_v42 = vsub.f32 %v2193_v33, %v15815_v36  ;;  %v15823_v45 = vsub.f32 %v2709_v31, %v15813_v35  ;;  %v2700_v55 = vpop.permute.xlu1 %2699  ;;  %v2832_v57 = vsub.f32 %v15818_v37, %v15826_v48 }
 0x5b8   :  { %14252 = vmatprep.subr.mxu1 %v2322_v38  ;;  %v2190_v44 = vsel %vm1102_vm2, %v2180_v41, 0  ;;  %v2707_v60 = vsel %vm587_vm1, %v2700_v55, 0 }
 0x5b9   :  { %14253 = vmatpush3.msra.mxu1 %v2322_v38  ;;  %v2262_v46 = vand.u32 4294901760, %v2190_v44  ;;  %v2274_v47 = vand.u32 4294901760, %v2273_v42  ;;  %v15831_v52 = vand.u32 4294901760, %v15823_v45  ;;  %v2833_v1 = vand.u32 4294901760, %v2832_v57 }
 0x5ba   :  { %14264 = vmatprep.subr.mxu1 %v2224_v14  ;;  %v2790_v4 = vand.u32 4294901760, %v2707_v60 }
 0x5bb   :  { %14254 = vmatprep.mubr.f32.mxu1 %v2262_v46  ;;  %v2263_v50 = vsub.f32 %v2190_v44, %v2262_v46  ;;  %v2275_v58 = vsub.f32 %v2273_v42, %v2274_v47  ;;  %v2839_v62 = vsub.f32 %v15823_v45, %v15831_v52 }
 0x5bc   :  { %14255 = vmatmul.mubr.f32.vlgmr.msra.gmra.mxu1 %v15815_v36  ;;  %v2791_v7 = vsub.f32 %v2707_v60, %v2790_v4 }
 0x5bd   :  { %14265 = vmatpush3.msra.mxu1 %v2224_v14  ;;  %v2264_v51 = vand.u32 4294901760, %v2263_v50  ;;  %v2276_v3 = vand.u32 4294901760, %v2275_v58  ;;  %v2840_v5 = vand.u32 4294901760, %v2839_v62 }
 0x5be   :  { %14266 = vmatprep.subr.mxu1 %v15788_v8  ;;  %v2792_v9 = vand.u32 4294901760, %v2791_v7 }
 0x5bf   :  { %14267 = vmatpush3.msra.mxu1 %v15788_v8  ;;  %14268 = vmatprep.mubr.f32.mxu1 %v2264_v51  ;;  %v2265_v59 = vsub.f32 %v2263_v50, %v2264_v51 }
 0x5c0   :  { %14278 = vmatprep.subr.mxu1 %v2224_v14  ;;  %14269 = vmatmul.mubr.f32.vlgmr.msra.gmra.mxu1 %v2274_v47  ;;  %v2793_v12 = vsub.f32 %v2791_v7, %v2792_v9 }
 0x5c1   :  { %14279 = vmatpush3.msra.mxu1 %v2224_v14  ;;  %14282 = vmatprep.mubr.f32.mxu1 %v2262_v46  ;;  %v2266_v61 = vand.u32 4294901760, %v2265_v59 }
 0x5c2   :  { %14280 = vmatprep.subr.mxu1 %v15788_v8  ;;  %v2794_v14 = vand.u32 4294901760, %v2793_v12 }
 0x5c3   :  { %14281 = vmatpush3.msra.mxu1 %v15788_v8  ;;  %14247 = vmatprep.mubr.f32.mxu0 %v2266_v61  ;;  %v2783_v8 = vsub.f32 %v2781_v63, %v2782_v6 }
 0x5c4   :  { %14292 = vmatprep.subr.mxu1 %v2833_v1  ;;  %14248 = vmatmul.mubr.f32.vlgmr.msra.gmra.mxu0 %v2276_v3 }
 0x5c5   :  { %14258 = vmatpush3.msra.mxu0 %v15793_v15  ;;  %14283 = vmatmul.mubr.f32.vlgmr.msra.gmra.mxu1 %v15815_v36 }
 0x5c6   :  { %14293 = vmatpush3.xpose.msra.mxu1 %v2833_v1  ;;  %14259 = vmatprep.subr.mxu0 %v15791_v11 }
 0x5c7   :  { %14261 = vmatprep.mubr.f32.mxu0 %v2263_v50  ;;  %14294 = vmatprep.subr.mxu1 %v2840_v5 }
 0x5c8   :  { %14296 = vmatprep.mubr.f32.mxu1 %v15833_v54  ;;  %14260 = vmatpush3.msra.mxu0 %v15791_v11  ;;  %v2784_v11 = vand.u32 4294901760, %v2783_v8 }
 0x5c9   :  { %14271 = vmatprep.subr.mxu0 %v15801_v21  ;;  %14262 = vmatmul.mubr.f32.vlgmr.msra.gmra.mxu0 %v2273_v42 }
 0x5ca   :  { %14272 = vmatpush3.msra.mxu0 %v15801_v21  ;;  %14295 = vmatpush3.xpose.msra.mxu1 %v2840_v5 }
 0x5cb   :  { %14273 = vmatprep.subr.mxu0 %v15796_v16  ;;  %14275 = vmatprep.mubr.f32.mxu0 %v2262_v46 }
 0x5cc   :  { %14306 = vmatprep.subr.mxu1 %v15804_v26  ;;  %14274 = vmatpush3.msra.mxu0 %v15796_v16 }
 0x5cd   :  { %14285 = vmatprep.subr.mxu0 %v15804_v26  ;;  %14297 = vmatmul.mubr.f32.vlgmr.msra.gmra.mxu1 %v2790_v4 }
 0x5ce   :  { %14276 = vmatmul.mubr.f32.vlgmr.msra.gmra.mxu0 %v15815_v36  ;;  %14307 = vmatpush3.xpose.msra.mxu1 %v15804_v26 }
 0x5cf   :  { %14286 = vmatpush3.xpose.msra.mxu0 %v15804_v26  ;;  %14310 = vmatprep.mubr.f32.mxu1 %v2782_v6 }
 0x5d0   :  { %14287 = vmatprep.subr.mxu0 %v15813_v35  ;;  %14289 = vmatprep.mubr.f32.mxu0 %v2784_v11 }
 0x5d1   :  { %14308 = vmatprep.subr.mxu1 %v15813_v35 }
 0x5d2   :  { %14309 = vmatpush3.xpose.msra.mxu1 %v15813_v35 }
 0x5d3   :  { %14288 = vmatpush3.xpose.msra.mxu0 %v15813_v35  ;;  %14320 = vmatprep.subr.mxu1 %v15804_v26 }
 0x5d4   :  { %14299 = vmatprep.subr.mxu0 %v15818_v37 }
 0x5d5   :  { %14311 = vmatmul.mubr.f32.vlgmr.msra.gmra.mxu1 %v2792_v9 }
 0x5d6   :  { %14290 = vmatmul.mubr.f32.vlgmr.msra.gmra.mxu0 %v2794_v14  ;;  %14321 = vmatpush3.xpose.msra.mxu1 %v15804_v26 }
 0x5d7   :  { %14300 = vmatpush3.xpose.msra.mxu0 %v15818_v37  ;;  %14303 = vmatprep.mubr.f32.mxu0 %v2781_v63 }
 0x5d8   :  { %14324 = vmatprep.mubr.f32.mxu1 %v15833_v54  ;;  %14301 = vmatprep.subr.mxu0 %v15823_v45 }
 0x5d9   :  { %14322 = vmatprep.subr.mxu1 %v15813_v35 }
 0x5da   :  { %14323 = vmatpush3.xpose.msra.mxu1 %v15813_v35 }
 0x5db   :  { %14302 = vmatpush3.xpose.msra.mxu0 %v15823_v45 }
 0x5dc   :  { %14313 = vmatprep.subr.mxu0 %v15826_v48 }
 0x5dd   :  { %14325 = vmatmul.mubr.f32.vlgmr.msra.gmra.mxu1 %v2790_v4 }
 0x5de   :  { %14304 = vmatmul.mubr.f32.vlgmr.msra.gmra.mxu0 %v2791_v7 }
 0x5df   :  { %14314 = vmatpush3.xpose.msra.mxu0 %v15826_v48  ;;  %14317 = vmatprep.mubr.f32.mxu0 %v15833_v54 }
 0x5e0   :  { %14315 = vmatprep.subr.mxu0 %v15831_v52 }
 0x5e3   :  { %14316 = vmatpush3.xpose.msra.mxu0 %v15831_v52 }
 0x5e6   :  { %14318 = vmatmul.mubr.f32.vlgmr.msra.gmra.mxu0 %v2790_v4 }
 0x67c   :  { %v14256_v15 = vpop.f32.mrf.mxu1 }
 0x67e   :  { %v15877_v16 = vpop.f32.mrf.mxu1 }
 0x680   :  { %v14270_v22 = vpop.f32.mrf.mxu1 }
 0x682   :  { %v15883_v29 = vpop.f32.mrf.mxu1 }
 0x684   :  { %v14249_v19 = vpop.f32.mrf.mxu0 }
 0x685   :  { %v2366_v20 = vadd.f32 %v14256_v15, %v14249_v19  ;;  %v14284_v33 = vpop.f32.mrf.mxu1 }
 0x686   :  { %v15879_v21 = vpop.f32.mrf.mxu0 }
 0x687   :  { %v15889_v36 = vpop.f32.mrf.mxu1 }
 0x689   :  { %v14263_v26 = vpop.f32.mrf.mxu0 }
 0x68a   :  { %v2449_v27 = vadd.f32 %v14263_v26, %v2366_v20 }
 0x68b   :  { %v15881_v28 = vpop.f32.mrf.mxu0 }
 0x68c   :  { %v2532_v30 = vadd.f32 %v14270_v22, %v2449_v27 }
 0x68d   :  { %v14298_v38 = vpop.f32.mrf.mxu1 }
 0x68e   :  { %v14277_v31 = vpop.f32.mrf.mxu0 }
 0x68f   :  { %v2615_v32 = vadd.f32 %v14277_v31, %v2532_v30  ;;  %v2877_v42 = vpop.f32.mrf.mxu1 }
 0x690   :  { %v15887_v35 = vpop.f32.mrf.mxu0 }
 0x691   :  { %v15885_v34 = vadd.f32 %v14284_v33, %v2615_v32 }
 0x695   :  { %v14312_v45 = vpop.f32.mrf.mxu1 }
 0x696   :  { %v14291_v37 = vpop.f32.mrf.mxu0 }
 0x697   :  { %v2884_v44 = vadd.f32 %v14298_v38, %v14291_v37  ;;  %v3041_v50 = vpop.f32.mrf.mxu1 }
 0x698   :  { %v2786_v41 = vpop.f32.mrf.mxu0 }
 0x699   :  { %v2878_v47 = vadd.f32 %v2877_v42, %v2786_v41 }
 0x69d   :  { %v14326_v52 = vpop.f32.mrf.mxu1 }
 0x69e   :  { %v14305_v43 = vpop.f32.mrf.mxu0 }
 0x69f   :  { %v2967_v48 = vadd.f32 %v14305_v43, %v2884_v44  ;;  %v3205_v61 = vpop.f32.mrf.mxu1 }
 0x6a0   :  { %v2959_v46 = vpop.f32.mrf.mxu0 }
 0x6a1   :  { %v2960_v49 = vadd.f32 %v2959_v46, %v2878_v47  ;;  %v3050_v51 = vadd.f32 %v14312_v45, %v2967_v48 }
 0x6a3   :  { %v3042_v57 = vadd.f32 %v3041_v50, %v2960_v49 }
 0x6a6   :  { %v14319_v54 = vpop.f32.mrf.mxu0 }
 0x6a7   :  { %v3133_v55 = vadd.f32 %v14319_v54, %v3050_v51 }
 0x6a8   :  { %v3126_v58 = vpop.f32.mrf.mxu0 }
 0x6a9   :  { %v3212_v59 = vadd.f32 %v14326_v52, %v3133_v55  ;;  %v3127_v60 = vadd.f32 %v3126_v58, %v3042_v57 }
 0x6ab   :  { %v3216_v62 = vmul.f32 0.35355338, %v3212_v59  ;;  %v3206_v63 = vadd.f32 %v3205_v61, %v3127_v60 }
 0x6ad   :  { %v3215_v1 = vmul.f32 0.35355338, %v3206_v63  ;;  %v3218_v3 = vadd.f32 %v3216_v62, %v15647_v56 }
 0x6af   :  { %v3222_v4 = vsel %vm1102_vm2, %v3218_v3, -inf  ;;  %v3217_v5 = vadd.f32 %v3215_v1, %v15642_v53 }
 0x6b0   :  { %3223 = vmax.xlane.f32.xlu1 %v3222_v4 }
 0x6b1   :  { %v3219_v6 = vsel %vm1102_vm2, %v3217_v5, -inf }
 0x6b2   :  { %3220 = vmax.xlane.f32.xlu0 %v3219_v6 }
 0x6c1   :  { %3243 = vrot.lane.b32.xlu1 %v15625_v0, %s15508_s18 }
 0x6c5   :  { %3761 = vrot.lane.b32.xlu1 %v15625_v0, %s15509_s19 }
 0x6c9   :  { %3759 = vrot.lane.b32.xlu1 %v15627_v2, %s15509_s19 }
 0x6cd   :  { %3757 = vrot.lane.b32.xlu1 %v15625_v0, %s15510_s20 }
 0x739   :  { %v3224_v53 = vpop.xlane.xlu1 %3223 }
 0x73a   :  { %v3226_v56 = vsub.f32 %v3218_v3, %v3224_v53 }
 0x73b   :  { %v3221_v7 = vpop.xlane.xlu0 %3220 }
 0x73c   :  { %v3229_v8 = vmul.f32 1.442695, %v3226_v56  ;;  %v3225_v9 = vsub.f32 %v3217_v5, %v3221_v7 }
 0x73d   :  { %v3244_v11 = vpop.permute.xlu1 %3243 }
 0x73e   :  { %15381 = vpow2.f32 %v3229_v8  ;;  %v3227_v12 = vmul.f32 1.442695, %v3225_v9  ;;  %v15903_v14 = vand.u32 4294901760, %v3244_v11 }
 0x740   :  { %15383 = vpow2.f32 %v3227_v12  ;;  %v15906_v15 = vsub.f32 %v3244_v11, %v15903_v14  ;;  %14327 = vmatprep.subr.mxu0 %v15903_v14 }
 0x741   :  { %14328 = vmatpush3.msra.mxu0 %v15903_v14  ;;  %v3762_v37 = vpop.permute.xlu1 %3761 }
 0x742   :  { %v15911_v19 = vand.u32 4294901760, %v15906_v15  ;;  %v3769_v43 = vsel %vm587_vm1, %v3762_v37, 0 }
 0x743   :  { %v15928_v47 = vand.u32 4294901760, %v3769_v43 }
 0x744   :  { %v3372_v20 = vsub.f32 %v15906_v15, %v15911_v19 }
 0x745   :  { %v3760_v44 = vpop.permute.xlu1 %3759  ;;  %v15939_v58 = vsub.f32 %v3769_v43, %v15928_v47 }
 0x746   :  { %v3373_v22 = vand.u32 4294901760, %v3372_v20  ;;  %v3767_v48 = vsel %vm587_vm1, %v3760_v44, 0 }
 0x747   :  { %v15934_v55 = vand.u32 4294901760, %v3767_v48  ;;  %v15948_v4 = vand.u32 4294901760, %v15939_v58 }
 0x748   :  { %14334 = vmatprep.subr.mxu1 %v3373_v22 }
 0x749   :  { %14335 = vmatpush3.msra.mxu1 %v3373_v22  ;;  %v15945_v63 = vsub.f32 %v3767_v48, %v15934_v55  ;;  %v3758_v7 = vpop.permute.xlu1 %3757  ;;  %v3890_v9 = vsub.f32 %v15939_v58, %v15948_v4 }
 0x74a   :  { %v3765_v20 = vsel %vm587_vm1, %v3758_v7, 0 }
 0x74b   :  { %v15382_v26 = vpop.eup %15381  ;;  %v15954_v56 = vand.u32 4294901760, %v15945_v63 }
 0x74c   :  { %v3234_v27 = vsel %vm1102_vm2, %v15382_v26, 0.0 }
 0x74d   :  { %v15384_v30 = vpop.eup %15383  ;;  %3235 = vadd.xlane.f32.xlu0 %v3234_v27 }
 0x74e   :  { %v3231_v31 = vsel %vm1102_vm2, %v15384_v30, 0.0 }
 0x751   :  { %3232 = vadd.xlane.f32.xlu0 %v3231_v31 }
 0x767   :  { %3241 = vrot.lane.b32.xlu0 %v15627_v2, %s15508_s18 }
 0x76b   :  { %3755 = vrot.lane.b32.xlu0 %v15627_v2, %s15510_s20 }
 0x7d6   :  { %v3236_v32 = vpop.xlane.xlu0 %3235 }
 0x7d7   :  { %15385 = vrcp.f32 %v3236_v32  ;;  %v3848_v32 = vand.u32 4294901760, %v3765_v20 }
 0x7d9   :  { %v3849_v37 = vsub.f32 %v3765_v20, %v3848_v32 }
 0x7da   :  { %v3233_v33 = vpop.xlane.xlu0 %3232 }
 0x7db   :  { %15387 = vrcp.f32 %v3233_v33 }
 0x7de   :  { %v3242_v38 = vpop.permute.xlu0 %3241 }
 0x7df   :  { %v3285_v41 = vand.u32 4294901760, %v3242_v38 }
 0x7e1   :  { %v15921_v42 = vsub.f32 %v3242_v38, %v3285_v41  ;;  %14329 = vmatprep.subr.mxu0 %v3285_v41  ;;  %v3850_v38 = vand.u32 4294901760, %v3849_v37 }
 0x7e2   :  { %14330 = vmatpush3.msra.mxu0 %v3285_v41  ;;  %v3756_v61 = vpop.permute.xlu0 %3755 }
 0x7e3   :  { %14341 = vmatprep.subr.mxu0 %v15906_v15  ;;  %v15926_v45 = vand.u32 4294901760, %v15921_v42  ;;  %v3763_v5 = vsel %vm587_vm1, %v3756_v61, 0 }
 0x7e4   :  { %v15386_v46 = vpop.eup %15385  ;;  %v15956_v8 = vand.u32 4294901760, %v3763_v5 }
 0x7e5   :  { %v3379_v49 = vsub.f32 %v15921_v42, %v15926_v45  ;;  %v3240_v50 = vmul.f32 %v15386_v46, %v15382_v26  ;;  %v3897_v26 = vsub.f32 %v15945_v63, %v15954_v56 }
 0x7e6   :  { %v3839_v27 = vsub.f32 %v3763_v5, %v15956_v8 }
 0x7e7   :  { %v3380_v51 = vand.u32 4294901760, %v3379_v49  ;;  %v3251_v52 = vsel %vm1102_vm2, %v3240_v50, 0 }
 0x7e8   :  { %v15388_v54 = vpop.eup %15387  ;;  %v15936_v57 = vand.u32 4294901760, %v3251_v52  ;;  %v3840_v33 = vand.u32 4294901760, %v3839_v27 }
 0x7e9   :  { %14336 = vmatprep.subr.mxu1 %v3380_v51  ;;  %v3238_v59 = vmul.f32 %v15388_v54, %v15384_v30  ;;  %v3891_v30 = vand.u32 4294901760, %v3890_v9 }
 0x7ea   :  { %14337 = vmatpush3.msra.mxu1 %v3380_v51  ;;  %v3331_v60 = vsub.f32 %v3251_v52, %v15936_v57 }
 0x7eb   :  { %14348 = vmatprep.subr.mxu1 %v15903_v14  ;;  %v3248_v62 = vsel %vm1102_vm2, %v3238_v59, 0 }
 0x7ec   :  { %v3320_v1 = vand.u32 4294901760, %v3248_v62  ;;  %v3332_v3 = vand.u32 4294901760, %v3331_v60 }
 0x7ee   :  { %14338 = vmatprep.mubr.f32.mxu1 %v3320_v1  ;;  %v3321_v6 = vsub.f32 %v3248_v62, %v3320_v1  ;;  %v3333_v11 = vsub.f32 %v3331_v60, %v3332_v3 }
 0x7ef   :  { %14339 = vmatmul.mubr.f32.vlgmr.msra.gmra.mxu1 %v15936_v57 }
 0x7f0   :  { %14349 = vmatpush3.msra.mxu1 %v15903_v14  ;;  %v3322_v53 = vand.u32 4294901760, %v3321_v6  ;;  %v3334_v31 = vand.u32 4294901760, %v3333_v11 }
 0x7f1   :  { %14350 = vmatprep.subr.mxu1 %v3285_v41 }
 0x7f2   :  { %14351 = vmatpush3.msra.mxu1 %v3285_v41  ;;  %14352 = vmatprep.mubr.f32.mxu1 %v3322_v53  ;;  %v3323_v12 = vsub.f32 %v3321_v6, %v3322_v53 }
 0x7f3   :  { %14362 = vmatprep.subr.mxu1 %v15903_v14  ;;  %14353 = vmatmul.mubr.f32.vlgmr.msra.gmra.mxu1 %v3332_v3 }
 0x7f4   :  { %14363 = vmatpush3.msra.mxu1 %v15903_v14  ;;  %14366 = vmatprep.mubr.f32.mxu1 %v3320_v1  ;;  %v3324_v22 = vand.u32 4294901760, %v3323_v12  ;;  %v3898_v14 = vand.u32 4294901760, %v3897_v26 }
 0x7f5   :  { %14364 = vmatprep.subr.mxu1 %v3285_v41 }
 0x7f6   :  { %14365 = vmatpush3.msra.mxu1 %v3285_v41  ;;  %14331 = vmatprep.mubr.f32.mxu0 %v3324_v22 }
 0x7f7   :  { %14376 = vmatprep.subr.mxu1 %v3891_v30  ;;  %14332 = vmatmul.mubr.f32.vlgmr.msra.gmra.mxu0 %v3334_v31 }
 0x7f8   :  { %14342 = vmatpush3.msra.mxu0 %v15906_v15  ;;  %14367 = vmatmul.mubr.f32.vlgmr.msra.gmra.mxu1 %v15936_v57  ;;  %v3841_v15 = vsub.f32 %v3839_v27, %v3840_v33 }
 0x7f9   :  { %14377 = vmatpush3.xpose.msra.mxu1 %v3891_v30  ;;  %14343 = vmatprep.subr.mxu0 %v15921_v42 }
 0x7fa   :  { %14345 = vmatprep.mubr.f32.mxu0 %v3321_v6  ;;  %14378 = vmatprep.subr.mxu1 %v3898_v14  ;;  %v3842_v41 = vand.u32 4294901760, %v3841_v15  ;;  %v15461_v15 = vld [vmem:[%s17482_s1 + $0x8] sm:$0xff] }
 0x7fb   :  { %14380 = vmatprep.mubr.f32.mxu1 %v15956_v8  ;;  %14344 = vmatpush3.msra.mxu0 %v15921_v42 }
 0x7fc   :  { %14355 = vmatprep.subr.mxu0 %v15911_v19  ;;  %14346 = vmatmul.mubr.f32.vlgmr.msra.gmra.mxu0 %v3331_v60 }
 0x7fd   :  { %14356 = vmatpush3.msra.mxu0 %v15911_v19  ;;  %14379 = vmatpush3.xpose.msra.mxu1 %v3898_v14  ;;  %v3851_v19 = vsub.f32 %v3849_v37, %v3850_v38 }
 0x7fe   :  { %14357 = vmatprep.subr.mxu0 %v15926_v45  ;;  %14359 = vmatprep.mubr.f32.mxu0 %v3320_v1 }
 0x7ff   :  { %14390 = vmatprep.subr.mxu1 %v15928_v47  ;;  %14358 = vmatpush3.msra.mxu0 %v15926_v45  ;;  %v3852_v42 = vand.u32 4294901760, %v3851_v19  ;;  %v15462_v19 = vld [vmem:[%s17482_s1] sm:$0xff] }
 0x800   :  { %14369 = vmatprep.subr.mxu0 %v15928_v47  ;;  %14381 = vmatmul.mubr.f32.vlgmr.msra.gmra.mxu1 %v3848_v32 }
 0x801   :  { %14360 = vmatmul.mubr.f32.vlgmr.msra.gmra.mxu0 %v15936_v57  ;;  %14391 = vmatpush3.xpose.msra.mxu1 %v15928_v47 }
 0x802   :  { %14370 = vmatpush3.xpose.msra.mxu0 %v15928_v47  ;;  %14394 = vmatprep.mubr.f32.mxu1 %v3840_v33 }
 0x803   :  { %14371 = vmatprep.subr.mxu0 %v15934_v55  ;;  %14373 = vmatprep.mubr.f32.mxu0 %v3842_v41 }
 0x804   :  { %14392 = vmatprep.subr.mxu1 %v15934_v55 }
 0x805   :  { %14393 = vmatpush3.xpose.msra.mxu1 %v15934_v55 }
 0x806   :  { %14372 = vmatpush3.xpose.msra.mxu0 %v15934_v55  ;;  %14404 = vmatprep.subr.mxu1 %v15928_v47 }
 0x807   :  { %14383 = vmatprep.subr.mxu0 %v15939_v58 }
 0x808   :  { %14395 = vmatmul.mubr.f32.vlgmr.msra.gmra.mxu1 %v3850_v38 }
 0x809   :  { %14374 = vmatmul.mubr.f32.vlgmr.msra.gmra.mxu0 %v3852_v42  ;;  %14405 = vmatpush3.xpose.msra.mxu1 %v15928_v47 }
 0x80a   :  { %14384 = vmatpush3.xpose.msra.mxu0 %v15939_v58  ;;  %14387 = vmatprep.mubr.f32.mxu0 %v3839_v27 }
 0x80b   :  { %14408 = vmatprep.mubr.f32.mxu1 %v15956_v8  ;;  %14385 = vmatprep.subr.mxu0 %v15945_v63 }
 0x80c   :  { %14406 = vmatprep.subr.mxu1 %v15934_v55 }
 0x80d   :  { %14407 = vmatpush3.xpose.msra.mxu1 %v15934_v55 }
 0x80e   :  { %14386 = vmatpush3.xpose.msra.mxu0 %v15945_v63 }
 0x80f   :  { %14397 = vmatprep.subr.mxu0 %v15948_v4 }
 0x810   :  { %14409 = vmatmul.mubr.f32.vlgmr.msra.gmra.mxu1 %v3848_v32 }
 0x811   :  { %14388 = vmatmul.mubr.f32.vlgmr.msra.gmra.mxu0 %v3849_v37 }
 0x812   :  { %14398 = vmatpush3.xpose.msra.mxu0 %v15948_v4  ;;  %14401 = vmatprep.mubr.f32.mxu0 %v15956_v8 }
 0x813   :  { %14399 = vmatprep.subr.mxu0 %v15954_v56 }
 0x816   :  { %14400 = vmatpush3.xpose.msra.mxu0 %v15954_v56 }
 0x819   :  { %14402 = vmatmul.mubr.f32.vlgmr.msra.gmra.mxu0 %v3848_v32 }
 0x8af   :  { %v14340_v43 = vpop.f32.mrf.mxu1 }
 0x8b1   :  { %v3417_v44 = vpop.f32.mrf.mxu1 }
 0x8b3   :  { %v14354_v46 = vpop.f32.mrf.mxu1 }
 0x8b5   :  { %v3581_v50 = vpop.f32.mrf.mxu1 }
 0x8b7   :  { %v14333_v45 = vpop.f32.mrf.mxu0 }
 0x8b8   :  { %v14368_v54 = vpop.f32.mrf.mxu1 }
 0x8b9   :  { %v3326_v47 = vpop.f32.mrf.mxu0 }
 0x8ba   :  { %v3418_v48 = vadd.f32 %v3417_v44, %v3326_v47  ;;  %v3745_v60 = vpop.f32.mrf.mxu1  ;;  %v2360_v47 = vadd.f32 %v15877_v16, %v15879_v21 }
 0x8bc   :  { %v14347_v49 = vpop.f32.mrf.mxu0 }
 0x8be   :  { %v3499_v51 = vpop.f32.mrf.mxu0 }
 0x8bf   :  { %v3500_v52 = vadd.f32 %v3499_v51, %v3418_v48  ;;  %v2442_v48 = vadd.f32 %v15881_v28, %v2360_v47  ;;  %v3424_v51 = vadd.f32 %v14340_v43, %v14333_v45 }
 0x8c0   :  { %v14382_v63 = vpop.f32.mrf.mxu1 }
 0x8c1   :  { %v14361_v55 = vpop.f32.mrf.mxu0  ;;  %v3582_v57 = vadd.f32 %v3581_v50, %v3500_v52  ;;  %v2524_v50 = vadd.f32 %v15883_v29, %v2442_v48  ;;  %v15464_v29 = vld [vmem:[%s17483_s2 + $0x8] sm:$0xff] }
 0x8c2   :  { %v3935_v3 = vpop.f32.mrf.mxu1 }
 0x8c3   :  { %v3666_v58 = vpop.f32.mrf.mxu0  ;;  %v2609_v52 = vadd.f32 %v15887_v35, %v2524_v50  ;;  %v15465_v35 = vld [vmem:[%s17483_s2] sm:$0xff] }
 0x8c4   :  { %v3667_v59 = vadd.f32 %v3666_v58, %v3582_v57  ;;  %v3507_v57 = vadd.f32 %v14347_v49, %v3424_v51  ;;  %v15463_v58 = vld [vmem:[%s17483_s2 + $0x18] sm:$0xff] }
 0x8c5   :  { %v2688_v16 = vadd.f32 %v15889_v36, %v2609_v52 }
 0x8c6   :  { %v15998_v61 = vadd.f32 %v3745_v60, %v3667_v59  ;;  %v3590_v21 = vadd.f32 %v14354_v46, %v3507_v57 }
 0x8c8   :  { %v14396_v6 = vpop.f32.mrf.mxu1  ;;  %v3673_v28 = vadd.f32 %v14361_v55, %v3590_v21 }
 0x8c9   :  { %v14375_v62 = vpop.f32.mrf.mxu0 }
 0x8ca   :  { %v3942_v5 = vadd.f32 %v14382_v63, %v14375_v62  ;;  %v4099_v9 = vpop.f32.mrf.mxu1 }
 0x8cb   :  { %v3844_v1 = vpop.f32.mrf.mxu0 }
 0x8cc   :  { %v3936_v56 = vadd.f32 %v3935_v3, %v3844_v1 }
 0x8d0   :  { %v14410_v12 = vpop.f32.mrf.mxu1 }
 0x8d1   :  { %v14389_v4 = vpop.f32.mrf.mxu0 }
 0x8d2   :  { %v4025_v7 = vadd.f32 %v14389_v4, %v3942_v5  ;;  %v4263_v32 = vpop.f32.mrf.mxu1 }
 0x8d3   :  { %v4017_v53 = vpop.f32.mrf.mxu0 }
 0x8d4   :  { %v4018_v8 = vadd.f32 %v4017_v53, %v3936_v56  ;;  %v4108_v11 = vadd.f32 %v14396_v6, %v4025_v7 }
 0x8d6   :  { %v4100_v26 = vadd.f32 %v4099_v9, %v4018_v8  ;;  %v15466_v8 = vld [vmem:[%s17483_s2 + $0x10] sm:$0xff] }
 0x8d9   :  { %v14403_v20 = vpop.f32.mrf.mxu0 }
 0x8da   :  { %v4191_v22 = vadd.f32 %v14403_v20, %v4108_v11 }
 0x8db   :  { %v4184_v27 = vpop.f32.mrf.mxu0 }
 0x8dc   :  { %v4270_v30 = vadd.f32 %v14410_v12, %v4191_v22  ;;  %v4185_v31 = vadd.f32 %v4184_v27, %v4100_v26 }
 0x8de   :  { %v4274_v14 = vmul.f32 0.35355338, %v4270_v30  ;;  %v4264_v33 = vadd.f32 %v4263_v32, %v4185_v31 }
 0x8e0   :  { %v4273_v37 = vmul.f32 0.35355338, %v4264_v33  ;;  %v4276_v38 = vadd.f32 %v15461_v15, %v4274_v14 }
 0x8e2   :  { %v4280_v41 = vsel %vm1102_vm2, %v4276_v38, -inf  ;;  %v4275_v42 = vadd.f32 %v15462_v19, %v4273_v37 }
 0x8e3   :  { %4281 = vmax.xlane.f32.xlu1 %v4280_v41 }
 0x8e4   :  { %v4277_v44 = vsel %vm1102_vm2, %v4275_v42, -inf }
 0x8e5   :  { %4278 = vmax.xlane.f32.xlu0 %v4277_v44 }
 0x8f4   :  { %4301 = vrot.lane.b32.xlu1 %v15625_v0, %s15511_s25  ;;  %v3752_v0 = vadd.f32 %v14368_v54, %v3673_v28 }
 0x8f8   :  { %4858 = vrot.lane.b32.xlu1 %v15463_v58, %s15512_s28 }
 0x8fc   :  { %4815 = vrot.lane.b32.xlu1 %v2688_v16, %s15513_s29 }
 0x900   :  { %4817 = vrot.lane.b32.xlu1 %v15885_v34, %s15513_s29 }
 0x904   :  { %4825 = vrot.lane.b32.xlu1 %v3752_v0, %s15514_s30 }
 0x908   :  { %4854 = vrot.lane.b32.xlu1 %v15464_v29, %s15512_s28 }
 0x90c   :  { %4852 = vrot.lane.b32.xlu1 %v15465_v35, %s15512_s28 }
 0x96c   :  { %v4282_v36 = vpop.xlane.xlu1 %4281 }
 0x96d   :  { %v4284_v43 = vsub.f32 %v4276_v38, %v4282_v36 }
 0x96e   :  { %v4279_v45 = vpop.xlane.xlu0 %4278 }
 0x96f   :  { %v4287_v34 = vmul.f32 1.442695, %v4284_v43  ;;  %v4283_v46 = vsub.f32 %v4275_v42, %v4279_v45 }
 0x970   :  { %v4302_v49 = vpop.permute.xlu1 %4301 }
 0x971   :  { %15389 = vpow2.f32 %v4287_v34  ;;  %v4285_v54 = vmul.f32 1.442695, %v4283_v46  ;;  %v4340_v55 = vand.u32 4294901760, %v4302_v49 }
 0x973   :  { %15391 = vpow2.f32 %v4285_v54  ;;  %v16032_v59 = vsub.f32 %v4302_v49, %v4340_v55  ;;  %14411 = vmatprep.subr.mxu0 %v4340_v55 }
 0x974   :  { %14412 = vmatpush3.msra.mxu0 %v4340_v55  ;;  %v16034_v60 = vpop.permute.xlu1 %4858 }
 0x975   :  { %v16037_v62 = vand.u32 4294901760, %v16032_v59  ;;  %v16064_v50 = vand.u32 4294901760, %v16034_v60 }
 0x977   :  { %v4430_v63 = vsub.f32 %v16032_v59, %v16037_v62  ;;  %v16074_v57 = vsub.f32 %v16034_v60, %v16064_v50 }
 0x978   :  { %v16041_v1 = vpop.permute.xlu1 %4815 }
 0x979   :  { %v4431_v3 = vand.u32 4294901760, %v4430_v63  ;;  %v16082_v28 = vand.u32 4294901760, %v16074_v57 }
 0x97b   :  { %14418 = vmatprep.subr.mxu1 %v4431_v3  ;;  %v4987_v35 = vsub.f32 %v16074_v57, %v16082_v28 }
 0x97c   :  { %14419 = vmatpush3.msra.mxu1 %v4431_v3  ;;  %v4818_v4 = vpop.permute.xlu1 %4817 }
 0x97d   :  { %v16045_v5 = vsel %vm587_vm1, %v15764_v23, %v4818_v4  ;;  %v4988_v34 = vand.u32 4294901760, %v4987_v35 }
 0x97e   :  { %v15390_v6 = vpop.eup %15389 }
 0x97f   :  { %v4292_v53 = vsel %vm1102_vm2, %v15390_v6, 0.0 }
 0x980   :  { %v15392_v56 = vpop.eup %15391  ;;  %4293 = vadd.xlane.f32.xlu0 %v4292_v53  ;;  %v16076_v58 = vpop.permute.xlu1 %4825 }
 0x981   :  { %v4289_v7 = vsel %vm1102_vm2, %v15392_v56, 0.0 }
 0x984   :  { %4290 = vadd.xlane.f32.xlu0 %v4289_v7  ;;  %v4855_v21 = vpop.permute.xlu1 %4854 }
 0x985   :  { %v16087_v29 = vand.u32 4294901760, %v4855_v21 }
 0x987   :  { %v16094_v43 = vsub.f32 %v4855_v21, %v16087_v29 }
 0x988   :  { %v4853_v45 = vpop.permute.xlu1 %4852 }
 0x989   :  { %v16098_v49 = vand.u32 4294901760, %v4853_v45  ;;  %v16101_v54 = vand.u32 4294901760, %v16094_v43 }
 0x99a   :  { %4299 = vrot.lane.b32.xlu0 %v15627_v2, %s15511_s25 }
 0x99e   :  { %4856 = vrot.lane.b32.xlu0 %v15466_v8, %s15512_s28 }
 0x9a2   :  { %4823 = vrot.lane.b32.xlu0 %v15998_v61, %s15514_s30 }
 0xa09   :  { %v4294_v23 = vpop.xlane.xlu0 %4293 }
 0xa0a   :  { %15393 = vrcp.f32 %v4294_v23 }
 0xa0d   :  { %v4291_v9 = vpop.xlane.xlu0 %4290 }
 0xa0e   :  { %15395 = vrcp.f32 %v4291_v9 }
 0xa11   :  { %v4300_v11 = vpop.permute.xlu0 %4299 }
 0xa12   :  { %v4343_v12 = vand.u32 4294901760, %v4300_v11 }
 0xa14   :  { %v4435_v20 = vsub.f32 %v4300_v11, %v4343_v12  ;;  %14413 = vmatprep.subr.mxu0 %v4343_v12 }
 0xa15   :  { %14414 = vmatpush3.msra.mxu0 %v4343_v12  ;;  %v4857_v51 = vpop.permute.xlu0 %4856 }
 0xa16   :  { %14425 = vmatprep.subr.mxu0 %v16032_v59  ;;  %v4436_v2 = vand.u32 4294901760, %v4435_v20  ;;  %v16066_v52 = vand.u32 4294901760, %v4857_v51 }
 0xa17   :  { %v15394_v22 = vpop.eup %15393 }
 0xa18   :  { %v4437_v26 = vsub.f32 %v4435_v20, %v4436_v2  ;;  %v4298_v27 = vmul.f32 %v15394_v22, %v15390_v6  ;;  %v16079_v16 = vsub.f32 %v4857_v51, %v16066_v52 }
 0xa1a   :  { %v4438_v30 = vand.u32 4294901760, %v4437_v26  ;;  %v4309_v31 = vsel %vm1102_vm2, %v4298_v27, 0  ;;  %v16085_v0 = vand.u32 4294901760, %v16079_v16 }
 0xa1b   :  { %v15396_v32 = vpop.eup %15395  ;;  %v4388_v61 = vand.u32 4294901760, %v4309_v31 }
 0xa1c   :  { %14420 = vmatprep.subr.mxu1 %v4438_v30  ;;  %v4296_v14 = vmul.f32 %v15396_v32, %v15392_v56  ;;  %v4994_v36 = vsub.f32 %v16079_v16, %v16085_v0 }
 0xa1d   :  { %14421 = vmatpush3.msra.mxu1 %v4438_v30  ;;  %v4389_v33 = vsub.f32 %v4309_v31, %v4388_v61 }
 0xa1e   :  { %14432 = vmatprep.subr.mxu1 %v4340_v55  ;;  %v4306_v37 = vsel %vm1102_vm2, %v4296_v14, 0  ;;  %v4995_v46 = vand.u32 4294901760, %v4994_v36 }
 0xa1f   :  { %v4378_v15 = vand.u32 4294901760, %v4306_v37  ;;  %v4390_v38 = vand.u32 4294901760, %v4389_v33 }
 0xa21   :  { %14422 = vmatprep.mubr.f32.mxu1 %v4378_v15  ;;  %v4379_v41 = vsub.f32 %v4306_v37, %v4378_v15  ;;  %v4391_v42 = vsub.f32 %v4389_v33, %v4390_v38 }
 0xa22   :  { %14423 = vmatmul.mubr.f32.vlgmr.msra.gmra.mxu1 %v4388_v61 }
 0xa23   :  { %14433 = vmatpush3.msra.mxu1 %v4340_v55  ;;  %v4380_v19 = vand.u32 4294901760, %v4379_v41  ;;  %v4392_v48 = vand.u32 4294901760, %v4391_v42  ;;  %v4824_v42 = vpop.permute.xlu0 %4823 }
 0xa24   :  { %14434 = vmatprep.subr.mxu1 %v4343_v12 }
 0xa25   :  { %14435 = vmatpush3.msra.mxu1 %v4343_v12  ;;  %14436 = vmatprep.mubr.f32.mxu1 %v4380_v19  ;;  %v4381_v44 = vsub.f32 %v4379_v41, %v4380_v19 }
 0xa26   :  { %14446 = vmatprep.subr.mxu1 %v4340_v55  ;;  %14437 = vmatmul.mubr.f32.vlgmr.msra.gmra.mxu1 %v4390_v38 }
 0xa27   :  { %14447 = vmatpush3.msra.mxu1 %v4340_v55  ;;  %14450 = vmatprep.mubr.f32.mxu1 %v4378_v15  ;;  %v4382_v47 = vand.u32 4294901760, %v4381_v44  ;;  %v16104_v55 = vsub.f32 %v4853_v45, %v16098_v49 }
 0xa28   :  { %14448 = vmatprep.subr.mxu1 %v4343_v12 }
 0xa29   :  { %14449 = vmatpush3.msra.mxu1 %v4343_v12  ;;  %14415 = vmatprep.mubr.f32.mxu0 %v4382_v47 }
 0xa2a   :  { %14416 = vmatmul.mubr.f32.vlgmr.msra.gmra.mxu0 %v4392_v48  ;;  %14451 = vmatmul.mubr.f32.vlgmr.msra.gmra.mxu1 %v4388_v61 }
 0xa2b   :  { %14426 = vmatpush3.msra.mxu0 %v16032_v59  ;;  %14429 = vmatprep.mubr.f32.mxu0 %v4379_v41  ;;  %v5001_v59 = vsub.f32 %v16094_v43, %v16101_v54 }
 0xa2c   :  { %14427 = vmatprep.subr.mxu0 %v4435_v20  ;;  %14464 = vmatprep.subr.mxu1 %v4988_v34 }
 0xa2d   :  { %14428 = vmatpush3.msra.mxu0 %v4435_v20  ;;  %14465 = vmatpush3.msra.mxu1 %v4988_v34  ;;  %v5002_v60 = vand.u32 4294901760, %v5001_v59 }
 0xa2e   :  { %14439 = vmatprep.subr.mxu0 %v16037_v62  ;;  %14430 = vmatmul.mubr.f32.vlgmr.msra.gmra.mxu0 %v4389_v33 }
 0xa2f   :  { %14440 = vmatpush3.msra.mxu0 %v16037_v62  ;;  %14443 = vmatprep.mubr.f32.mxu0 %v4378_v15  ;;  %v16111_v62 = vand.u32 4294901760, %v16104_v55  ;;  %v1302_v15 = vadd.f32 %v15756_v10, %v15758_v13 }
 0xa30   :  { %14441 = vmatprep.subr.mxu0 %v4436_v2  ;;  %14466 = vmatprep.subr.mxu1 %v4995_v46 }
 0xa31   :  { %14442 = vmatpush3.msra.mxu0 %v4436_v2  ;;  %14467 = vmatpush3.msra.mxu1 %v4995_v46  ;;  %v5008_v63 = vsub.f32 %v16104_v55, %v16111_v62  ;;  %v1384_v38 = vadd.f32 %v15762_v18, %v1302_v15 }
 0xa32   :  { %14444 = vmatmul.mubr.f32.vlgmr.msra.gmra.mxu0 %v4388_v61  ;;  %14453 = vmatprep.subr.mxu0 %v16064_v50 }
 0xa33   :  { %14454 = vmatpush3.msra.mxu0 %v16064_v50  ;;  %14468 = vmatprep.subr.mxu1 %v5002_v60  ;;  %v5009_v3 = vand.u32 4294901760, %v5008_v63  ;;  %v1466_v41 = vadd.f32 %v15760_v17, %v1384_v38  ;;  %v4840_v17 = vsel %vm1102_vm2, %v16045_v5, %v16076_v58 }
 0xa34   :  { %14455 = vmatprep.subr.mxu0 %v16066_v52  ;;  %14469 = vmatpush3.msra.mxu1 %v5002_v60 }
 0xa35   :  { %14456 = vmatpush3.msra.mxu0 %v16066_v52  ;;  %14470 = vmatprep.subr.mxu1 %v5009_v3  ;;  %v1551_v19 = vadd.f32 %v15766_v24, %v1466_v41 }
 0xa36   :  { %14457 = vmatprep.subr.mxu0 %v16087_v29  ;;  %14471 = vmatpush3.msra.mxu1 %v5009_v3 }
 0xa37   :  { %14458 = vmatpush3.msra.mxu0 %v16087_v29  ;;  %14486 = vmatprep.subr.mxu1 %v16064_v50  ;;  %v1630_v44 = vadd.f32 %v15768_v25, %v1551_v19 }
 0xa38   :  { %14459 = vmatprep.subr.mxu0 %v16098_v49 }
 0xa39   :  { %14460 = vmatpush3.msra.mxu0 %v16098_v49  ;;  %v4837_v47 = vsel %vm587_vm1, %v1630_v44, %v16041_v1 }
 0xa3a   :  { %14475 = vmatprep.subr.mxu0 %v16074_v57  ;;  %v4839_v48 = vsel %vm1102_vm2, %v4837_v47, %v4824_v42  ;;  %v32_v47 = vld [vmem:[%s17484_s3 + $0x18] sm:$0xff] }
 0xae2   :  { %v14424_v4 = vpop.f32.mrf.mxu1 }
 0xae4   :  { %v4475_v6 = vpop.f32.mrf.mxu1 }
 0xae6   :  { %v14438_v53 = vpop.f32.mrf.mxu1 }
 0xae8   :  { %v4639_v23 = vpop.f32.mrf.mxu1 }
 0xaea   :  { %v14417_v56 = vpop.f32.mrf.mxu0  ;;  %v14452_v22 = vpop.f32.mrf.mxu1 }
 0xaeb   :  { %v4482_v8 = vadd.f32 %v14424_v4, %v14417_v56 }
 0xaec   :  { %v4384_v7 = vpop.f32.mrf.mxu0  ;;  %v4803_v61 = vpop.f32.mrf.mxu1 }
 0xaed   :  { %v4476_v11 = vadd.f32 %v4475_v6, %v4384_v7 }
 0xaee   :  { %v14431_v9 = vpop.f32.mrf.mxu0 }
 0xaef   :  { %v4565_v12 = vadd.f32 %v14431_v9, %v4482_v8 }
 0xaf0   :  { %v4557_v20 = vpop.f32.mrf.mxu0 }
 0xaf1   :  { %v4558_v2 = vadd.f32 %v4557_v20, %v4476_v11  ;;  %v4648_v27 = vadd.f32 %v14438_v53, %v4565_v12 }
 0xaf2   :  { %v14445_v26 = vpop.f32.mrf.mxu0 }
 0xaf3   :  { %v4640_v30 = vadd.f32 %v4639_v23, %v4558_v2  ;;  %v4731_v14 = vadd.f32 %v14445_v26, %v4648_v27 }
 0xaf4   :  { %v4724_v31 = vpop.f32.mrf.mxu0 }
 0xaf5   :  { %v4725_v32 = vadd.f32 %v4724_v31, %v4640_v30  ;;  %v4810_v37 = vadd.f32 %v14452_v22, %v4731_v14  ;;  %v15468_v22 = vld [vmem:[%s17481_s0 + $0x8] sm:$0xff]  ;;  %v15469_v30 = vld [vmem:[%s17481_s0] sm:$0xff] }
 0xaf7   :  { %v4804_v33 = vadd.f32 %v4803_v61, %v4725_v32 }
 0xaf9   :  { %4831 = vrot.lane.b32.xlu0 %v4804_v33, %s15515_s22 }
 0xafd   :  { %4833 = vrot.lane.b32.xlu0 %v4810_v37, %s15515_s22 }
 0xb6b   :  { %v4832_v51 = vpop.permute.xlu0 %4831 }
 0xb6c   :  { %v4842_v21 = vsel %vm4841_vm3, %v4839_v48, %v4832_v51  ;;  %v31_v48 = vld [vmem:[%s17484_s3 + $0x10] sm:$0xff]  ;;  %v30_v51 = vld [vmem:[%s17484_s3 + $0x8] sm:$0xff] }
 0xb6d   :  { %v4865_v10 = vsel %vm46_vm0, %v4842_v21, 0  ;;  %v16197_v21 = vand.u32 4294901760, %v32_v47 }
 0xb6e   :  { %v4939_v13 = vand.u32 4294901760, %v4865_v10 }
 0xb6f   :  { %v4834_v18 = vpop.permute.xlu0 %4833 }
 0xb70   :  { %v4940_v24 = vsub.f32 %v4865_v10, %v4939_v13  ;;  %v4843_v25 = vsel %vm4841_vm3, %v4840_v17, %v4834_v18  ;;  %14472 = vmatprep.mubr.f32.mxu1 %v4939_v13  ;;  %v16199_v10 = vand.u32 4294901760, %v31_v48  ;;  %v16204_v17 = vsub.f32 %v32_v47, %v16197_v21 }
 0xb71   :  { %v4868_v35 = vsel %vm46_vm0, %v4843_v25, 0 }
 0xb72   :  { %v4949_v1 = vand.u32 4294901760, %v4868_v35  ;;  %v4941_v36 = vand.u32 4294901760, %v4940_v24  ;;  %v16207_v18 = vsub.f32 %v31_v48, %v16199_v10  ;;  %v16215_v25 = vand.u32 4294901760, %v16204_v17 }
 0xb74   :  { %v4950_v45 = vsub.f32 %v4868_v35, %v4949_v1  ;;  %14473 = vmatmul.mubr.f32.vlgmr.msra.gmra.mxu1 %v4949_v1  ;;  %v4942_v34 = vsub.f32 %v4940_v24, %v4941_v36  ;;  %v16218_v35 = vand.u32 4294901760, %v16207_v18 }
 0xb75   :  { %14487 = vmatpush3.msra.mxu1 %v16064_v50  ;;  %14494 = vmatprep.mubr.f32.mxu1 %v4941_v36  ;;  %v5566_v36 = vsub.f32 %v16204_v17, %v16215_v25 }
 0xb76   :  { %14488 = vmatprep.subr.mxu1 %v16066_v52  ;;  %v4943_v46 = vand.u32 4294901760, %v4942_v34  ;;  %v4951_v59 = vand.u32 4294901760, %v4950_v45 }
 0xb77   :  { %14489 = vmatpush3.msra.mxu1 %v16066_v52 }
 0xb78   :  { %14490 = vmatprep.subr.mxu1 %v16087_v29  ;;  %14461 = vmatprep.mubr.f32.mxu0 %v4943_v46  ;;  %v4952_v5 = vsub.f32 %v4950_v45, %v4951_v59  ;;  %v5567_v46 = vand.u32 4294901760, %v5566_v36 }
 0xb79   :  { %14491 = vmatpush3.msra.mxu1 %v16087_v29 }
 0xb7a   :  { %14492 = vmatprep.subr.mxu1 %v16098_v49  ;;  %v4953_v58 = vand.u32 4294901760, %v4952_v5  ;;  %v29_v5 = vld [vmem:[%s17484_s3] sm:$0xff] }
 0xb7b   :  { %14493 = vmatpush3.msra.mxu1 %v16098_v49 }
 0xb7c   :  { %14495 = vmatmul.mubr.f32.vlgmr.msra.gmra.mxu1 %v4951_v59  ;;  %14508 = vmatprep.subr.mxu1 %v16064_v50 }
 0xb7d   :  { %14462 = vmatmul.mubr.f32.vlgmr.msra.gmra.mxu0 %v4953_v58  ;;  %14509 = vmatpush3.msra.mxu1 %v16064_v50  ;;  %v4846_v50 = vsub.s32 1, %v15617_v39  ;;  %v16236_v58 = vand.u32 4294901760, %v29_v5 }
 0xb7e   :  { %14476 = vmatpush3.msra.mxu0 %v16074_v57  ;;  %14516 = vmatprep.mubr.f32.mxu1 %v4939_v13  ;;  %v16169_v57 = vld [vmem:[%s17485_s4] sm:$0xff] }
 0xb7f   :  { %14477 = vmatprep.subr.mxu0 %v16079_v16  ;;  %14483 = vmatprep.mubr.f32.mxu0 %v4940_v24 }
 0xb80   :  { %14510 = vmatprep.subr.mxu1 %v16066_v52  ;;  %14478 = vmatpush3.msra.mxu0 %v16079_v16  ;;  %v4847_v16 = vrot.slane %v16169_v57, %v4846_v50 }
 0xb81   :  { %14511 = vmatpush3.msra.mxu1 %v16066_v52  ;;  %14479 = vmatprep.subr.mxu0 %v16094_v43 }
 0xb82   :  { %14512 = vmatprep.subr.mxu1 %v16087_v29  ;;  %14480 = vmatpush3.msra.mxu0 %v16094_v43 }
 0xb83   :  { %14513 = vmatpush3.msra.mxu1 %v16087_v29  ;;  %14481 = vmatprep.subr.mxu0 %v16104_v55 }
 0xb84   :  { %14514 = vmatprep.subr.mxu1 %v16098_v49  ;;  %14482 = vmatpush3.msra.mxu0 %v16104_v55 }
 0xb85   :  { %14515 = vmatpush3.msra.mxu1 %v16098_v49  ;;  %14484 = vmatmul.mubr.f32.vlgmr.msra.gmra.mxu0 %v4950_v45  ;;  %v5573_v45 = vsub.f32 %v16207_v18, %v16218_v35 }
 0xb86   :  { %14497 = vmatprep.subr.mxu0 %v16082_v28  ;;  %14517 = vmatmul.mubr.f32.vlgmr.msra.gmra.mxu1 %v4949_v1 }
 0xb87   :  { %14498 = vmatpush3.msra.mxu0 %v16082_v28  ;;  %14505 = vmatprep.mubr.f32.mxu0 %v4939_v13  ;;  %v16201_v13 = vand.u32 4294901760, %v30_v51  ;;  %v5574_v59 = vand.u32 4294901760, %v5573_v45 }
 0xb88   :  { %14499 = vmatprep.subr.mxu0 %v16085_v0  ;;  %14530 = vmatprep.subr.mxu1 %v5567_v46 }
 0xb89   :  { %14500 = vmatpush3.msra.mxu0 %v16085_v0  ;;  %v16210_v24 = vsub.f32 %v30_v51, %v16201_v13  ;;  %14531 = vmatpush3.msra.mxu1 %v5567_v46 }
 0xb8a   :  { %14501 = vmatprep.subr.mxu0 %v16101_v54  ;;  %14532 = vmatprep.subr.mxu1 %v5574_v59 }
 0xb8b   :  { %14502 = vmatpush3.msra.mxu0 %v16101_v54  ;;  %14533 = vmatpush3.msra.mxu1 %v5574_v59 }
 0xb8c   :  { %14503 = vmatprep.subr.mxu0 %v16111_v62 }
 0xb8d   :  { %14504 = vmatpush3.msra.mxu0 %v16111_v62 }
 0xb8e   :  { %14506 = vmatmul.mubr.f32.vlgmr.msra.gmra.mxu0 %v4949_v1  ;;  %14519 = vmatprep.subr.mxu0 %v16197_v21  ;;  %v16221_v1 = vand.u32 4294901760, %v16210_v24 }
 0xb8f   :  { %14520 = vmatpush3.msra.mxu0 %v16197_v21 }
 0xb90   :  { %14521 = vmatprep.subr.mxu0 %v16199_v10  ;;  %v5580_v34 = vsub.f32 %v16210_v24, %v16221_v1 }
 0xb91   :  { %14522 = vmatpush3.msra.mxu0 %v16199_v10 }
 0xb92   :  { %14523 = vmatprep.subr.mxu0 %v16201_v13 }
 0xb93   :  { %14524 = vmatpush3.msra.mxu0 %v16201_v13 }
 0xb94   :  { %14525 = vmatprep.subr.mxu0 %v16236_v58 }
 0xb95   :  { %14526 = vmatpush3.msra.mxu0 %v16236_v58 }
 0xb96   :  { %14541 = vmatprep.subr.mxu0 %v16204_v17 }
 0xc34   :  { %v14474_v28 = vpop.f32.mrf.mxu1 }
 0xc36   :  { %v5046_v54 = vpop.f32.mrf.mxu1 }
 0xc3c   :  { %v14496_v60 = vpop.f32.mrf.mxu1 }
 0xc3d   :  { %v14463_v52 = vpop.f32.mrf.mxu0 }
 0xc3e   :  { %v4956_v29 = vadd.f32 %v14463_v52, %v4847_v16  ;;  %v5216_v6 = vpop.f32.mrf.mxu1  ;;  %v5581_v52 = vand.u32 4294901760, %v5580_v34  ;;  %v35_v34 = vld [vmem:[%s17484_s3 + $0x30] sm:$0xff] }
 0xc3f   :  { %v4945_v0 = vpop.f32.mrf.mxu0 }
 0xc40   :  { %v4946_v43 = vadd.f32 %v4945_v0, %v4847_v16  ;;  %v5053_v55 = vadd.f32 %v14474_v28, %v4956_v29  ;;  %v16239_v16 = vsub.f32 %v29_v5, %v16236_v58  ;;  %14534 = vmatprep.subr.mxu1 %v5581_v52 }
 0xc41   :  { %14535 = vmatpush3.msra.mxu1 %v5581_v52 }
 0xc42   :  { %v5047_v3 = vadd.f32 %v5046_v54, %v4946_v43  ;;  %v16244_v28 = vand.u32 4294901760, %v16239_v16 }
 0xc44   :  { %v5587_v0 = vsub.f32 %v16239_v16, %v16244_v28 }
 0xc45   :  { %v14485_v49 = vpop.f32.mrf.mxu0 }
 0xc46   :  { %v5140_v63 = vadd.f32 %v14485_v49, %v5053_v55  ;;  %v14518_v56 = vpop.f32.mrf.mxu1  ;;  %v5588_v29 = vand.u32 4294901760, %v5587_v0 }
 0xc47   :  { %v5132_v62 = vpop.f32.mrf.mxu0 }
 0xc48   :  { %v5133_v4 = vadd.f32 %v5132_v62, %v5047_v3  ;;  %v5225_v53 = vadd.f32 %v14496_v60, %v5140_v63  ;;  %v5388_v20 = vpop.f32.mrf.mxu1  ;;  %14536 = vmatprep.subr.mxu1 %v5588_v29  ;;  %v5429_v63 = vsub.s32 4, %v15617_v39  ;;  %v5435_v3 = vsub.s32 5, %v15617_v39 }
 0xc49   :  { %14537 = vmatpush3.msra.mxu1 %v5588_v29 }
 0xc4a   :  { %v5217_v23 = vadd.f32 %v5216_v6, %v5133_v4  ;;  %14552 = vmatprep.subr.mxu1 %v16197_v21  ;;  %v5430_v4 = vrot.slane %v16169_v57, %v5429_v63 }
 0xc4e   :  { %v14507_v7 = vpop.f32.mrf.mxu0 }
 0xc4f   :  { %v5314_v8 = vadd.f32 %v14507_v7, %v5225_v53 }
 0xc50   :  { %v5307_v9 = vpop.f32.mrf.mxu0 }
 0xc51   :  { %v5395_v11 = vadd.f32 %v14518_v56, %v5314_v8  ;;  %v5308_v12 = vadd.f32 %v5307_v9, %v5217_v23  ;;  %v5436_v56 = vrot.slane %v16169_v57, %v5435_v3 }
 0xc53   :  { %v5389_v2 = vadd.f32 %v5388_v20, %v5308_v12  ;;  %v5399_v26 = vadd.f32 %v15468_v22, %v5395_v11 }
 0xc55   :  { %v5403_v27 = vsel %vm46_vm0, %v5399_v26, 0.0  ;;  %v5398_v31 = vadd.f32 %v15469_v30, %v5389_v2 }
 0xc56   :  { %5404 = vadd.xlane.f32.xlu1 %v5403_v27 }
 0xc57   :  { %v5400_v32 = vsel %vm46_vm0, %v5398_v31, 0.0 }
 0xc58   :  { %5401 = vadd.xlane.f32.xlu0 %v5400_v32 }
 0xcdf   :  { %v5405_v61 = vpop.xlane.xlu1 %5404 }
 0xce0   :  { %v5408_v14 = vmul.f32 0.03125, %v5405_v61 }
 0xce1   :  { %v5402_v33 = vpop.xlane.xlu0 %5401 }
 0xce2   :  { %v5407_v37 = vmul.f32 0.03125, %v5402_v33  ;;  %v16182_v15 = vsub.f32 %v5399_v26, %v5408_v14 }
 0xce4   :  { %v5409_v38 = vsub.f32 %v5398_v31, %v5407_v37  ;;  %v5412_v42 = vmul.f32 %v16182_v15, %v16182_v15 }
 0xce6   :  { %v5411_v41 = vmul.f32 %v5409_v38, %v5409_v38  ;;  %v5416_v44 = vsel %vm46_vm0, %v5412_v42, 0.0 }
 0xce8   :  { %v5413_v19 = vsel %vm46_vm0, %v5411_v41, 0.0  ;;  %v39_v41 = vld [vmem:[%s17484_s3 + $0x50] sm:$0xff] }
 0xce9   :  { %5414 = vadd.xlane.f32.xlu0 %v5413_v19  ;;  %v16308_v42 = vand.u32 4294901760, %v39_v41 }
 0xceb   :  { %v16319_v48 = vsub.f32 %v39_v41, %v16308_v42 }
 0xced   :  { %5417 = vadd.xlane.f32.xlu0 %v5416_v44  ;;  %v38_v44 = vld [vmem:[%s17484_s3 + $0x48] sm:$0xff] }
 0xcee   :  { %v16321_v51 = vand.u32 4294901760, %v38_v44 }
 0xd72   :  { %v5415_v43 = vpop.xlane.xlu0 %5414 }
 0xd73   :  { %v5419_v49 = vmul.f32 0.03125, %v5415_v43 }
 0xd75   :  { %v5421_v54 = vadd.f32 1e-05, %v5419_v49 }
 0xd76   :  { %v5418_v55 = vpop.xlane.xlu0 %5417 }
 0xd77   :  { %15397 = vrsqrt.f32 %v5421_v54  ;;  %v5420_v60 = vmul.f32 0.03125, %v5418_v55  ;;  %v33_v54 = vld [vmem:[%s17484_s3 + $0x20] sm:$0xff] }
 0xd79   :  { %v5422_v62 = vadd.f32 1e-05, %v5420_v60 }
 0xd7b   :  { %15399 = vrsqrt.f32 %v5422_v62 }
 0xd84   :  { %v15398_v6 = vpop.eup %15397 }
 0xd85   :  { %v5425_v53 = vmul.f32 %v15398_v6, %v5409_v38 }
 0xd87   :  { %v5431_v7 = vmul.f32 %v5430_v4, %v5425_v53 }
 0xd88   :  { %v15400_v8 = vpop.eup %15399 }
 0xd89   :  { %v16258_v23 = vadd.f32 %v5436_v56, %v5431_v7  ;;  %v5426_v9 = vmul.f32 %v15400_v8, %v16182_v15  ;;  %v40_v15 = vld [vmem:[%s17484_s3 + $0x58] sm:$0xff] }
 0xd8a   :  { %v16300_v38 = vand.u32 4294901760, %v40_v15 }
 0xd8b   :  { %v5444_v11 = vsel %vm46_vm0, %v16258_v23, 0  ;;  %v5432_v12 = vmul.f32 %v5430_v4, %v5426_v9  ;;  %v16393_v4 = vand.u32 4294901760, %v33_v54 }
 0xd8c   :  { %v5518_v20 = vand.u32 4294901760, %v5444_v11  ;;  %v16306_v19 = vsub.f32 %v40_v15, %v16300_v38 }
 0xd8d   :  { %v16263_v2 = vadd.f32 %v5436_v56, %v5432_v12  ;;  %v16405_v7 = vsub.f32 %v33_v54, %v16393_v4 }
 0xd8e   :  { %14538 = vmatprep.mubr.f32.mxu1 %v5518_v20  ;;  %v5519_v22 = vsub.f32 %v5444_v11, %v5518_v20  ;;  %v16316_v47 = vand.u32 4294901760, %v16306_v19 }
 0xd8f   :  { %v5447_v26 = vsel %vm46_vm0, %v16263_v2, 0  ;;  %v16412_v12 = vand.u32 4294901760, %v16405_v7 }
 0xd90   :  { %v5528_v27 = vand.u32 4294901760, %v5447_v26  ;;  %v5520_v30 = vand.u32 4294901760, %v5519_v22 }
 0xd92   :  { %v5529_v31 = vsub.f32 %v5447_v26, %v5528_v27  ;;  %14539 = vmatmul.mubr.f32.vlgmr.msra.gmra.mxu1 %v5528_v27  ;;  %v5521_v32 = vsub.f32 %v5519_v22, %v5520_v30 }
 0xd93   :  { %14553 = vmatpush3.msra.mxu1 %v16197_v21  ;;  %14560 = vmatprep.mubr.f32.mxu1 %v5520_v30 }
 0xd94   :  { %14554 = vmatprep.subr.mxu1 %v16199_v10  ;;  %v5522_v61 = vand.u32 4294901760, %v5521_v32  ;;  %v5530_v14 = vand.u32 4294901760, %v5529_v31 }
 0xd95   :  { %14555 = vmatpush3.msra.mxu1 %v16199_v10 }
 0xd96   :  { %14556 = vmatprep.subr.mxu1 %v16201_v13  ;;  %14527 = vmatprep.mubr.f32.mxu0 %v5522_v61  ;;  %v5531_v33 = vsub.f32 %v5529_v31, %v5530_v14 }
 0xd97   :  { %14557 = vmatpush3.msra.mxu1 %v16201_v13 }
 0xd98   :  { %14558 = vmatprep.subr.mxu1 %v16236_v58  ;;  %v5532_v37 = vand.u32 4294901760, %v5531_v33 }
 0xd99   :  { %14559 = vmatpush3.msra.mxu1 %v16236_v58 }
 0xd9a   :  { %14561 = vmatmul.mubr.f32.vlgmr.msra.gmra.mxu1 %v5530_v14  ;;  %14574 = vmatprep.subr.mxu1 %v16197_v21 }
 0xd9b   :  { %14528 = vmatmul.mubr.f32.vlgmr.msra.gmra.mxu0 %v5532_v37  ;;  %14575 = vmatpush3.msra.mxu1 %v16197_v21  ;;  %v37_v21 = vld [vmem:[%s17484_s3 + $0x40] sm:$0xff] }
 0xd9c   :  { %14542 = vmatpush3.msra.mxu0 %v16204_v17  ;;  %14582 = vmatprep.mubr.f32.mxu1 %v5518_v20  ;;  %v16334_v17 = vsub.f32 %v38_v44, %v16321_v51 }
 0xd9d   :  { %14543 = vmatprep.subr.mxu0 %v16207_v18  ;;  %14549 = vmatprep.mubr.f32.mxu0 %v5519_v22  ;;  %v6204_v22 = vsub.f32 %v16405_v7, %v16412_v12 }
 0xd9e   :  { %14576 = vmatprep.subr.mxu1 %v16199_v10  ;;  %14544 = vmatpush3.msra.mxu0 %v16207_v18  ;;  %v16336_v18 = vand.u32 4294901760, %v37_v21 }
 0xd9f   :  { %14577 = vmatpush3.msra.mxu1 %v16199_v10  ;;  %14545 = vmatprep.subr.mxu0 %v16210_v24  ;;  %v6155_v10 = vsub.f32 %v16306_v19, %v16316_v47  ;;  %v6205_v26 = vand.u32 4294901760, %v6204_v22 }
 0xda0   :  { %14578 = vmatprep.subr.mxu1 %v16201_v13  ;;  %14546 = vmatpush3.msra.mxu0 %v16210_v24  ;;  %v36_v24 = vld [vmem:[%s17484_s3 + $0x38] sm:$0xff]  ;;  %v16349_v36 = vsub.f32 %v37_v21, %v16336_v18 }
 0xda1   :  { %14579 = vmatpush3.msra.mxu1 %v16201_v13  ;;  %14547 = vmatprep.subr.mxu0 %v16239_v16  ;;  %v16331_v13 = vand.u32 4294901760, %v16319_v48  ;;  %v16352_v45 = vand.u32 4294901760, %v36_v24 }
 0xda2   :  { %14580 = vmatprep.subr.mxu1 %v16236_v58  ;;  %14548 = vmatpush3.msra.mxu0 %v16239_v16  ;;  %v16361_v5 = vand.u32 4294901760, %v16349_v36  ;;  %v34_v16 = vld [vmem:[%s17484_s3 + $0x28] sm:$0xff] }
 0xda3   :  { %14581 = vmatpush3.msra.mxu1 %v16236_v58  ;;  %14550 = vmatmul.mubr.f32.vlgmr.msra.gmra.mxu0 %v5529_v31  ;;  %v16363_v58 = vand.u32 4294901760, %v35_v34  ;;  %v16366_v52 = vsub.f32 %v36_v24, %v16352_v45  ;;  %v16377_v43 = vand.u32 4294901760, %v34_v16 }
 0xda4   :  { %14563 = vmatprep.subr.mxu0 %v16215_v25  ;;  %14583 = vmatmul.mubr.f32.vlgmr.msra.gmra.mxu1 %v5528_v27  ;;  %v6176_v0 = vsub.f32 %v16349_v36, %v16361_v5 }
 0xda5   :  { %14564 = vmatpush3.msra.mxu0 %v16215_v25  ;;  %14571 = vmatprep.mubr.f32.mxu0 %v5518_v20  ;;  %v6156_v25 = vand.u32 4294901760, %v6155_v10  ;;  %v16375_v29 = vsub.f32 %v35_v34, %v16363_v58  ;;  %v16381_v49 = vand.u32 4294901760, %v16366_v52  ;;  %v16391_v62 = vsub.f32 %v34_v16, %v16377_v43 }
 0xda6   :  { %14565 = vmatprep.subr.mxu0 %v16218_v35  ;;  %v6177_v55 = vand.u32 4294901760, %v6176_v0 }
 0xda7   :  { %14566 = vmatpush3.msra.mxu0 %v16218_v35  ;;  %v6162_v35 = vsub.f32 %v16319_v48, %v16331_v13  ;;  %14604 = vmatprep.subr.mxu1 %v6156_v25  ;;  %v16388_v60 = vand.u32 4294901760, %v16375_v29  ;;  %v6183_v6 = vsub.f32 %v16366_v52, %v16381_v49  ;;  %v16402_v56 = vand.u32 4294901760, %v16391_v62 }
 0xda8   :  { %14567 = vmatprep.subr.mxu0 %v16221_v1  ;;  %14605 = vmatpush3.msra.mxu1 %v6156_v25 }
 0xda9   :  { %14568 = vmatpush3.msra.mxu0 %v16221_v1  ;;  %v16346_v1 = vand.u32 4294901760, %v16334_v17  ;;  %v6163_v46 = vand.u32 4294901760, %v6162_v35  ;;  %v6190_v53 = vsub.f32 %v16375_v29, %v16388_v60  ;;  %v6184_v8 = vand.u32 4294901760, %v6183_v6 }
 0xdaa   :  { %14569 = vmatprep.subr.mxu0 %v16244_v28  ;;  %v6197_v11 = vsub.f32 %v16391_v62, %v16402_v56 }
 0xdab   :  { %14570 = vmatpush3.msra.mxu0 %v16244_v28  ;;  %v6169_v59 = vsub.f32 %v16334_v17, %v16346_v1  ;;  %14606 = vmatprep.subr.mxu1 %v6163_v46  ;;  %v6191_v9 = vand.u32 4294901760, %v6190_v53 }
 0xdac   :  { %14572 = vmatmul.mubr.f32.vlgmr.msra.gmra.mxu0 %v5528_v27  ;;  %14585 = vmatprep.subr.mxu0 %v16300_v38  ;;  %v6198_v20 = vand.u32 4294901760, %v6197_v11  ;;  %v5441_v27 = vsub.s32 2, %v15617_v39 }
 0xdad   :  { %14586 = vmatpush3.msra.mxu0 %v16300_v38  ;;  %v6170_v28 = vand.u32 4294901760, %v6169_v59  ;;  %14607 = vmatpush3.msra.mxu1 %v6163_v46 }
 0xdae   :  { %14587 = vmatprep.subr.mxu0 %v16308_v42  ;;  %v5442_v31 = vrot.slane %v16169_v57, %v5441_v27 }
 0xdaf   :  { %14588 = vmatpush3.msra.mxu0 %v16308_v42  ;;  %14608 = vmatprep.subr.mxu1 %v6170_v28 }
 0xdb0   :  { %14589 = vmatprep.subr.mxu0 %v16321_v51  ;;  %14609 = vmatpush3.msra.mxu1 %v6170_v28 }
 0xdb1   :  { %14590 = vmatpush3.msra.mxu0 %v16321_v51  ;;  %14610 = vmatprep.subr.mxu1 %v6177_v55 }
 0xdb2   :  { %14591 = vmatprep.subr.mxu0 %v16336_v18  ;;  %14611 = vmatpush3.msra.mxu1 %v6177_v55 }
 0xdb3   :  { %14592 = vmatpush3.msra.mxu0 %v16336_v18  ;;  %14612 = vmatprep.subr.mxu1 %v6184_v8 }
 0xdb4   :  { %14593 = vmatprep.subr.mxu0 %v16352_v45  ;;  %14613 = vmatpush3.msra.mxu1 %v6184_v8 }
 0xdb5   :  { %14594 = vmatpush3.msra.mxu0 %v16352_v45  ;;  %14614 = vmatprep.subr.mxu1 %v6191_v9 }
 0xdb6   :  { %14595 = vmatprep.subr.mxu0 %v16363_v58  ;;  %14615 = vmatpush3.msra.mxu1 %v6191_v9 }
 0xdb7   :  { %14596 = vmatpush3.msra.mxu0 %v16363_v58  ;;  %14616 = vmatprep.subr.mxu1 %v6198_v20 }
 0xdb8   :  { %14597 = vmatprep.subr.mxu0 %v16377_v43  ;;  %14617 = vmatpush3.msra.mxu1 %v6198_v20 }
 0xdb9   :  { %14598 = vmatpush3.msra.mxu0 %v16377_v43  ;;  %14618 = vmatprep.subr.mxu1 %v6205_v26 }
 0xdba   :  { %14599 = vmatprep.subr.mxu0 %v16393_v4  ;;  %14619 = vmatpush3.msra.mxu1 %v6205_v26 }
 0xdbb   :  { %14600 = vmatpush3.msra.mxu0 %v16393_v4  ;;  %14642 = vmatprep.subr.mxu1 %v16300_v38 }
 0xdbc   :  { %14623 = vmatprep.subr.mxu0 %v16306_v19 }
 0xe52   :  { %v14540_v32 = vpop.f32.mrf.mxu1 }
 0xe54   :  { %v5625_v15 = vpop.f32.mrf.mxu1 }
 0xe5a   :  { %v14562_v44 = vpop.f32.mrf.mxu1 }
 0xe5b   :  { %v14529_v30 = vpop.f32.mrf.mxu0 }
 0xe5c   :  { %v5535_v14 = vadd.f32 %v14529_v30, %v5442_v31  ;;  %v5795_v35 = vpop.f32.mrf.mxu1 }
 0xe5d   :  { %v5524_v61 = vpop.f32.mrf.mxu0 }
 0xe5e   :  { %v5525_v33 = vadd.f32 %v5524_v61, %v5442_v31  ;;  %v5632_v41 = vadd.f32 %v14540_v32, %v5535_v14 }
 0xe60   :  { %v5626_v24 = vadd.f32 %v5625_v15, %v5525_v33 }
 0xe63   :  { %v14551_v37 = vpop.f32.mrf.mxu0 }
 0xe64   :  { %v5719_v10 = vadd.f32 %v14551_v37, %v5632_v41  ;;  %v14584_v46 = vpop.f32.mrf.mxu1 }
 0xe65   :  { %v5711_v21 = vpop.f32.mrf.mxu0 }
 0xe66   :  { %v5712_v25 = vadd.f32 %v5711_v21, %v5626_v24  ;;  %v5804_v34 = vadd.f32 %v14562_v44, %v5719_v10  ;;  %v5967_v6 = vpop.f32.mrf.mxu1 }
 0xe68   :  { %v5796_v28 = vadd.f32 %v5795_v35, %v5712_v25 }
 0xe6c   :  { %v14573_v59 = vpop.f32.mrf.mxu0 }
 0xe6d   :  { %v5893_v16 = vadd.f32 %v14573_v59, %v5804_v34 }
 0xe6e   :  { %v5886_v0 = vpop.f32.mrf.mxu0 }
 0xe6f   :  { %v5974_v54 = vadd.f32 %v14584_v46, %v5893_v16  ;;  %v5887_v55 = vadd.f32 %v5886_v0, %v5796_v28 }
 0xe71   :  { %v5980_v53 = vmul.f32 0.70710677, %v5974_v54  ;;  %v5968_v8 = vadd.f32 %v5967_v6, %v5887_v55 }
 0xe73   :  { %v5986_v9 = vand.u32 2147483647, %v5980_v53  ;;  %v5979_v11 = vmul.f32 0.70710677, %v5968_v8  ;;  %vm5982_vm4 = vcmp.ge.f32.partialorder %v5980_v53, 0.0 }
 0xe75   :  { %v5988_v20 = vmul.f32 0.3275911, %v5986_v9  ;;  %v5985_v22 = vand.u32 2147483647, %v5979_v11  ;;  %v6014_v32 = vsub.f32 0.0, %v5986_v9  ;;  %vm5981_vm5 = vcmp.ge.f32.partialorder %v5979_v11, 0.0 }
 0xe77   :  { %v5990_v26 = vadd.f32 1.0, %v5988_v20  ;;  %v5987_v30 = vmul.f32 0.3275911, %v5985_v22  ;;  %v6013_v61 = vsub.f32 0.0, %v5985_v22  ;;  %v6016_v14 = vmul.f32 %v6014_v32, %v5986_v9 }
 0xe79   :  { %15401 = vrcp.f32 %v5990_v26  ;;  %v5989_v31 = vadd.f32 1.0, %v5987_v30  ;;  %v6015_v37 = vmul.f32 %v6013_v61, %v5985_v22  ;;  %v6019_v41 = vmul.f32 1.442695, %v6016_v14 }
 0xe7b   :  { %15403 = vrcp.f32 %v5989_v31  ;;  %v6017_v24 = vmul.f32 1.442695, %v6015_v37  ;;  %v15516_v37 = vmov -1.0  }
 0xe7c   :  { %15405 = vpow2.f32 %v6019_v41 }
 0xe7d   :  { %15407 = vpow2.f32 %v6017_v24  ;;  %v5978_v24 = vmul.f32 0.5, %v5974_v54 }
 0xe86   :  { %v15402_v33 = vpop.eup %15401 }
 0xe87   :  { %v5996_v15 = vmul.f32 1.0614054, %v15402_v33 }
 0xe88   :  { %v15404_v44 = vpop.eup %15403 }
 0xe89   :  { %v5998_v21 = vadd.f32 -1.4531521, %v5996_v15  ;;  %v5995_v10 = vmul.f32 1.0614054, %v15404_v44  ;;  %v15406_v26 = vpop.eup %15405  ;;  %v5984_v15 = vsel %vm5982_vm4, 1.0, %v15516_v37 }
 0xe8a   :  { %v15408_v61 = vpop.eup %15407 }
 0xe8b   :  { %v6000_v25 = vmul.f32 %v15402_v33, %v5998_v21  ;;  %v5997_v35 = vadd.f32 -1.4531521, %v5995_v10 }
 0xe8d   :  { %v6002_v34 = vadd.f32 1.4214138, %v6000_v25  ;;  %v5999_v46 = vmul.f32 %v15404_v44, %v5997_v35  ;;  %v5983_v35 = vsel %vm5981_vm5, 1.0, %v15516_v37 }
 0xe8f   :  { %v6004_v59 = vmul.f32 %v15402_v33, %v6002_v34  ;;  %v6001_v16 = vadd.f32 1.4214138, %v5999_v46  ;;  %v5977_v46 = vmul.f32 0.5, %v5968_v8 }
 0xe91   :  { %v6006_v28 = vadd.f32 -0.28449672, %v6004_v59  ;;  %v6003_v0 = vmul.f32 %v15404_v44, %v6001_v16 }
 0xe93   :  { %v6008_v55 = vmul.f32 %v15402_v33, %v6006_v28  ;;  %v6005_v6 = vadd.f32 -0.28449672, %v6003_v0 }
 0xe95   :  { %v6010_v9 = vadd.f32 0.2548296, %v6008_v55  ;;  %v6007_v20 = vmul.f32 %v15404_v44, %v6005_v6 }
 0xe97   :  { %v6012_v22 = vmul.f32 %v15402_v33, %v6010_v9  ;;  %v6009_v30 = vadd.f32 0.2548296, %v6007_v20 }
 0xe99   :  { %v6022_v31 = vmul.f32 %v15406_v26, %v6012_v22  ;;  %v6011_v32 = vmul.f32 %v15404_v44, %v6009_v30 }
 0xe9b   :  { %v6024_v14 = vsub.f32 1.0, %v6022_v31  ;;  %v6021_v41 = vmul.f32 %v15408_v61, %v6011_v32 }
 0xe9d   :  { %v6026_v21 = vmul.f32 %v6024_v14, %v5984_v15  ;;  %v6023_v10 = vsub.f32 1.0, %v6021_v41 }
 0xe9f   :  { %v6028_v25 = vadd.f32 1.0, %v6026_v21  ;;  %v6025_v34 = vmul.f32 %v6023_v10, %v5983_v35 }
 0xea1   :  { %v6030_v33 = vmul.f32 %v6028_v25, %v5978_v24  ;;  %v6027_v53 = vadd.f32 1.0, %v6025_v34 }
 0xea3   :  { %v6040_v44 = vsel %vm6035_vm6, %v6030_v33, 0  ;;  %v6029_v59 = vmul.f32 %v6027_v53, %v5977_v46  ;;  %v13317_v33 = vld [vmem:[%s17483_s2 + $0x38] sm:$0xff]  ;;  %v13316_v46 = vld [vmem:[%s17483_s2 + $0x30] sm:$0xff]  ;;  %v13315_v53 = vld [vmem:[%s17483_s2 + $0x28] sm:$0xff] }
 0xea4   :  { %v16426_v16 = vand.u32 4294901760, %v6040_v44 }
 0xea5   :  { %v6037_v28 = vsel %vm6035_vm6, %v6029_v59, 0  ;;  %v16524_v59 = vand.u32 4294901760, %v13316_v46 }
 0xea6   :  { %v6126_v11 = vsub.f32 %v6040_v44, %v16426_v16  ;;  %v6115_v0 = vand.u32 4294901760, %v6037_v28  ;;  %v16522_v44 = vand.u32 4294901760, %v13317_v33 }
 0xea8   :  { %v6127_v55 = vand.u32 4294901760, %v6126_v11  ;;  %14620 = vmatprep.mubr.f32.mxu1 %v6115_v0  ;;  %v6116_v54 = vsub.f32 %v6037_v28, %v6115_v0  ;;  %v13314_v28 = vld [vmem:[%s17483_s2 + $0x20] sm:$0xff] }
 0xea9   :  { %14621 = vmatmul.mubr.f32.vlgmr.msra.gmra.mxu1 %v16426_v16 }
 0xeaa   :  { %14643 = vmatpush3.msra.mxu1 %v16300_v38  ;;  %v6117_v6 = vand.u32 4294901760, %v6116_v54  ;;  %v6128_v8 = vsub.f32 %v6126_v11, %v6127_v55 }
 0xeab   :  { %14644 = vmatprep.subr.mxu1 %v16308_v42 }
 0xeac   :  { %14645 = vmatpush3.msra.mxu1 %v16308_v42  ;;  %14658 = vmatprep.mubr.f32.mxu1 %v6117_v6  ;;  %v6118_v9 = vsub.f32 %v6116_v54, %v6117_v6  ;;  %v6129_v22 = vand.u32 4294901760, %v6128_v8 }
 0xead   :  { %14646 = vmatprep.subr.mxu1 %v16321_v51 }
 0xeae   :  { %14647 = vmatpush3.msra.mxu1 %v16321_v51  ;;  %v6119_v20 = vand.u32 4294901760, %v6118_v9 }
 0xeaf   :  { %14648 = vmatprep.subr.mxu1 %v16336_v18 }
 0xeb0   :  { %14649 = vmatpush3.msra.mxu1 %v16336_v18  ;;  %14601 = vmatprep.mubr.f32.mxu0 %v6119_v20 }
 0xeb1   :  { %14650 = vmatprep.subr.mxu1 %v16352_v45  ;;  %14602 = vmatmul.mubr.f32.vlgmr.msra.gmra.mxu0 %v6129_v22 }
 0xeb2   :  { %14624 = vmatpush3.msra.mxu0 %v16306_v19  ;;  %14651 = vmatpush3.msra.mxu1 %v16352_v45 }
 0xeb3   :  { %14625 = vmatprep.subr.mxu0 %v16319_v48  ;;  %14639 = vmatprep.mubr.f32.mxu0 %v6116_v54 }
 0xeb4   :  { %14652 = vmatprep.subr.mxu1 %v16363_v58  ;;  %14626 = vmatpush3.msra.mxu0 %v16319_v48 }
 0xeb5   :  { %14653 = vmatpush3.msra.mxu1 %v16363_v58  ;;  %14627 = vmatprep.subr.mxu0 %v16334_v17 }
 0xeb6   :  { %14654 = vmatprep.subr.mxu1 %v16377_v43  ;;  %14628 = vmatpush3.msra.mxu0 %v16334_v17 }
 0xeb7   :  { %14655 = vmatpush3.msra.mxu1 %v16377_v43  ;;  %14629 = vmatprep.subr.mxu0 %v16349_v36 }
 0xeb8   :  { %14656 = vmatprep.subr.mxu1 %v16393_v4  ;;  %14630 = vmatpush3.msra.mxu0 %v16349_v36 }
 0xeb9   :  { %14657 = vmatpush3.msra.mxu1 %v16393_v4  ;;  %14631 = vmatprep.subr.mxu0 %v16366_v52 }
 0xeba   :  { %14659 = vmatmul.mubr.f32.vlgmr.msra.gmra.mxu1 %v6127_v55  ;;  %14680 = vmatprep.subr.mxu1 %v16300_v38  ;;  %v16537_v55 = vsub.f32 %v13316_v46, %v16524_v59 }
 0xebb   :  { %14632 = vmatpush3.msra.mxu0 %v16366_v52  ;;  %14681 = vmatpush3.msra.mxu1 %v16300_v38  ;;  %v6033_v38 = vsub.s32 3, %v15617_v39 }
 0xebc   :  { %14696 = vmatprep.mubr.f32.mxu1 %v6115_v0  ;;  %14633 = vmatprep.subr.mxu0 %v16375_v29  ;;  %v16551_v9 = vand.u32 4294901760, %v16537_v55 }
 0xebd   :  { %14682 = vmatprep.subr.mxu1 %v16308_v42  ;;  %14634 = vmatpush3.msra.mxu0 %v16375_v29 }
 0xebe   :  { %14683 = vmatpush3.msra.mxu1 %v16308_v42  ;;  %14635 = vmatprep.subr.mxu0 %v16391_v62  ;;  %v6034_v42 = vrot.slane %v16169_v57, %v6033_v38 }
 0xebf   :  { %14684 = vmatprep.subr.mxu1 %v16321_v51  ;;  %14636 = vmatpush3.msra.mxu0 %v16391_v62 }
 0xec0   :  { %14685 = vmatpush3.msra.mxu1 %v16321_v51  ;;  %14637 = vmatprep.subr.mxu0 %v16405_v7 }
 0xec1   :  { %14686 = vmatprep.subr.mxu1 %v16336_v18  ;;  %14638 = vmatpush3.msra.mxu0 %v16405_v7 }
 0xec2   :  { %14687 = vmatpush3.msra.mxu1 %v16336_v18  ;;  %14640 = vmatmul.mubr.f32.vlgmr.msra.gmra.mxu0 %v6126_v11  ;;  %v16531_v11 = vand.u32 4294901760, %v13314_v28 }
 0xec3   :  { %14661 = vmatprep.subr.mxu0 %v16316_v47  ;;  %14688 = vmatprep.subr.mxu1 %v16352_v45 }
 0xec4   :  { %14662 = vmatpush3.msra.mxu0 %v16316_v47  ;;  %14677 = vmatprep.mubr.f32.mxu0 %v6115_v0  ;;  %v16534_v0 = vsub.f32 %v13317_v33, %v16522_v44  ;;  %v16544_v6 = vsub.f32 %v13314_v28, %v16531_v11 }
 0xec5   :  { %14689 = vmatpush3.msra.mxu1 %v16352_v45  ;;  %14663 = vmatprep.subr.mxu0 %v16331_v13 }
 0xec6   :  { %14690 = vmatprep.subr.mxu1 %v16363_v58  ;;  %14664 = vmatpush3.msra.mxu0 %v16331_v13  ;;  %v16548_v8 = vand.u32 4294901760, %v16534_v0  ;;  %v16558_v22 = vand.u32 4294901760, %v16544_v6 }
 0xec7   :  { %14691 = vmatpush3.msra.mxu1 %v16363_v58  ;;  %14665 = vmatprep.subr.mxu0 %v16346_v1 }
 0xec8   :  { %14692 = vmatprep.subr.mxu1 %v16377_v43  ;;  %14666 = vmatpush3.msra.mxu0 %v16346_v1 }
 0xec9   :  { %14693 = vmatpush3.msra.mxu1 %v16377_v43  ;;  %14667 = vmatprep.subr.mxu0 %v16361_v5 }
 0xeca   :  { %14694 = vmatprep.subr.mxu1 %v16393_v4  ;;  %14668 = vmatpush3.msra.mxu0 %v16361_v5 }
 0xecb   :  { %14695 = vmatpush3.msra.mxu1 %v16393_v4  ;;  %14669 = vmatprep.subr.mxu0 %v16381_v49 }
 0xecc   :  { %14697 = vmatmul.mubr.f32.vlgmr.msra.gmra.mxu1 %v16426_v16  ;;  %14670 = vmatpush3.msra.mxu0 %v16381_v49 }
 0xecd   :  { %14671 = vmatprep.subr.mxu0 %v16388_v60 }
 0xece   :  { %14672 = vmatpush3.msra.mxu0 %v16388_v60 }
 0xecf   :  { %14673 = vmatprep.subr.mxu0 %v16402_v56 }
 0xed0   :  { %14674 = vmatpush3.msra.mxu0 %v16402_v56 }
 0xed1   :  { %14675 = vmatprep.subr.mxu0 %v16412_v12 }
 0xed2   :  { %14676 = vmatpush3.msra.mxu0 %v16412_v12 }
 0xed3   :  { %14678 = vmatmul.mubr.f32.vlgmr.msra.gmra.mxu0 %v16426_v16  ;;  %v16526_v16 = vand.u32 4294901760, %v13315_v53  ;;  %14699 = vmatprep.subr.mxu0 %v16522_v44 }
 0xed4   :  { %14700 = vmatpush3.msra.mxu0 %v16522_v44 }
 0xed5   :  { %v16540_v54 = vsub.f32 %v13315_v53, %v16526_v16  ;;  %14701 = vmatprep.subr.mxu0 %v16524_v59 }
 0xed6   :  { %14702 = vmatpush3.msra.mxu0 %v16524_v59 }
 0xed7   :  { %v16554_v20 = vand.u32 4294901760, %v16540_v54  ;;  %14703 = vmatprep.subr.mxu0 %v16526_v16 }
 0xed8   :  { %14704 = vmatpush3.msra.mxu0 %v16526_v16 }
 0xed9   :  { %14705 = vmatprep.subr.mxu0 %v16531_v11 }
 0xeda   :  { %14706 = vmatpush3.msra.mxu0 %v16531_v11 }
 0xedb   :  { %14721 = vmatprep.subr.mxu0 %v16534_v0 }
 0xf69   :  { %v14622_v47 = vpop.f32.mrf.mxu1 }
 0xf6b   :  { %v6242_v18 = vpop.f32.mrf.mxu1 }
 0xf71   :  { %v14603_v19 = vpop.f32.mrf.mxu0 }
 0xf72   :  { %v6132_v51 = vadd.f32 %v14603_v19, %v6034_v42  ;;  %v6809_v19 = vsub.f32 %v16534_v0, %v16548_v8 }
 0xf73   :  { %v6121_v48 = vpop.f32.mrf.mxu0 }
 0xf74   :  { %v6122_v17 = vadd.f32 %v6121_v48, %v6034_v42  ;;  %v6249_v1 = vadd.f32 %v14622_v47, %v6132_v51  ;;  %v6816_v42 = vsub.f32 %v16537_v55, %v16551_v9  ;;  %v6823_v47 = vsub.f32 %v16540_v54, %v16554_v20 }
 0xf75   :  { %v6810_v48 = vand.u32 4294901760, %v6809_v19 }
 0xf76   :  { %v6243_v58 = vadd.f32 %v6242_v18, %v6122_v17  ;;  %v6817_v51 = vand.u32 4294901760, %v6816_v42  ;;  %v6824_v17 = vand.u32 4294901760, %v6823_v47 }
 0xf77   :  { %14710 = vmatprep.subr.mxu1 %v6810_v48 }
 0xf78   :  { %14711 = vmatpush3.msra.mxu1 %v6810_v48 }
 0xf79   :  { %14712 = vmatprep.subr.mxu1 %v6817_v51 }
 0xf7a   :  { %v14660_v36 = vpop.f32.mrf.mxu1  ;;  %14713 = vmatpush3.msra.mxu1 %v6817_v51 }
 0xf7b   :  { %14714 = vmatprep.subr.mxu1 %v6824_v17 }
 0xf7c   :  { %v6424_v29 = vpop.f32.mrf.mxu1  ;;  %14715 = vmatpush3.msra.mxu1 %v6824_v17 }
 0xf82   :  { %v14641_v13 = vpop.f32.mrf.mxu0 }
 0xf83   :  { %v6344_v5 = vadd.f32 %v14641_v13, %v6249_v1  ;;  %v6830_v13 = vsub.f32 %v16544_v6, %v16558_v22 }
 0xf84   :  { %v6336_v45 = vpop.f32.mrf.mxu0 }
 0xf85   :  { %v6337_v52 = vadd.f32 %v6336_v45, %v6243_v58  ;;  %v6433_v43 = vadd.f32 %v14660_v36, %v6344_v5  ;;  %v6831_v18 = vand.u32 4294901760, %v6830_v13 }
 0xf87   :  { %v6425_v4 = vadd.f32 %v6424_v29, %v6337_v52  ;;  %14716 = vmatprep.subr.mxu1 %v6831_v18  ;;  %v6652_v29 = vsub.s32 6, %v15617_v39 }
 0xf88   :  { %14717 = vmatpush3.msra.mxu1 %v6831_v18 }
 0xf89   :  { %14732 = vmatprep.subr.mxu1 %v16522_v44 }
 0xf8c   :  { %v14698_v49 = vpop.f32.mrf.mxu1 }
 0xf8e   :  { %v6612_v26 = vpop.f32.mrf.mxu1 }
 0xf93   :  { %v14679_v60 = vpop.f32.mrf.mxu0 }
 0xf94   :  { %v6534_v62 = vadd.f32 %v14679_v60, %v6433_v43  ;;  %v6658_v43 = vsub.s32 7, %v15617_v39 }
 0xf95   :  { %v6527_v56 = vpop.f32.mrf.mxu0 }
 0xf96   :  { %v6619_v7 = vadd.f32 %v14698_v49, %v6534_v62  ;;  %v6528_v12 = vadd.f32 %v6527_v56, %v6425_v4  ;;  %v6653_v49 = vrot.slane %v16169_v57, %v6652_v29  ;;  %v6659_v62 = vrot.slane %v16169_v57, %v6658_v43 }
 0xf98   :  { %v6613_v30 = vadd.f32 %v6612_v26, %v6528_v12  ;;  %v6623_v31 = vadd.f32 %v6619_v7, %v16263_v2 }
 0xf9a   :  { %v6627_v32 = vsel %vm46_vm0, %v6623_v31, 0.0  ;;  %v6622_v61 = vadd.f32 %v6613_v30, %v16258_v23 }
 0xf9b   :  { %6628 = vadd.xlane.f32.xlu0 %v6627_v32 }
 0xf9c   :  { %v6624_v14 = vsel %vm46_vm0, %v6622_v61, 0.0 }
 0xf9d   :  { %6625 = vadd.xlane.f32.xlu1 %v6624_v14 }
0x1024   :  { %v6629_v15 = vpop.xlane.xlu0 %6628 }
0x1025   :  { %v6631_v41 = vmul.f32 0.03125, %v6629_v15 }
0x1026   :  { %v6626_v21 = vpop.xlane.xlu1 %6625 }
0x1027   :  { %v16503_v10 = vsub.f32 %v6623_v31, %v6631_v41  ;;  %v6630_v24 = vmul.f32 0.03125, %v6626_v21 }
0x1029   :  { %v16505_v25 = vsub.f32 %v6622_v61, %v6630_v24  ;;  %v6635_v35 = vmul.f32 %v16503_v10, %v16503_v10 }
0x102b   :  { %v6639_v2 = vsel %vm46_vm0, %v6635_v35, 0.0  ;;  %v6634_v23 = vmul.f32 %v16505_v25, %v16505_v25 }
0x102c   :  { %6640 = vadd.xlane.f32.xlu0 %v6639_v2 }
0x102d   :  { %v6636_v34 = vsel %vm46_vm0, %v6634_v23, 0.0  ;;  %v13330_v23 = vld [vmem:[%s17485_s4 + $0x8] sm:$0xff] }
0x102e   :  { %6637 = vadd.xlane.f32.xlu1 %v6636_v34  ;;  %v6685_v33 = vrot.slane %v13330_v23, %v44_v40 }
0x10b5   :  { %v6641_v1 = vpop.xlane.xlu0 %6640 }
0x10b6   :  { %v6643_v36 = vmul.f32 0.03125, %v6641_v1 }
0x10b7   :  { %v6638_v45 = vpop.xlane.xlu1 %6637 }
0x10b8   :  { %v6645_v5 = vadd.f32 1e-05, %v6643_v36  ;;  %v6642_v58 = vmul.f32 0.03125, %v6638_v45 }
0x10ba   :  { %15409 = vrsqrt.f32 %v6645_v5  ;;  %v6644_v52 = vadd.f32 1e-05, %v6642_v58 }
0x10bc   :  { %15411 = vrsqrt.f32 %v6644_v52 }
0x10c7   :  { %v15410_v60 = vpop.eup %15409 }
0x10c8   :  { %v6649_v4 = vmul.f32 %v15410_v60, %v16503_v10 }
0x10c9   :  { %v15412_v56 = vpop.eup %15411 }
0x10ca   :  { %v6648_v7 = vmul.f32 %v15412_v56, %v16505_v25  ;;  %v6655_v12 = vmul.f32 %v6653_v49, %v6649_v4 }
0x10cc   :  { %v6654_v26 = vmul.f32 %v6653_v49, %v6648_v7  ;;  %v16585_v30 = vadd.f32 %v6659_v62, %v6655_v12 }
0x10ce   :  { %v16587_v31 = vadd.f32 %v6659_v62, %v6654_v26  ;;  %v6690_v32 = vsel %vm46_vm0, %v16585_v30, 0 }
0x10cf   :  { %v6771_v61 = vand.u32 4294901760, %v6690_v32 }
0x10d0   :  { %v6687_v14 = vsel %vm46_vm0, %v16587_v31, 0 }
0x10d1   :  { %v6761_v15 = vand.u32 4294901760, %v6687_v14  ;;  %v6772_v57 = vsub.f32 %v6690_v32, %v6771_v61 }
0x10d3   :  { %14718 = vmatprep.mubr.f32.mxu1 %v6761_v15  ;;  %v6762_v41 = vsub.f32 %v6687_v14, %v6761_v15  ;;  %v6773_v21 = vand.u32 4294901760, %v6772_v57 }
0x10d4   :  { %14719 = vmatmul.mubr.f32.vlgmr.msra.gmra.mxu1 %v6771_v61 }
0x10d5   :  { %14733 = vmatpush3.msra.mxu1 %v16522_v44  ;;  %v6763_v10 = vand.u32 4294901760, %v6762_v41  ;;  %v6774_v25 = vsub.f32 %v6772_v57, %v6773_v21 }
0x10d6   :  { %14734 = vmatprep.subr.mxu1 %v16524_v59 }
0x10d7   :  { %14735 = vmatpush3.msra.mxu1 %v16524_v59  ;;  %14740 = vmatprep.mubr.f32.mxu1 %v6763_v10  ;;  %v6764_v24 = vsub.f32 %v6762_v41, %v6763_v10  ;;  %v6775_v2 = vand.u32 4294901760, %v6774_v25 }
0x10d8   :  { %14736 = vmatprep.subr.mxu1 %v16526_v16 }
0x10d9   :  { %14737 = vmatpush3.msra.mxu1 %v16526_v16  ;;  %v6765_v35 = vand.u32 4294901760, %v6764_v24 }
0x10da   :  { %14738 = vmatprep.subr.mxu1 %v16531_v11 }
0x10db   :  { %14739 = vmatpush3.msra.mxu1 %v16531_v11  ;;  %14707 = vmatprep.mubr.f32.mxu0 %v6765_v35 }
0x10dc   :  { %14741 = vmatmul.mubr.f32.vlgmr.msra.gmra.mxu1 %v6773_v21  ;;  %14754 = vmatprep.subr.mxu1 %v16522_v44 }
0x10dd   :  { %14708 = vmatmul.mubr.f32.vlgmr.msra.gmra.mxu0 %v6775_v2  ;;  %14755 = vmatpush3.msra.mxu1 %v16522_v44 }
0x10de   :  { %14722 = vmatpush3.msra.mxu0 %v16534_v0  ;;  %14762 = vmatprep.mubr.f32.mxu1 %v6761_v15 }
0x10df   :  { %14723 = vmatprep.subr.mxu0 %v16537_v55  ;;  %14729 = vmatprep.mubr.f32.mxu0 %v6762_v41 }
0x10e0   :  { %14756 = vmatprep.subr.mxu1 %v16524_v59  ;;  %14724 = vmatpush3.msra.mxu0 %v16537_v55 }
0x10e1   :  { %14757 = vmatpush3.msra.mxu1 %v16524_v59  ;;  %14725 = vmatprep.subr.mxu0 %v16540_v54 }
0x10e2   :  { %14758 = vmatprep.subr.mxu1 %v16526_v16  ;;  %14726 = vmatpush3.msra.mxu0 %v16540_v54 }
0x10e3   :  { %14759 = vmatpush3.msra.mxu1 %v16526_v16  ;;  %14727 = vmatprep.subr.mxu0 %v16544_v6 }
0x10e4   :  { %14760 = vmatprep.subr.mxu1 %v16531_v11  ;;  %14728 = vmatpush3.msra.mxu0 %v16544_v6 }
0x10e5   :  { %14761 = vmatpush3.msra.mxu1 %v16531_v11  ;;  %14730 = vmatmul.mubr.f32.vlgmr.msra.gmra.mxu0 %v6772_v57 }
0x10e6   :  { %14743 = vmatprep.subr.mxu0 %v16548_v8  ;;  %14763 = vmatmul.mubr.f32.vlgmr.msra.gmra.mxu1 %v6771_v61 }
0x10e7   :  { %14744 = vmatpush3.msra.mxu0 %v16548_v8  ;;  %14751 = vmatprep.mubr.f32.mxu0 %v6761_v15 }
0x10e8   :  { %14745 = vmatprep.subr.mxu0 %v16551_v9 }
0x10e9   :  { %14746 = vmatpush3.msra.mxu0 %v16551_v9 }
0x10ea   :  { %14747 = vmatprep.subr.mxu0 %v16554_v20 }
0x10eb   :  { %14748 = vmatpush3.msra.mxu0 %v16554_v20 }
0x10ec   :  { %14749 = vmatprep.subr.mxu0 %v16558_v22 }
0x10ed   :  { %14750 = vmatpush3.msra.mxu0 %v16558_v22 }
0x10ee   :  { %14752 = vmatmul.mubr.f32.vlgmr.msra.gmra.mxu0 %v6771_v61 }
0x1194   :  { %v14720_v46 = vpop.f32.mrf.mxu1 }
0x1196   :  { %v6868_v28 = vpop.f32.mrf.mxu1 }
0x119c   :  { %v14742_v0 = vpop.f32.mrf.mxu1 }
0x119d   :  { %v14709_v34 = vpop.f32.mrf.mxu0 }
0x119e   :  { %v6778_v44 = vadd.f32 %v14709_v34, %v6685_v33  ;;  %v7038_v9 = vpop.f32.mrf.mxu1 }
0x119f   :  { %v6767_v53 = vpop.f32.mrf.mxu0 }
0x11a0   :  { %v6768_v59 = vadd.f32 %v6767_v53, %v6685_v33  ;;  %v6875_v11 = vadd.f32 %v14720_v46, %v6778_v44 }
0x11a2   :  { %v6869_v6 = vadd.f32 %v6868_v28, %v6768_v59 }
0x11a5   :  { %v14731_v16 = vpop.f32.mrf.mxu0 }
0x11a6   :  { %v6962_v54 = vadd.f32 %v14731_v16, %v6875_v11  ;;  %v14764_v22 = vpop.f32.mrf.mxu1 }
0x11a7   :  { %v6954_v55 = vpop.f32.mrf.mxu0 }
0x11a8   :  { %v6955_v8 = vadd.f32 %v6954_v55, %v6869_v6  ;;  %v7047_v20 = vadd.f32 %v14742_v0, %v6962_v54  ;;  %v7210_v13 = vpop.f32.mrf.mxu1 }
0x11aa   :  { %v7039_v47 = vadd.f32 %v7038_v9, %v6955_v8 }
0x11ae   :  { %v14753_v19 = vpop.f32.mrf.mxu0 }
0x11af   :  { %v7136_v42 = vadd.f32 %v14753_v19, %v7047_v20 }
0x11b0   :  { %v7129_v48 = vpop.f32.mrf.mxu0 }
0x11b1   :  { %v16628_v40 = vadd.f32 %v14764_v22, %v7136_v42  ;;  %v7130_v51 = vadd.f32 %v7129_v48, %v7039_v47 }
0x11b3   :  { %v16630_v17 = vadd.f32 %v7210_v13, %v7130_v51  ;;  %7224 = vrot.lane.b32.xlu1 %v16628_v40, %s15501_s7  ;;  %v7228_v52 = vsel %vm587_vm1, %v16628_v40, 0  ;;  %v16645_v13 = vld [vmem:[%s17482_s1 + $0x8] sm:$0xff] }
0x11b4   :  { %v7311_v49 = vand.u32 4294901760, %v7228_v52 }
0x11b5   :  { %7222 = vrot.lane.b32.xlu0 %v16630_v17, %s15501_s7  ;;  %v7226_v18 = vsel %vm587_vm1, %v16630_v17, 0 }
0x11b6   :  { %v7301_v1 = vand.u32 4294901760, %v7226_v18  ;;  %v7312_v60 = vsub.f32 %v7228_v52, %v7311_v49 }
0x11b8   :  { %14776 = vmatprep.mubr.f32.mxu1 %v7301_v1  ;;  %v7302_v36 = vsub.f32 %v7226_v18, %v7301_v1  ;;  %v7313_v12 = vand.u32 4294901760, %v7312_v60 }
0x11ba   :  { %v7303_v45 = vand.u32 4294901760, %v7302_v36  ;;  %v7314_v15 = vsub.f32 %v7312_v60, %v7313_v12 }
0x11bc   :  { %v7304_v5 = vsub.f32 %v7302_v36, %v7303_v45  ;;  %v7315_v10 = vand.u32 4294901760, %v7314_v15 }
0x11be   :  { %v7305_v58 = vand.u32 4294901760, %v7304_v5 }
0x11c0   :  { %14769 = vmatprep.mubr.f32.mxu0 %v7305_v58 }
0x1225   :  { %v7225_v62 = vpop.permute.xlu1 %7224 }
0x1226   :  { %v7232_v4 = vsel %vm587_vm1, %v7225_v62, 0 }
0x1227   :  { %v7263_v56 = vand.u32 4294901760, %v7232_v4  ;;  %v7223_v7 = vpop.permute.xlu0 %7222 }
0x1228   :  { %v7230_v26 = vsel %vm587_vm1, %v7223_v7, 0 }
0x1229   :  { %v7351_v32 = vsub.f32 %v7232_v4, %v7263_v56  ;;  %v7266_v61 = vand.u32 4294901760, %v7230_v26  ;;  %14765 = vmatprep.subr.mxu0 %v7263_v56 }
0x122a   :  { %14766 = vmatpush3.xpose.msra.mxu0 %v7263_v56 }
0x122b   :  { %v7358_v14 = vsub.f32 %v7230_v26, %v7266_v61  ;;  %14767 = vmatprep.subr.mxu0 %v7266_v61  ;;  %v7352_v57 = vand.u32 4294901760, %v7351_v32 }
0x122d   :  { %v7353_v41 = vsub.f32 %v7351_v32, %v7352_v57  ;;  %v7359_v21 = vand.u32 4294901760, %v7358_v14 }
0x122e   :  { %14768 = vmatpush3.xpose.msra.mxu0 %v7266_v61 }
0x122f   :  { %14779 = vmatprep.subr.mxu0 %v7351_v32  ;;  %v7354_v24 = vand.u32 4294901760, %v7353_v41  ;;  %v7360_v25 = vsub.f32 %v7358_v14, %v7359_v21 }
0x1231   :  { %14770 = vmatmul.mubr.f32.vlgmr.msra.gmra.mxu0 %v7315_v10  ;;  %14772 = vmatprep.subr.mxu1 %v7354_v24  ;;  %v7361_v35 = vand.u32 4294901760, %v7360_v25 }
0x1232   :  { %14773 = vmatpush3.xpose.msra.mxu1 %v7354_v24  ;;  %14780 = vmatpush3.xpose.msra.mxu0 %v7351_v32 }
0x1233   :  { %14783 = vmatprep.mubr.f32.mxu0 %v7302_v36  ;;  %14774 = vmatprep.subr.mxu1 %v7361_v35  ;;  %v16652_v36 = vld [vmem:[%s17482_s1] sm:$0xff] }
0x1234   :  { %14781 = vmatprep.subr.mxu0 %v7358_v14 }
0x1236   :  { %14775 = vmatpush3.xpose.msra.mxu1 %v7361_v35  ;;  %14782 = vmatpush3.xpose.msra.mxu0 %v7358_v14 }
0x1237   :  { %14786 = vmatprep.subr.mxu1 %v7263_v56  ;;  %14793 = vmatprep.subr.mxu0 %v7352_v57 }
0x1239   :  { %14777 = vmatmul.mubr.f32.vlgmr.msra.gmra.mxu1 %v7311_v49  ;;  %14784 = vmatmul.mubr.f32.vlgmr.msra.gmra.mxu0 %v7312_v60 }
0x123a   :  { %14787 = vmatpush3.xpose.msra.mxu1 %v7263_v56  ;;  %14790 = vmatprep.mubr.f32.mxu1 %v7303_v45 }
0x123b   :  { %14794 = vmatpush3.xpose.msra.mxu0 %v7352_v57  ;;  %14797 = vmatprep.mubr.f32.mxu0 %v7301_v1 }
0x123c   :  { %14788 = vmatprep.subr.mxu1 %v7266_v61  ;;  %14795 = vmatprep.subr.mxu0 %v7359_v21 }
0x123e   :  { %14789 = vmatpush3.xpose.msra.mxu1 %v7266_v61 }
0x123f   :  { %14796 = vmatpush3.xpose.msra.mxu0 %v7359_v21  ;;  %14800 = vmatprep.subr.mxu1 %v7263_v56 }
0x1241   :  { %14791 = vmatmul.mubr.f32.vlgmr.msra.gmra.mxu1 %v7313_v12 }
0x1242   :  { %14798 = vmatmul.mubr.f32.vlgmr.msra.gmra.mxu0 %v7311_v49  ;;  %14801 = vmatpush3.xpose.msra.mxu1 %v7263_v56 }
0x1243   :  { %14804 = vmatprep.mubr.f32.mxu1 %v7301_v1  ;;  %14802 = vmatprep.subr.mxu1 %v7266_v61 }
0x1246   :  { %14803 = vmatpush3.xpose.msra.mxu1 %v7266_v61 }
0x1249   :  { %14805 = vmatmul.mubr.f32.vlgmr.msra.gmra.mxu1 %v7311_v49 }
0x12f1   :  { %v14771_v2 = vpop.f32.mrf.mxu0 }
0x12f3   :  { %v7307_v34 = vpop.f32.mrf.mxu0 }
0x12f9   :  { %v14778_v23 = vpop.f32.mrf.mxu1  ;;  %v14785_v53 = vpop.f32.mrf.mxu0 }
0x12fa   :  { %v7405_v46 = vadd.f32 %v14778_v23, %v14771_v2 }
0x12fb   :  { %v7398_v33 = vpop.f32.mrf.mxu1  ;;  %v7480_v28 = vpop.f32.mrf.mxu0 }
0x12fc   :  { %v7399_v44 = vadd.f32 %v7398_v33, %v7307_v34  ;;  %v7488_v16 = vadd.f32 %v14785_v53, %v7405_v46 }
0x12fe   :  { %v7481_v0 = vadd.f32 %v7480_v28, %v7399_v44 }
0x1301   :  { %v14792_v59 = vpop.f32.mrf.mxu1 }
0x1302   :  { %v7571_v55 = vadd.f32 %v14792_v59, %v7488_v16  ;;  %v14799_v54 = vpop.f32.mrf.mxu0 }
0x1303   :  { %v7562_v11 = vpop.f32.mrf.mxu1 }
0x1304   :  { %v7563_v6 = vadd.f32 %v7562_v11, %v7481_v0  ;;  %v7654_v8 = vadd.f32 %v14799_v54, %v7571_v55  ;;  %v7647_v9 = vpop.f32.mrf.mxu0 }
0x1306   :  { %v7648_v22 = vadd.f32 %v7647_v9, %v7563_v6 }
0x1309   :  { %v14806_v20 = vpop.f32.mrf.mxu1 }
0x130a   :  { %v7733_v19 = vadd.f32 %v14806_v20, %v7654_v8 }
0x130b   :  { %v7726_v42 = vpop.f32.mrf.mxu1 }
0x130c   :  { %v7737_v47 = vmul.f32 0.35355338, %v7733_v19  ;;  %v7727_v48 = vadd.f32 %v7726_v42, %v7648_v22 }
0x130e   :  { %v7736_v51 = vmul.f32 0.35355338, %v7727_v48  ;;  %v7739_v18 = vadd.f32 %v16645_v13, %v7737_v47 }
0x1310   :  { %v7743_v1 = vsel %vm1102_vm2, %v7739_v18, -inf  ;;  %v7738_v45 = vadd.f32 %v16652_v36, %v7736_v51 }
0x1311   :  { %7744 = vmax.xlane.f32.xlu0 %v7743_v1 }
0x1312   :  { %v7740_v5 = vsel %vm1102_vm2, %v7738_v45, -inf }
0x1313   :  { %7741 = vmax.xlane.f32.xlu1 %v7740_v5 }
0x139a   :  { %v7745_v58 = vpop.xlane.xlu0 %7744 }
0x139b   :  { %v7747_v52 = vsub.f32 %v7739_v18, %v7745_v58 }
0x139c   :  { %v7742_v49 = vpop.xlane.xlu1 %7741 }
0x139d   :  { %v7750_v60 = vmul.f32 1.442695, %v7747_v52  ;;  %v7746_v62 = vsub.f32 %v7738_v45, %v7742_v49 }
0x139f   :  { %15413 = vpow2.f32 %v7750_v60  ;;  %v7748_v4 = vmul.f32 1.442695, %v7746_v62 }
0x13a1   :  { %15415 = vpow2.f32 %v7748_v4 }
0x13ac   :  { %v15414_v56 = vpop.eup %15413 }
0x13ad   :  { %v7755_v7 = vsel %vm1102_vm2, %v15414_v56, 0.0 }
0x13ae   :  { %v15416_v12 = vpop.eup %15415  ;;  %7756 = vadd.xlane.f32.xlu0 %v7755_v7 }
0x13af   :  { %v7752_v26 = vsel %vm1102_vm2, %v15416_v12, 0.0 }
0x13b0   :  { %7753 = vadd.xlane.f32.xlu1 %v7752_v26 }
0x13c1   :  { %7764 = vrot.lane.b32.xlu1 %v16628_v40, %s15502_s12 }
0x13c4   :  { %7762 = vrot.lane.b32.xlu0 %v16630_v17, %s15502_s12 }
0x13c5   :  { %8282 = vrot.lane.b32.xlu1 %v16628_v40, %s15504_s14 }
0x13c8   :  { %8276 = vrot.lane.b32.xlu0 %v16630_v17, %s15503_s13 }
0x13c9   :  { %8280 = vrot.lane.b32.xlu1 %v16630_v17, %s15504_s14 }
0x13cd   :  { %8278 = vrot.lane.b32.xlu1 %v16628_v40, %s15503_s13 }
0x1437   :  { %v7757_v32 = vpop.xlane.xlu0 %7756 }
0x1438   :  { %15417 = vrcp.f32 %v7757_v32 }
0x1439   :  { %v7754_v61 = vpop.xlane.xlu1 %7753 }
0x143a   :  { %15419 = vrcp.f32 %v7754_v61 }
0x143b   :  { %v7763_v14 = vpop.permute.xlu0 %7762 }
0x143c   :  { %v16670_v15 = vand.u32 4294901760, %v7763_v14 }
0x143d   :  { %v7765_v57 = vpop.permute.xlu1 %7764 }
0x143e   :  { %v16673_v41 = vsub.f32 %v7763_v14, %v16670_v15  ;;  %v7803_v21 = vand.u32 4294901760, %v7765_v57 }
0x143f   :  { %v8277_v9 = vpop.permute.xlu0 %8276 }
0x1440   :  { %v16675_v10 = vsub.f32 %v7765_v57, %v7803_v21  ;;  %14807 = vmatprep.subr.mxu0 %v7803_v21  ;;  %v16678_v24 = vand.u32 4294901760, %v16673_v41  ;;  %v8284_v48 = vsel %vm587_vm1, %v8277_v9, 0 }
0x1441   :  { %14808 = vmatpush3.msra.mxu0 %v7803_v21  ;;  %v8283_v25 = vpop.permute.xlu1 %8282  ;;  %v16715_v5 = vand.u32 4294901760, %v8284_v48 }
0x1442   :  { %v8290_v35 = vsel %vm587_vm1, %v8283_v25, 0  ;;  %14809 = vmatprep.subr.mxu0 %v16670_v15  ;;  %v16683_v2 = vand.u32 4294901760, %v16675_v10  ;;  %v7900_v33 = vsub.f32 %v16673_v41, %v16678_v24 }
0x1443   :  { %14810 = vmatpush3.msra.mxu0 %v16670_v15  ;;  %v16686_v23 = vand.u32 4294901760, %v8290_v35  ;;  %v8360_v7 = vsub.f32 %v8284_v48, %v16715_v5 }
0x1444   :  { %14821 = vmatprep.subr.mxu0 %v16675_v10  ;;  %v7893_v34 = vsub.f32 %v16675_v10, %v16683_v2  ;;  %v7901_v55 = vand.u32 4294901760, %v7900_v33 }
0x1445   :  { %v15418_v46 = vpop.eup %15417  ;;  %v8281_v53 = vpop.permute.xlu1 %8280  ;;  %v16697_v0 = vsub.f32 %v8290_v35, %v16686_v23  ;;  %v8361_v14 = vand.u32 4294901760, %v8360_v7 }
0x1446   :  { %v8288_v44 = vsel %vm587_vm1, %v8281_v53, 0  ;;  %v7894_v59 = vand.u32 4294901760, %v7893_v34  ;;  %v7761_v16 = vmul.f32 %v15418_v46, %v15414_v56 }
0x1447   :  { %v15420_v28 = vpop.eup %15419  ;;  %v16694_v11 = vand.u32 4294901760, %v8288_v44  ;;  %v16708_v47 = vand.u32 4294901760, %v16697_v0 }
0x1448   :  { %14814 = vmatprep.subr.mxu1 %v7894_v59  ;;  %v7759_v54 = vmul.f32 %v15420_v28, %v15416_v12  ;;  %v7772_v6 = vsel %vm1102_vm2, %v7761_v16, 0 }
0x1449   :  { %14815 = vmatpush3.msra.mxu1 %v7894_v59  ;;  %v16700_v8 = vand.u32 4294901760, %v7772_v6  ;;  %v16704_v22 = vsub.f32 %v8288_v44, %v16694_v11  ;;  %v8279_v58 = vpop.permute.xlu1 %8278  ;;  %v8411_v52 = vsub.f32 %v16697_v0, %v16708_v47 }
0x144a   :  { %14816 = vmatprep.subr.mxu1 %v7901_v55  ;;  %v7769_v20 = vsel %vm1102_vm2, %v7759_v54, 0  ;;  %v8286_v62 = vsel %vm587_vm1, %v8279_v58, 0 }
0x144b   :  { %14817 = vmatpush3.msra.mxu1 %v7901_v55  ;;  %v7841_v19 = vand.u32 4294901760, %v7769_v20  ;;  %v7852_v42 = vsub.f32 %v7772_v6, %v16700_v8  ;;  %v16713_v45 = vand.u32 4294901760, %v16704_v22  ;;  %v8412_v12 = vand.u32 4294901760, %v8411_v52 }
0x144c   :  { %14828 = vmatprep.subr.mxu1 %v7803_v21  ;;  %v8369_v32 = vand.u32 4294901760, %v8286_v62 }
0x144d   :  { %14818 = vmatprep.mubr.f32.mxu1 %v7841_v19  ;;  %v7842_v51 = vsub.f32 %v7769_v20, %v7841_v19  ;;  %v7853_v18 = vand.u32 4294901760, %v7852_v42  ;;  %v8418_v56 = vsub.f32 %v16704_v22, %v16713_v45 }
0x144e   :  { %14819 = vmatmul.mubr.f32.vlgmr.msra.gmra.mxu1 %v16700_v8  ;;  %v8370_v57 = vsub.f32 %v8286_v62, %v8369_v32 }
0x144f   :  { %14829 = vmatpush3.msra.mxu1 %v7803_v21  ;;  %v7843_v1 = vand.u32 4294901760, %v7842_v51  ;;  %v7854_v49 = vsub.f32 %v7852_v42, %v7853_v18  ;;  %v8419_v61 = vand.u32 4294901760, %v8418_v56 }
0x1450   :  { %14830 = vmatprep.subr.mxu1 %v16670_v15 }
0x1451   :  { %14831 = vmatpush3.msra.mxu1 %v16670_v15  ;;  %14832 = vmatprep.mubr.f32.mxu1 %v7843_v1  ;;  %v7844_v60 = vsub.f32 %v7842_v51, %v7843_v1  ;;  %v7855_v26 = vand.u32 4294901760, %v7854_v49 }
0x1452   :  { %14842 = vmatprep.subr.mxu1 %v7803_v21  ;;  %14833 = vmatmul.mubr.f32.vlgmr.msra.gmra.mxu1 %v7853_v18 }
0x1453   :  { %14843 = vmatpush3.msra.mxu1 %v7803_v21  ;;  %14846 = vmatprep.mubr.f32.mxu1 %v7841_v19  ;;  %v7845_v4 = vand.u32 4294901760, %v7844_v60  ;;  %v8371_v21 = vand.u32 4294901760, %v8370_v57 }
0x1454   :  { %14844 = vmatprep.subr.mxu1 %v16670_v15 }
0x1455   :  { %14845 = vmatpush3.msra.mxu1 %v16670_v15  ;;  %14811 = vmatprep.mubr.f32.mxu0 %v7845_v4  ;;  %v8362_v15 = vsub.f32 %v8360_v7, %v8361_v14 }
0x1456   :  { %14856 = vmatprep.subr.mxu1 %v8412_v12  ;;  %14812 = vmatmul.mubr.f32.vlgmr.msra.gmra.mxu0 %v7855_v26 }
0x1457   :  { %14822 = vmatpush3.msra.mxu0 %v16675_v10  ;;  %14847 = vmatmul.mubr.f32.vlgmr.msra.gmra.mxu1 %v16700_v8  ;;  %v8372_v10 = vsub.f32 %v8370_v57, %v8371_v21 }
0x1458   :  { %14857 = vmatpush3.xpose.msra.mxu1 %v8412_v12  ;;  %14823 = vmatprep.subr.mxu0 %v16673_v41 }
0x1459   :  { %14825 = vmatprep.mubr.f32.mxu0 %v7842_v51  ;;  %14858 = vmatprep.subr.mxu1 %v8419_v61 }
0x145a   :  { %14860 = vmatprep.mubr.f32.mxu1 %v16715_v5  ;;  %14824 = vmatpush3.msra.mxu0 %v16673_v41  ;;  %v8363_v41 = vand.u32 4294901760, %v8362_v15 }
0x145b   :  { %14835 = vmatprep.subr.mxu0 %v16683_v2  ;;  %14826 = vmatmul.mubr.f32.vlgmr.msra.gmra.mxu0 %v7852_v42 }
0x145c   :  { %14836 = vmatpush3.msra.mxu0 %v16683_v2  ;;  %14859 = vmatpush3.xpose.msra.mxu1 %v8419_v61 }
0x145d   :  { %14837 = vmatprep.subr.mxu0 %v16678_v24  ;;  %14839 = vmatprep.mubr.f32.mxu0 %v7841_v19 }
0x145e   :  { %14870 = vmatprep.subr.mxu1 %v16686_v23  ;;  %14838 = vmatpush3.msra.mxu0 %v16678_v24  ;;  %v8373_v24 = vand.u32 4294901760, %v8372_v10 }
0x145f   :  { %14849 = vmatprep.subr.mxu0 %v16686_v23  ;;  %14861 = vmatmul.mubr.f32.vlgmr.msra.gmra.mxu1 %v8369_v32 }
0x1460   :  { %14840 = vmatmul.mubr.f32.vlgmr.msra.gmra.mxu0 %v16700_v8  ;;  %14871 = vmatpush3.xpose.msra.mxu1 %v16686_v23 }
0x1461   :  { %14850 = vmatpush3.xpose.msra.mxu0 %v16686_v23  ;;  %14874 = vmatprep.mubr.f32.mxu1 %v8361_v14 }
0x1462   :  { %14851 = vmatprep.subr.mxu0 %v16694_v11  ;;  %14853 = vmatprep.mubr.f32.mxu0 %v8363_v41 }
0x1463   :  { %14872 = vmatprep.subr.mxu1 %v16694_v11 }
0x1464   :  { %14873 = vmatpush3.xpose.msra.mxu1 %v16694_v11 }
0x1465   :  { %14852 = vmatpush3.xpose.msra.mxu0 %v16694_v11  ;;  %14884 = vmatprep.subr.mxu1 %v16686_v23 }
0x1466   :  { %14863 = vmatprep.subr.mxu0 %v16697_v0 }
0x1467   :  { %14875 = vmatmul.mubr.f32.vlgmr.msra.gmra.mxu1 %v8371_v21 }
0x1468   :  { %14854 = vmatmul.mubr.f32.vlgmr.msra.gmra.mxu0 %v8373_v24  ;;  %14885 = vmatpush3.xpose.msra.mxu1 %v16686_v23 }
0x1469   :  { %14864 = vmatpush3.xpose.msra.mxu0 %v16697_v0  ;;  %14867 = vmatprep.mubr.f32.mxu0 %v8360_v7 }
0x146a   :  { %14888 = vmatprep.mubr.f32.mxu1 %v16715_v5  ;;  %14865 = vmatprep.subr.mxu0 %v16704_v22 }
0x146b   :  { %14886 = vmatprep.subr.mxu1 %v16694_v11 }
0x146c   :  { %14887 = vmatpush3.xpose.msra.mxu1 %v16694_v11 }
0x146d   :  { %14866 = vmatpush3.xpose.msra.mxu0 %v16704_v22 }
0x146e   :  { %14877 = vmatprep.subr.mxu0 %v16708_v47 }
0x146f   :  { %14889 = vmatmul.mubr.f32.vlgmr.msra.gmra.mxu1 %v8369_v32 }
0x1470   :  { %14868 = vmatmul.mubr.f32.vlgmr.msra.gmra.mxu0 %v8370_v57 }
0x1471   :  { %14878 = vmatpush3.xpose.msra.mxu0 %v16708_v47  ;;  %14881 = vmatprep.mubr.f32.mxu0 %v16715_v5 }
0x1472   :  { %14879 = vmatprep.subr.mxu0 %v16713_v45 }
0x1475   :  { %14880 = vmatpush3.xpose.msra.mxu0 %v16713_v45 }
0x1478   :  { %14882 = vmatmul.mubr.f32.vlgmr.msra.gmra.mxu0 %v8369_v32 }
0x150e   :  { %v14820_v25 = vpop.f32.mrf.mxu1 }
0x1510   :  { %v7938_v35 = vpop.f32.mrf.mxu1 }
0x1512   :  { %v14834_v34 = vpop.f32.mrf.mxu1 }
0x1514   :  { %v8102_v44 = vpop.f32.mrf.mxu1 }
0x1516   :  { %v14813_v2 = vpop.f32.mrf.mxu0 }
0x1517   :  { %v7945_v23 = vadd.f32 %v14820_v25, %v14813_v2  ;;  %v14848_v0 = vpop.f32.mrf.mxu1 }
0x1518   :  { %v7847_v33 = vpop.f32.mrf.mxu0 }
0x1519   :  { %v7939_v46 = vadd.f32 %v7938_v35, %v7847_v33  ;;  %v8266_v22 = vpop.f32.mrf.mxu1 }
0x151b   :  { %v14827_v53 = vpop.f32.mrf.mxu0 }
0x151c   :  { %v8028_v59 = vadd.f32 %v14827_v53, %v7945_v23 }
0x151d   :  { %v8020_v16 = vpop.f32.mrf.mxu0 }
0x151e   :  { %v8021_v28 = vadd.f32 %v8020_v16, %v7939_v46  ;;  %v8111_v11 = vadd.f32 %v14834_v34, %v8028_v59 }
0x151f   :  { %v14862_v47 = vpop.f32.mrf.mxu1 }
0x1520   :  { %v14841_v55 = vpop.f32.mrf.mxu0  ;;  %v8103_v54 = vadd.f32 %v8102_v44, %v8021_v28 }
0x1521   :  { %v8194_v6 = vadd.f32 %v14841_v55, %v8111_v11  ;;  %v8456_v51 = vpop.f32.mrf.mxu1 }
0x1522   :  { %v8187_v8 = vpop.f32.mrf.mxu0 }
0x1523   :  { %v16759_v9 = vadd.f32 %v14848_v0, %v8194_v6  ;;  %v8188_v20 = vadd.f32 %v8187_v8, %v8103_v54 }
0x1525   :  { %v16761_v19 = vadd.f32 %v8266_v22, %v8188_v20 }
0x1527   :  { %v14876_v45 = vpop.f32.mrf.mxu1 }
0x1528   :  { %v14855_v42 = vpop.f32.mrf.mxu0 }
0x1529   :  { %v8463_v1 = vadd.f32 %v14862_v47, %v14855_v42  ;;  %v8620_v60 = vpop.f32.mrf.mxu1 }
0x152a   :  { %v8365_v48 = vpop.f32.mrf.mxu0 }
0x152b   :  { %v8457_v58 = vadd.f32 %v8456_v51, %v8365_v48 }
0x152f   :  { %v14890_v4 = vpop.f32.mrf.mxu1 }
0x1530   :  { %v14869_v18 = vpop.f32.mrf.mxu0 }
0x1531   :  { %v8546_v52 = vadd.f32 %v14869_v18, %v8463_v1  ;;  %v8784_v14 = vpop.f32.mrf.mxu1 }
0x1532   :  { %v8538_v5 = vpop.f32.mrf.mxu0 }
0x1533   :  { %v8539_v49 = vadd.f32 %v8538_v5, %v8457_v58  ;;  %v8629_v62 = vadd.f32 %v14876_v45, %v8546_v52 }
0x1535   :  { %v8621_v12 = vadd.f32 %v8620_v60, %v8539_v49 }
0x1538   :  { %v14883_v56 = vpop.f32.mrf.mxu0 }
0x1539   :  { %v8712_v7 = vadd.f32 %v14883_v56, %v8629_v62 }
0x153a   :  { %v8705_v26 = vpop.f32.mrf.mxu0 }
0x153b   :  { %v8791_v32 = vadd.f32 %v14890_v4, %v8712_v7  ;;  %v8706_v61 = vadd.f32 %v8705_v26, %v8621_v12 }
0x153d   :  { %v8795_v57 = vmul.f32 0.35355338, %v8791_v32  ;;  %v8785_v15 = vadd.f32 %v8784_v14, %v8706_v61 }
0x153f   :  { %v8794_v21 = vmul.f32 0.35355338, %v8785_v15  ;;  %v8797_v41 = vadd.f32 %v16645_v13, %v8795_v57 }
0x1541   :  { %v8801_v10 = vsel %vm1102_vm2, %v8797_v41, -inf  ;;  %v8796_v24 = vadd.f32 %v16652_v36, %v8794_v21 }
0x1542   :  { %8802 = vmax.xlane.f32.xlu1 %v8801_v10 }
0x1543   :  { %v8798_v25 = vsel %vm1102_vm2, %v8796_v24, -inf }
0x1544   :  { %8799 = vmax.xlane.f32.xlu0 %v8798_v25 }
0x1553   :  { %8822 = vrot.lane.b32.xlu1 %v16628_v40, %s15505_s15 }
0x1557   :  { %9340 = vrot.lane.b32.xlu1 %v16628_v40, %s15507_s17 }
0x155b   :  { %9338 = vrot.lane.b32.xlu1 %v16630_v17, %s15507_s17 }
0x155f   :  { %9336 = vrot.lane.b32.xlu1 %v16628_v40, %s15506_s16 }
0x15cb   :  { %v8803_v35 = vpop.xlane.xlu1 %8802 }
0x15cc   :  { %v8805_v2 = vsub.f32 %v8797_v41, %v8803_v35 }
0x15cd   :  { %v8800_v23 = vpop.xlane.xlu0 %8799 }
0x15ce   :  { %v8808_v34 = vmul.f32 1.442695, %v8805_v2  ;;  %v8804_v33 = vsub.f32 %v8796_v24, %v8800_v23 }
0x15cf   :  { %v8823_v46 = vpop.permute.xlu1 %8822 }
0x15d0   :  { %15421 = vpow2.f32 %v8808_v34  ;;  %v8806_v53 = vmul.f32 1.442695, %v8804_v33  ;;  %v16775_v44 = vand.u32 4294901760, %v8823_v46 }
0x15d2   :  { %15423 = vpow2.f32 %v8806_v53  ;;  %v16778_v59 = vsub.f32 %v8823_v46, %v16775_v44  ;;  %14891 = vmatprep.subr.mxu0 %v16775_v44 }
0x15d3   :  { %14892 = vmatpush3.msra.mxu0 %v16775_v44  ;;  %v9341_v22 = vpop.permute.xlu1 %9340 }
0x15d4   :  { %v16783_v16 = vand.u32 4294901760, %v16778_v59  ;;  %v9348_v51 = vsel %vm587_vm1, %v9341_v22, 0 }
0x15d5   :  { %v16800_v5 = vand.u32 4294901760, %v9348_v51 }
0x15d6   :  { %v8951_v28 = vsub.f32 %v16778_v59, %v16783_v16 }
0x15d7   :  { %v9339_v18 = vpop.permute.xlu1 %9338  ;;  %v16811_v12 = vsub.f32 %v9348_v51, %v16800_v5 }
0x15d8   :  { %v8952_v11 = vand.u32 4294901760, %v8951_v28  ;;  %v9346_v58 = vsel %vm587_vm1, %v9339_v18, 0 }
0x15d9   :  { %v16806_v56 = vand.u32 4294901760, %v9346_v58  ;;  %v16820_v41 = vand.u32 4294901760, %v16811_v12 }
0x15da   :  { %14898 = vmatprep.subr.mxu1 %v8952_v11 }
0x15db   :  { %14899 = vmatpush3.msra.mxu1 %v8952_v11  ;;  %v16817_v57 = vsub.f32 %v9346_v58, %v16806_v56  ;;  %v9337_v2 = vpop.permute.xlu1 %9336  ;;  %v9469_v34 = vsub.f32 %v16811_v12, %v16820_v41 }
0x15dc   :  { %v9344_v53 = vsel %vm587_vm1, %v9337_v2, 0 }
0x15dd   :  { %v15422_v0 = vpop.eup %15421  ;;  %v16826_v35 = vand.u32 4294901760, %v16817_v57 }
0x15de   :  { %v8813_v55 = vsel %vm1102_vm2, %v15422_v0, 0.0 }
0x15df   :  { %v15424_v54 = vpop.eup %15423  ;;  %8814 = vadd.xlane.f32.xlu0 %v8813_v55  ;;  %v9476_v11 = vsub.f32 %v16817_v57, %v16826_v35  ;;  %v9470_v55 = vand.u32 4294901760, %v9469_v34 }
0x15e0   :  { %v8810_v6 = vsel %vm1102_vm2, %v15424_v54, 0.0 }
0x15e3   :  { %8811 = vadd.xlane.f32.xlu0 %v8810_v6  ;;  %v9427_v6 = vand.u32 4294901760, %v9344_v53 }
0x15f9   :  { %8820 = vrot.lane.b32.xlu0 %v16630_v17, %s15505_s15 }
0x15fd   :  { %9334 = vrot.lane.b32.xlu0 %v16630_v17, %s15506_s16 }
0x1668   :  { %v8815_v8 = vpop.xlane.xlu0 %8814 }
0x1669   :  { %15425 = vrcp.f32 %v8815_v8 }
0x166c   :  { %v8812_v20 = vpop.xlane.xlu0 %8811 }
0x166d   :  { %15427 = vrcp.f32 %v8812_v20  ;;  %v9428_v20 = vsub.f32 %v9344_v53, %v9427_v6 }
0x166f   :  { %v9429_v22 = vand.u32 4294901760, %v9428_v20 }
0x1670   :  { %v8821_v42 = vpop.permute.xlu0 %8820 }
0x1671   :  { %v8864_v47 = vand.u32 4294901760, %v8821_v42 }
0x1673   :  { %v16793_v48 = vsub.f32 %v8821_v42, %v8864_v47  ;;  %14893 = vmatprep.subr.mxu0 %v8864_v47 }
0x1674   :  { %14894 = vmatpush3.msra.mxu0 %v8864_v47  ;;  %v9335_v61 = vpop.permute.xlu0 %9334 }
0x1675   :  { %14905 = vmatprep.subr.mxu0 %v16778_v59  ;;  %v16798_v1 = vand.u32 4294901760, %v16793_v48  ;;  %v9342_v10 = vsel %vm587_vm1, %v9335_v61, 0 }
0x1676   :  { %v15426_v45 = vpop.eup %15425  ;;  %v16828_v23 = vand.u32 4294901760, %v9342_v10 }
0x1677   :  { %v8958_v52 = vsub.f32 %v16793_v48, %v16798_v1  ;;  %v8819_v49 = vmul.f32 %v15426_v45, %v15422_v0 }
0x1678   :  { %v9418_v0 = vsub.f32 %v9342_v10, %v16828_v23 }
0x1679   :  { %v8959_v60 = vand.u32 4294901760, %v8958_v52  ;;  %v8830_v62 = vsel %vm1102_vm2, %v8819_v49, 0 }
0x167a   :  { %v15428_v4 = vpop.eup %15427  ;;  %v16808_v7 = vand.u32 4294901760, %v8830_v62  ;;  %v9419_v8 = vand.u32 4294901760, %v9418_v0 }
0x167b   :  { %14900 = vmatprep.subr.mxu1 %v8959_v60  ;;  %v8817_v26 = vmul.f32 %v15428_v4, %v15424_v54 }
0x167c   :  { %14901 = vmatpush3.msra.mxu1 %v8959_v60  ;;  %v8910_v32 = vsub.f32 %v8830_v62, %v16808_v7 }
0x167d   :  { %14912 = vmatprep.subr.mxu1 %v16775_v44  ;;  %v8827_v14 = vsel %vm1102_vm2, %v8817_v26, 0 }
0x167e   :  { %v8899_v15 = vand.u32 4294901760, %v8827_v14  ;;  %v8911_v21 = vand.u32 4294901760, %v8910_v32 }
0x1680   :  { %14902 = vmatprep.mubr.f32.mxu1 %v8899_v15  ;;  %v8900_v24 = vsub.f32 %v8827_v14, %v8899_v15  ;;  %v8912_v33 = vsub.f32 %v8910_v32, %v8911_v21 }
0x1681   :  { %14903 = vmatmul.mubr.f32.vlgmr.msra.gmra.mxu1 %v16808_v7 }
0x1682   :  { %14913 = vmatpush3.msra.mxu1 %v16775_v44  ;;  %v8901_v25 = vand.u32 4294901760, %v8900_v24  ;;  %v8913_v54 = vand.u32 4294901760, %v8912_v33 }
0x1683   :  { %14914 = vmatprep.subr.mxu1 %v8864_v47 }
0x1684   :  { %14915 = vmatpush3.msra.mxu1 %v8864_v47  ;;  %14916 = vmatprep.mubr.f32.mxu1 %v8901_v25  ;;  %v8902_v46 = vsub.f32 %v8900_v24, %v8901_v25 }
0x1685   :  { %14926 = vmatprep.subr.mxu1 %v16775_v44  ;;  %14917 = vmatmul.mubr.f32.vlgmr.msra.gmra.mxu1 %v8911_v21 }
0x1686   :  { %14927 = vmatpush3.msra.mxu1 %v16775_v44  ;;  %14930 = vmatprep.mubr.f32.mxu1 %v8899_v15  ;;  %v8903_v28 = vand.u32 4294901760, %v8902_v46  ;;  %v9477_v44 = vand.u32 4294901760, %v9476_v11 }
0x1687   :  { %14928 = vmatprep.subr.mxu1 %v8864_v47 }
0x1688   :  { %14929 = vmatpush3.msra.mxu1 %v8864_v47  ;;  %14895 = vmatprep.mubr.f32.mxu0 %v8903_v28 }
0x1689   :  { %14940 = vmatprep.subr.mxu1 %v9470_v55  ;;  %14896 = vmatmul.mubr.f32.vlgmr.msra.gmra.mxu0 %v8913_v54 }
0x168a   :  { %14906 = vmatpush3.msra.mxu0 %v16778_v59  ;;  %14931 = vmatmul.mubr.f32.vlgmr.msra.gmra.mxu1 %v16808_v7  ;;  %v9420_v59 = vsub.f32 %v9418_v0, %v9419_v8 }
0x168b   :  { %14941 = vmatpush3.xpose.msra.mxu1 %v9470_v55  ;;  %14907 = vmatprep.subr.mxu0 %v16793_v48 }
0x168c   :  { %14909 = vmatprep.mubr.f32.mxu0 %v8900_v24  ;;  %14942 = vmatprep.subr.mxu1 %v9477_v44  ;;  %v9421_v42 = vand.u32 4294901760, %v9420_v59 }
0x168d   :  { %14944 = vmatprep.mubr.f32.mxu1 %v16828_v23  ;;  %14908 = vmatpush3.msra.mxu0 %v16793_v48 }
0x168e   :  { %14919 = vmatprep.subr.mxu0 %v16783_v16  ;;  %14910 = vmatmul.mubr.f32.vlgmr.msra.gmra.mxu0 %v8910_v32 }
0x168f   :  { %14920 = vmatpush3.msra.mxu0 %v16783_v16  ;;  %14943 = vmatpush3.xpose.msra.mxu1 %v9477_v44  ;;  %v9430_v16 = vsub.f32 %v9428_v20, %v9429_v22 }
0x1690   :  { %14921 = vmatprep.subr.mxu0 %v16798_v1  ;;  %14923 = vmatprep.mubr.f32.mxu0 %v8899_v15 }
0x1691   :  { %14954 = vmatprep.subr.mxu1 %v16800_v5  ;;  %14922 = vmatpush3.msra.mxu0 %v16798_v1  ;;  %v9431_v47 = vand.u32 4294901760, %v9430_v16 }
0x1692   :  { %14933 = vmatprep.subr.mxu0 %v16800_v5  ;;  %14945 = vmatmul.mubr.f32.vlgmr.msra.gmra.mxu1 %v9427_v6 }
0x1693   :  { %14924 = vmatmul.mubr.f32.vlgmr.msra.gmra.mxu0 %v16808_v7  ;;  %14955 = vmatpush3.xpose.msra.mxu1 %v16800_v5 }
0x1694   :  { %14934 = vmatpush3.xpose.msra.mxu0 %v16800_v5  ;;  %14958 = vmatprep.mubr.f32.mxu1 %v9419_v8 }
0x1695   :  { %14935 = vmatprep.subr.mxu0 %v16806_v56  ;;  %14937 = vmatprep.mubr.f32.mxu0 %v9421_v42 }
0x1696   :  { %14956 = vmatprep.subr.mxu1 %v16806_v56 }
0x1697   :  { %14957 = vmatpush3.xpose.msra.mxu1 %v16806_v56 }
0x1698   :  { %14936 = vmatpush3.xpose.msra.mxu0 %v16806_v56  ;;  %14968 = vmatprep.subr.mxu1 %v16800_v5 }
0x1699   :  { %14947 = vmatprep.subr.mxu0 %v16811_v12 }
0x169a   :  { %14959 = vmatmul.mubr.f32.vlgmr.msra.gmra.mxu1 %v9429_v22 }
0x169b   :  { %14938 = vmatmul.mubr.f32.vlgmr.msra.gmra.mxu0 %v9431_v47  ;;  %14969 = vmatpush3.xpose.msra.mxu1 %v16800_v5 }
0x169c   :  { %14948 = vmatpush3.xpose.msra.mxu0 %v16811_v12  ;;  %14951 = vmatprep.mubr.f32.mxu0 %v9418_v0 }
0x169d   :  { %14972 = vmatprep.mubr.f32.mxu1 %v16828_v23  ;;  %14949 = vmatprep.subr.mxu0 %v16817_v57 }
0x169e   :  { %14970 = vmatprep.subr.mxu1 %v16806_v56 }
0x169f   :  { %14971 = vmatpush3.xpose.msra.mxu1 %v16806_v56 }
0x16a0   :  { %14950 = vmatpush3.xpose.msra.mxu0 %v16817_v57 }
0x16a1   :  { %14961 = vmatprep.subr.mxu0 %v16820_v41 }
0x16a2   :  { %14973 = vmatmul.mubr.f32.vlgmr.msra.gmra.mxu1 %v9427_v6 }
0x16a3   :  { %14952 = vmatmul.mubr.f32.vlgmr.msra.gmra.mxu0 %v9428_v20 }
0x16a4   :  { %14962 = vmatpush3.xpose.msra.mxu0 %v16820_v41  ;;  %14965 = vmatprep.mubr.f32.mxu0 %v16828_v23 }
0x16a5   :  { %14963 = vmatprep.subr.mxu0 %v16826_v35 }
0x16a8   :  { %14964 = vmatpush3.xpose.msra.mxu0 %v16826_v35 }
0x16ab   :  { %14966 = vmatmul.mubr.f32.vlgmr.msra.gmra.mxu0 %v9427_v6 }
0x1741   :  { %v14904_v48 = vpop.f32.mrf.mxu1 }
0x1743   :  { %v8996_v51 = vpop.f32.mrf.mxu1 }
0x1745   :  { %v14918_v45 = vpop.f32.mrf.mxu1 }
0x1747   :  { %v9160_v49 = vpop.f32.mrf.mxu1 }
0x1749   :  { %v14897_v18 = vpop.f32.mrf.mxu0 }
0x174a   :  { %v9003_v1 = vadd.f32 %v14904_v48, %v14897_v18  ;;  %v14932_v7 = vpop.f32.mrf.mxu1 }
0x174b   :  { %v8905_v5 = vpop.f32.mrf.mxu0 }
0x174c   :  { %v8997_v58 = vadd.f32 %v8996_v51, %v8905_v5  ;;  %v9324_v15 = vpop.f32.mrf.mxu1 }
0x174e   :  { %v14911_v52 = vpop.f32.mrf.mxu0 }
0x174f   :  { %v9086_v60 = vadd.f32 %v14911_v52, %v9003_v1 }
0x1750   :  { %v9078_v62 = vpop.f32.mrf.mxu0 }
0x1751   :  { %v9079_v4 = vadd.f32 %v9078_v62, %v8997_v58  ;;  %v9169_v56 = vadd.f32 %v14918_v45, %v9086_v60 }
0x1752   :  { %v14946_v10 = vpop.f32.mrf.mxu1 }
0x1753   :  { %v14925_v12 = vpop.f32.mrf.mxu0  ;;  %v9161_v26 = vadd.f32 %v9160_v49, %v9079_v4 }
0x1754   :  { %v9252_v32 = vadd.f32 %v14925_v12, %v9169_v56  ;;  %v9514_v25 = vpop.f32.mrf.mxu1 }
0x1755   :  { %v9245_v61 = vpop.f32.mrf.mxu0 }
0x1756   :  { %v16870_v14 = vadd.f32 %v14932_v7, %v9252_v32  ;;  %v9246_v57 = vadd.f32 %v9245_v61, %v9161_v26 }
0x1758   :  { %v16872_v21 = vadd.f32 %v9324_v15, %v9246_v57 }
0x175a   :  { %v14960_v23 = vpop.f32.mrf.mxu1 }
0x175b   :  { %v14939_v41 = vpop.f32.mrf.mxu0 }
0x175c   :  { %v9521_v2 = vadd.f32 %v14946_v10, %v14939_v41  ;;  %v9678_v28 = vpop.f32.mrf.mxu1 }
0x175d   :  { %v9423_v24 = vpop.f32.mrf.mxu0 }
0x175e   :  { %v9515_v33 = vadd.f32 %v9514_v25, %v9423_v24 }
0x1762   :  { %v14974_v0 = vpop.f32.mrf.mxu1 }
0x1763   :  { %v14953_v35 = vpop.f32.mrf.mxu0 }
0x1764   :  { %v9604_v46 = vadd.f32 %v14953_v35, %v9521_v2  ;;  %v9842_v59 = vpop.f32.mrf.mxu1 }
0x1765   :  { %v9596_v34 = vpop.f32.mrf.mxu0 }
0x1766   :  { %v9597_v53 = vadd.f32 %v9596_v34, %v9515_v33  ;;  %v9687_v11 = vadd.f32 %v14960_v23, %v9604_v46 }
0x1768   :  { %v9679_v6 = vadd.f32 %v9678_v28, %v9597_v53 }
0x176b   :  { %v14967_v55 = vpop.f32.mrf.mxu0 }
0x176c   :  { %v9770_v54 = vadd.f32 %v14967_v55, %v9687_v11 }
0x176d   :  { %v9763_v44 = vpop.f32.mrf.mxu0 }
0x176e   :  { %v9849_v8 = vadd.f32 %v14974_v0, %v9770_v54  ;;  %v9764_v20 = vadd.f32 %v9763_v44, %v9679_v6 }
0x1770   :  { %v9853_v22 = vmul.f32 0.35355338, %v9849_v8  ;;  %v9843_v42 = vadd.f32 %v9842_v59, %v9764_v20 }
0x1772   :  { %v9852_v16 = vmul.f32 0.35355338, %v9843_v42  ;;  %v9855_v47 = vadd.f32 %v16645_v13, %v9853_v22 }
0x1774   :  { %v9859_v48 = vsel %vm1102_vm2, %v9855_v47, -inf  ;;  %v9854_v51 = vadd.f32 %v16652_v36, %v9852_v16 }
0x1775   :  { %9860 = vmax.xlane.f32.xlu1 %v9859_v48 }
0x1776   :  { %v9856_v18 = vsel %vm1102_vm2, %v9854_v51, -inf }
0x1777   :  { %9857 = vmax.xlane.f32.xlu0 %v9856_v18 }
0x1786   :  { %9880 = vrot.lane.b32.xlu1 %v16628_v40, %s15508_s18 }
0x178a   :  { %10398 = vrot.lane.b32.xlu1 %v16628_v40, %s15509_s19 }
0x178e   :  { %10396 = vrot.lane.b32.xlu1 %v16630_v17, %s15509_s19 }
0x1792   :  { %10394 = vrot.lane.b32.xlu1 %v16628_v40, %s15510_s20 }
0x17fe   :  { %v9861_v13 = vpop.xlane.xlu1 %9860 }
0x17ff   :  { %v9863_v1 = vsub.f32 %v9855_v47, %v9861_v13 }
0x1800   :  { %v9858_v45 = vpop.xlane.xlu0 %9857 }
0x1801   :  { %v9866_v36 = vmul.f32 1.442695, %v9863_v1  ;;  %v9862_v5 = vsub.f32 %v9854_v51, %v9858_v45 }
0x1802   :  { %v9881_v58 = vpop.permute.xlu1 %9880 }
0x1803   :  { %15429 = vpow2.f32 %v9866_v36  ;;  %v9864_v52 = vmul.f32 1.442695, %v9862_v5  ;;  %v16886_v49 = vand.u32 4294901760, %v9881_v58 }
0x1805   :  { %15431 = vpow2.f32 %v9864_v52  ;;  %v16889_v60 = vsub.f32 %v9881_v58, %v16886_v49  ;;  %14975 = vmatprep.subr.mxu0 %v16886_v49 }
0x1806   :  { %14976 = vmatpush3.msra.mxu0 %v16886_v49  ;;  %v10399_v15 = vpop.permute.xlu1 %10398 }
0x1807   :  { %v16894_v62 = vand.u32 4294901760, %v16889_v60  ;;  %v10406_v25 = vsel %vm587_vm1, %v10399_v15, 0 }
0x1808   :  { %v16911_v34 = vand.u32 4294901760, %v10406_v25 }
0x1809   :  { %v10009_v4 = vsub.f32 %v16889_v60, %v16894_v62 }
0x180a   :  { %v10397_v35 = vpop.permute.xlu1 %10396  ;;  %v16922_v6 = vsub.f32 %v10406_v25, %v16911_v34 }
0x180b   :  { %v10010_v56 = vand.u32 4294901760, %v10009_v4  ;;  %v10404_v33 = vsel %vm587_vm1, %v10397_v35, 0 }
0x180c   :  { %v16917_v55 = vand.u32 4294901760, %v10404_v33  ;;  %v16931_v47 = vand.u32 4294901760, %v16922_v6 }
0x180d   :  { %14982 = vmatprep.subr.mxu1 %v10010_v56 }
0x180e   :  { %14983 = vmatpush3.msra.mxu1 %v10010_v56  ;;  %v16928_v22 = vsub.f32 %v10404_v33, %v16917_v55  ;;  %v10395_v1 = vpop.permute.xlu1 %10394  ;;  %v10527_v36 = vsub.f32 %v16922_v6, %v16931_v47 }
0x180f   :  { %v10402_v52 = vsel %vm587_vm1, %v10395_v1, 0 }
0x1810   :  { %v15430_v7 = vpop.eup %15429  ;;  %v16937_v13 = vand.u32 4294901760, %v16928_v22 }
0x1811   :  { %v9871_v12 = vsel %vm1102_vm2, %v15430_v7, 0.0 }
0x1812   :  { %v15432_v26 = vpop.eup %15431  ;;  %9872 = vadd.xlane.f32.xlu0 %v9871_v12  ;;  %v10534_v56 = vsub.f32 %v16928_v22, %v16937_v13  ;;  %v10528_v12 = vand.u32 4294901760, %v10527_v36 }
0x1813   :  { %v9868_v32 = vsel %vm1102_vm2, %v15432_v26, 0.0 }
0x1816   :  { %9869 = vadd.xlane.f32.xlu0 %v9868_v32  ;;  %v10485_v32 = vand.u32 4294901760, %v10402_v52 }
0x182c   :  { %9878 = vrot.lane.b32.xlu0 %v16630_v17, %s15508_s18 }
0x1830   :  { %10392 = vrot.lane.b32.xlu0 %v16630_v17, %s15510_s20 }
0x189b   :  { %v9873_v61 = vpop.xlane.xlu0 %9872 }
0x189c   :  { %15433 = vrcp.f32 %v9873_v61 }
0x189f   :  { %v9870_v57 = vpop.xlane.xlu0 %9869 }
0x18a0   :  { %15435 = vrcp.f32 %v9870_v57  ;;  %v10486_v57 = vsub.f32 %v10402_v52, %v10485_v32 }
0x18a2   :  { %v10487_v15 = vand.u32 4294901760, %v10486_v57 }
0x18a3   :  { %v9879_v41 = vpop.permute.xlu0 %9878 }
0x18a4   :  { %v9922_v10 = vand.u32 4294901760, %v9879_v41 }
0x18a6   :  { %v16904_v24 = vsub.f32 %v9879_v41, %v9922_v10  ;;  %14977 = vmatprep.subr.mxu0 %v9922_v10 }
0x18a7   :  { %14978 = vmatpush3.msra.mxu0 %v9922_v10  ;;  %v10393_v20 = vpop.permute.xlu0 %10392 }
0x18a8   :  { %14989 = vmatprep.subr.mxu0 %v16889_v60  ;;  %v16909_v2 = vand.u32 4294901760, %v16904_v24  ;;  %v10400_v48 = vsel %vm587_vm1, %v10393_v20, 0 }
0x18a9   :  { %v15434_v23 = vpop.eup %15433  ;;  %v16939_v45 = vand.u32 4294901760, %v10400_v48 }
0x18aa   :  { %v10016_v46 = vsub.f32 %v16904_v24, %v16909_v2  ;;  %v9877_v53 = vmul.f32 %v15434_v23, %v15430_v7 }
0x18ab   :  { %v10476_v7 = vsub.f32 %v10400_v48, %v16939_v45 }
0x18ac   :  { %v10017_v28 = vand.u32 4294901760, %v10016_v46  ;;  %v9888_v11 = vsel %vm1102_vm2, %v9877_v53, 0 }
0x18ad   :  { %v15436_v0 = vpop.eup %15435  ;;  %v16919_v54 = vand.u32 4294901760, %v9888_v11  ;;  %v10477_v61 = vand.u32 4294901760, %v10476_v7 }
0x18ae   :  { %14984 = vmatprep.subr.mxu1 %v10017_v28  ;;  %v9875_v44 = vmul.f32 %v15436_v0, %v15432_v26 }
0x18af   :  { %14985 = vmatpush3.msra.mxu1 %v10017_v28  ;;  %v9968_v8 = vsub.f32 %v9888_v11, %v16919_v54 }
0x18b0   :  { %14996 = vmatprep.subr.mxu1 %v16886_v49  ;;  %v9885_v59 = vsel %vm1102_vm2, %v9875_v44, 0 }
0x18b1   :  { %v9957_v42 = vand.u32 4294901760, %v9885_v59  ;;  %v9969_v16 = vand.u32 4294901760, %v9968_v8 }
0x18b3   :  { %14986 = vmatprep.mubr.f32.mxu1 %v9957_v42  ;;  %v9958_v51 = vsub.f32 %v9885_v59, %v9957_v42  ;;  %v9970_v5 = vsub.f32 %v9968_v8, %v9969_v16 }
0x18b4   :  { %14987 = vmatmul.mubr.f32.vlgmr.msra.gmra.mxu1 %v16919_v54 }
0x18b5   :  { %14997 = vmatpush3.msra.mxu1 %v16886_v49  ;;  %v9959_v18 = vand.u32 4294901760, %v9958_v51  ;;  %v9971_v26 = vand.u32 4294901760, %v9970_v5 }
0x18b6   :  { %14998 = vmatprep.subr.mxu1 %v9922_v10 }
0x18b7   :  { %14999 = vmatpush3.msra.mxu1 %v9922_v10  ;;  %15000 = vmatprep.mubr.f32.mxu1 %v9959_v18  ;;  %v9960_v58 = vsub.f32 %v9958_v51, %v9959_v18 }
0x18b8   :  { %15010 = vmatprep.subr.mxu1 %v16886_v49  ;;  %15001 = vmatmul.mubr.f32.vlgmr.msra.gmra.mxu1 %v9969_v16 }
0x18b9   :  { %15011 = vmatpush3.msra.mxu1 %v16886_v49  ;;  %15014 = vmatprep.mubr.f32.mxu1 %v9957_v42  ;;  %v9961_v4 = vand.u32 4294901760, %v9960_v58  ;;  %v10535_v49 = vand.u32 4294901760, %v10534_v56 }
0x18ba   :  { %15012 = vmatprep.subr.mxu1 %v9922_v10 }
0x18bb   :  { %15013 = vmatpush3.msra.mxu1 %v9922_v10  ;;  %14979 = vmatprep.mubr.f32.mxu0 %v9961_v4 }
0x18bc   :  { %15024 = vmatprep.subr.mxu1 %v10528_v12  ;;  %14980 = vmatmul.mubr.f32.vlgmr.msra.gmra.mxu0 %v9971_v26 }
0x18bd   :  { %14990 = vmatpush3.msra.mxu0 %v16889_v60  ;;  %15015 = vmatmul.mubr.f32.vlgmr.msra.gmra.mxu1 %v16919_v54  ;;  %v10478_v60 = vsub.f32 %v10476_v7, %v10477_v61 }
0x18be   :  { %15025 = vmatpush3.xpose.msra.mxu1 %v10528_v12  ;;  %14991 = vmatprep.subr.mxu0 %v16904_v24 }
0x18bf   :  { %14993 = vmatprep.mubr.f32.mxu0 %v9958_v51  ;;  %15026 = vmatprep.subr.mxu1 %v10535_v49  ;;  %v10479_v41 = vand.u32 4294901760, %v10478_v60 }
0x18c0   :  { %15028 = vmatprep.mubr.f32.mxu1 %v16939_v45  ;;  %14992 = vmatpush3.msra.mxu0 %v16904_v24 }
0x18c1   :  { %15003 = vmatprep.subr.mxu0 %v16894_v62  ;;  %14994 = vmatmul.mubr.f32.vlgmr.msra.gmra.mxu0 %v9968_v8 }
0x18c2   :  { %15004 = vmatpush3.msra.mxu0 %v16894_v62  ;;  %15027 = vmatpush3.xpose.msra.mxu1 %v10535_v49  ;;  %v10488_v62 = vsub.f32 %v10486_v57, %v10487_v15 }
0x18c3   :  { %15005 = vmatprep.subr.mxu0 %v16909_v2  ;;  %15007 = vmatprep.mubr.f32.mxu0 %v9957_v42 }
0x18c4   :  { %15038 = vmatprep.subr.mxu1 %v16911_v34  ;;  %15006 = vmatpush3.msra.mxu0 %v16909_v2  ;;  %v10489_v10 = vand.u32 4294901760, %v10488_v62 }
0x18c5   :  { %15017 = vmatprep.subr.mxu0 %v16911_v34  ;;  %15029 = vmatmul.mubr.f32.vlgmr.msra.gmra.mxu1 %v10485_v32 }
0x18c6   :  { %15008 = vmatmul.mubr.f32.vlgmr.msra.gmra.mxu0 %v16919_v54  ;;  %15039 = vmatpush3.xpose.msra.mxu1 %v16911_v34 }
0x18c7   :  { %15018 = vmatpush3.xpose.msra.mxu0 %v16911_v34  ;;  %15042 = vmatprep.mubr.f32.mxu1 %v10477_v61 }
0x18c8   :  { %15019 = vmatprep.subr.mxu0 %v16917_v55  ;;  %15021 = vmatprep.mubr.f32.mxu0 %v10479_v41  ;;  %v15473_v41 = vld [vmem:[%s17482_s1] sm:$0xff] }
0x18c9   :  { %15040 = vmatprep.subr.mxu1 %v16917_v55 }
0x18ca   :  { %15041 = vmatpush3.xpose.msra.mxu1 %v16917_v55 }
0x18cb   :  { %15020 = vmatpush3.xpose.msra.mxu0 %v16917_v55  ;;  %15052 = vmatprep.subr.mxu1 %v16911_v34 }
0x18cc   :  { %15031 = vmatprep.subr.mxu0 %v16922_v6 }
0x18cd   :  { %15043 = vmatmul.mubr.f32.vlgmr.msra.gmra.mxu1 %v10487_v15 }
0x18ce   :  { %15022 = vmatmul.mubr.f32.vlgmr.msra.gmra.mxu0 %v10489_v10  ;;  %15053 = vmatpush3.xpose.msra.mxu1 %v16911_v34 }
0x18cf   :  { %15032 = vmatpush3.xpose.msra.mxu0 %v16922_v6  ;;  %15035 = vmatprep.mubr.f32.mxu0 %v10476_v7 }
0x18d0   :  { %15056 = vmatprep.mubr.f32.mxu1 %v16939_v45  ;;  %15033 = vmatprep.subr.mxu0 %v16928_v22 }
0x18d1   :  { %15054 = vmatprep.subr.mxu1 %v16917_v55 }
0x18d2   :  { %15055 = vmatpush3.xpose.msra.mxu1 %v16917_v55 }
0x18d3   :  { %15034 = vmatpush3.xpose.msra.mxu0 %v16928_v22 }
0x18d4   :  { %15045 = vmatprep.subr.mxu0 %v16931_v47 }
0x18d5   :  { %15057 = vmatmul.mubr.f32.vlgmr.msra.gmra.mxu1 %v10485_v32 }
0x18d6   :  { %15036 = vmatmul.mubr.f32.vlgmr.msra.gmra.mxu0 %v10486_v57  ;;  %v15472_v57 = vld [vmem:[%s17482_s1 + $0x8] sm:$0xff] }
0x18d7   :  { %15046 = vmatpush3.xpose.msra.mxu0 %v16931_v47  ;;  %15049 = vmatprep.mubr.f32.mxu0 %v16939_v45 }
0x18d8   :  { %15047 = vmatprep.subr.mxu0 %v16937_v13 }
0x18db   :  { %15048 = vmatpush3.xpose.msra.mxu0 %v16937_v13 }
0x18de   :  { %15050 = vmatmul.mubr.f32.vlgmr.msra.gmra.mxu0 %v10485_v32 }
0x1974   :  { %v14988_v24 = vpop.f32.mrf.mxu1 }
0x1976   :  { %v10054_v25 = vpop.f32.mrf.mxu1 }
0x1978   :  { %v15002_v2 = vpop.f32.mrf.mxu1 }
0x197a   :  { %v10218_v46 = vpop.f32.mrf.mxu1 }
0x197c   :  { %v14981_v35 = vpop.f32.mrf.mxu0 }
0x197d   :  { %v15016_v11 = vpop.f32.mrf.mxu1 }
0x197e   :  { %v9963_v23 = vpop.f32.mrf.mxu0 }
0x197f   :  { %v10055_v34 = vadd.f32 %v10054_v25, %v9963_v23  ;;  %v10382_v44 = vpop.f32.mrf.mxu1  ;;  %v10061_v25 = vadd.f32 %v14988_v24, %v14981_v35  ;;  %v15476_v24 = vld [vmem:[%s17483_s2 + $0x20] sm:$0xff] }
0x1981   :  { %v14995_v33 = vpop.f32.mrf.mxu0 }
0x1982   :  { %v10144_v23 = vadd.f32 %v14995_v33, %v10061_v25 }
0x1983   :  { %v10136_v53 = vpop.f32.mrf.mxu0 }
0x1984   :  { %v10137_v28 = vadd.f32 %v10136_v53, %v10055_v34  ;;  %v15474_v34 = vld [vmem:[%s17483_s2 + $0x38] sm:$0xff] }
0x1985   :  { %v15030_v59 = vpop.f32.mrf.mxu1 }
0x1986   :  { %v15009_v0 = vpop.f32.mrf.mxu0  ;;  %v10219_v55 = vadd.f32 %v10218_v46, %v10137_v28  ;;  %v10227_v46 = vadd.f32 %v15002_v2, %v10144_v23 }
0x1987   :  { %v10572_v42 = vpop.f32.mrf.mxu1 }
0x1988   :  { %v10303_v54 = vpop.f32.mrf.mxu0  ;;  %v10310_v53 = vadd.f32 %v15009_v0, %v10227_v46 }
0x1989   :  { %v10304_v6 = vadd.f32 %v10303_v54, %v10219_v55 }
0x198a   :  { %v10389_v28 = vadd.f32 %v15016_v11, %v10310_v53 }
0x198b   :  { %v16981_v8 = vadd.f32 %v10382_v44, %v10304_v6 }
0x198d   :  { %v15044_v48 = vpop.f32.mrf.mxu1 }
0x198e   :  { %v15023_v20 = vpop.f32.mrf.mxu0 }
0x198f   :  { %v10579_v47 = vadd.f32 %v15030_v59, %v15023_v20  ;;  %v10736_v45 = vpop.f32.mrf.mxu1 }
0x1990   :  { %v10481_v22 = vpop.f32.mrf.mxu0 }
0x1991   :  { %v10573_v18 = vadd.f32 %v10572_v42, %v10481_v22 }
0x1995   :  { %v15058_v5 = vpop.f32.mrf.mxu1 }
0x1996   :  { %v15037_v16 = vpop.f32.mrf.mxu0 }
0x1997   :  { %v10662_v13 = vadd.f32 %v15037_v16, %v10579_v47  ;;  %v10900_v26 = vpop.f32.mrf.mxu1 }
0x1998   :  { %v10654_v51 = vpop.f32.mrf.mxu0 }
0x1999   :  { %v10655_v1 = vadd.f32 %v10654_v51, %v10573_v18  ;;  %v10745_v36 = vadd.f32 %v15044_v48, %v10662_v13 }
0x199b   :  { %v10737_v4 = vadd.f32 %v10736_v45, %v10655_v1 }
0x199e   :  { %v15051_v58 = vpop.f32.mrf.mxu0 }
0x199f   :  { %v10828_v52 = vadd.f32 %v15051_v58, %v10745_v36 }
0x19a0   :  { %v10821_v56 = vpop.f32.mrf.mxu0 }
0x19a1   :  { %v10907_v7 = vadd.f32 %v15058_v5, %v10828_v52  ;;  %v10822_v12 = vadd.f32 %v10821_v56, %v10737_v4 }
0x19a3   :  { %v10911_v32 = vmul.f32 0.35355338, %v10907_v7  ;;  %v10901_v49 = vadd.f32 %v10900_v26, %v10822_v12 }
0x19a5   :  { %v10910_v61 = vmul.f32 0.35355338, %v10901_v49  ;;  %v10913_v60 = vadd.f32 %v15472_v57, %v10911_v32 }
0x19a7   :  { %v10917_v15 = vsel %vm1102_vm2, %v10913_v60, -inf  ;;  %v10912_v62 = vadd.f32 %v15473_v41, %v10910_v61 }
0x19a8   :  { %10918 = vmax.xlane.f32.xlu1 %v10917_v15 }
0x19a9   :  { %v10914_v10 = vsel %vm1102_vm2, %v10912_v62, -inf }
0x19aa   :  { %10915 = vmax.xlane.f32.xlu0 %v10914_v10 }
0x19b9   :  { %10938 = vrot.lane.b32.xlu1 %v16628_v40, %s15511_s25  ;;  %v15475_v40 = vld [vmem:[%s17483_s2 + $0x28] sm:$0xff] }
0x19bd   :  { %11494 = vrot.lane.b32.xlu1 %v15474_v34, %s15512_s28 }
0x19c1   :  { %11452 = vrot.lane.b32.xlu1 %v16872_v21, %s15513_s29 }
0x19c5   :  { %11454 = vrot.lane.b32.xlu1 %v16870_v14, %s15513_s29 }
0x19c9   :  { %11462 = vrot.lane.b32.xlu1 %v10389_v28, %s15514_s30 }
0x19cd   :  { %11490 = vrot.lane.b32.xlu1 %v15475_v40, %s15512_s28 }
0x19d1   :  { %11488 = vrot.lane.b32.xlu1 %v15476_v24, %s15512_s28 }
0x1a31   :  { %v10919_v21 = vpop.xlane.xlu1 %10918 }
0x1a32   :  { %v10921_v35 = vsub.f32 %v10913_v60, %v10919_v21 }
0x1a33   :  { %v10916_v2 = vpop.xlane.xlu0 %10915 }
0x1a34   :  { %v10924_v33 = vmul.f32 1.442695, %v10921_v35  ;;  %v10920_v14 = vsub.f32 %v10912_v62, %v10916_v2 }
0x1a35   :  { %v10939_v11 = vpop.permute.xlu1 %10938 }
0x1a36   :  { %15437 = vpow2.f32 %v10924_v33  ;;  %v10922_v0 = vmul.f32 1.442695, %v10920_v14  ;;  %v10977_v55 = vand.u32 4294901760, %v10939_v11 }
0x1a38   :  { %15439 = vpow2.f32 %v10922_v0  ;;  %v17010_v54 = vsub.f32 %v10939_v11, %v10977_v55  ;;  %15059 = vmatprep.subr.mxu0 %v10977_v55 }
0x1a39   :  { %15060 = vmatpush3.msra.mxu0 %v10977_v55  ;;  %v17012_v6 = vpop.permute.xlu1 %11494 }
0x1a3a   :  { %v17015_v44 = vand.u32 4294901760, %v17010_v54  ;;  %v17044_v23 = vand.u32 4294901760, %v17012_v6 }
0x1a3c   :  { %v11067_v20 = vsub.f32 %v17010_v54, %v17015_v44  ;;  %v17054_v53 = vsub.f32 %v17012_v6, %v17044_v23 }
0x1a3d   :  { %v11453_v59 = vpop.permute.xlu1 %11452 }
0x1a3e   :  { %v17021_v22 = vsel %vm587_vm1, %v16761_v19, %v11453_v59  ;;  %v11068_v42 = vand.u32 4294901760, %v11067_v20  ;;  %v15477_v19 = vld [vmem:[%s17483_s2 + $0x30] sm:$0xff]  ;;  %v17062_v21 = vand.u32 4294901760, %v17054_v53 }
0x1a40   :  { %15066 = vmatprep.subr.mxu1 %v11068_v42  ;;  %v11623_v33 = vsub.f32 %v17054_v53, %v17062_v21 }
0x1a41   :  { %15067 = vmatpush3.msra.mxu1 %v11068_v42  ;;  %v11455_v16 = vpop.permute.xlu1 %11454 }
0x1a42   :  { %v17025_v47 = vsel %vm587_vm1, %v16759_v9, %v11455_v16 }
0x1a43   :  { %v15438_v48 = vpop.eup %15437 }
0x1a44   :  { %v10929_v51 = vsel %vm1102_vm2, %v15438_v48, 0.0 }
0x1a45   :  { %v15440_v18 = vpop.eup %15439  ;;  %10930 = vadd.xlane.f32.xlu0 %v10929_v51  ;;  %v17056_v28 = vpop.permute.xlu1 %11462 }
0x1a46   :  { %v10926_v13 = vsel %vm1102_vm2, %v15440_v18, 0.0 }
0x1a49   :  { %10927 = vadd.xlane.f32.xlu0 %v10926_v13  ;;  %v11491_v24 = vpop.permute.xlu1 %11490 }
0x1a4a   :  { %v17067_v2 = vand.u32 4294901760, %v11491_v24 }
0x1a4c   :  { %v17074_v11 = vsub.f32 %v11491_v24, %v17067_v2  ;;  %v11477_v24 = vsel %vm1102_vm2, %v17025_v47, %v17056_v28 }
0x1a4d   :  { %v11489_v0 = vpop.permute.xlu1 %11488 }
0x1a4e   :  { %v17078_v6 = vand.u32 4294901760, %v11489_v0 }
0x1a50   :  { %v17084_v20 = vsub.f32 %v11489_v0, %v17078_v6 }
0x1a52   :  { %v17091_v16 = vand.u32 4294901760, %v17084_v20 }
0x1a5f   :  { %10936 = vrot.lane.b32.xlu0 %v16630_v17, %s15511_s25 }
0x1a63   :  { %11492 = vrot.lane.b32.xlu0 %v15477_v19, %s15512_s28 }
0x1a67   :  { %11460 = vrot.lane.b32.xlu0 %v16981_v8, %s15514_s30 }
0x1ace   :  { %v10931_v9 = vpop.xlane.xlu0 %10930 }
0x1acf   :  { %15441 = vrcp.f32 %v10931_v9 }
0x1ad2   :  { %v10928_v1 = vpop.xlane.xlu0 %10927 }
0x1ad3   :  { %15443 = vrcp.f32 %v10928_v1 }
0x1ad6   :  { %v10937_v45 = vpop.permute.xlu0 %10936 }
0x1ad7   :  { %v10980_v36 = vand.u32 4294901760, %v10937_v45 }
0x1ad9   :  { %v11072_v5 = vsub.f32 %v10937_v45, %v10980_v36  ;;  %15061 = vmatprep.subr.mxu0 %v10980_v36 }
0x1ada   :  { %15062 = vmatpush3.msra.mxu0 %v10980_v36  ;;  %v11493_v34 = vpop.permute.xlu0 %11492 }
0x1adb   :  { %15073 = vmatprep.subr.mxu0 %v17010_v54  ;;  %v11073_v17 = vand.u32 4294901760, %v11072_v5  ;;  %v17046_v46 = vand.u32 4294901760, %v11493_v34 }
0x1adc   :  { %v15442_v58 = vpop.eup %15441 }
0x1add   :  { %v10935_v52 = vmul.f32 %v15442_v58, %v15438_v48  ;;  %v11074_v4 = vsub.f32 %v11072_v5, %v11073_v17  ;;  %v17059_v40 = vsub.f32 %v11493_v34, %v17046_v46  ;;  %v11644_v48 = vsub.f32 %v17084_v20, %v17091_v16 }
0x1adf   :  { %v11075_v56 = vand.u32 4294901760, %v11074_v4  ;;  %v10946_v7 = vsel %vm1102_vm2, %v10935_v52, 0  ;;  %v17065_v35 = vand.u32 4294901760, %v17059_v40  ;;  %v11645_v51 = vand.u32 4294901760, %v11644_v48 }
0x1ae0   :  { %v15444_v12 = vpop.eup %15443  ;;  %v11025_v8 = vand.u32 4294901760, %v10946_v7 }
0x1ae1   :  { %15068 = vmatprep.subr.mxu1 %v11075_v56  ;;  %v10933_v26 = vmul.f32 %v15444_v12, %v15440_v18  ;;  %v11630_v14 = vsub.f32 %v17059_v40, %v17065_v35 }
0x1ae2   :  { %15069 = vmatpush3.msra.mxu1 %v11075_v56  ;;  %v11026_v32 = vsub.f32 %v10946_v7, %v11025_v8 }
0x1ae3   :  { %15080 = vmatprep.subr.mxu1 %v10977_v55  ;;  %v10943_v49 = vsel %vm1102_vm2, %v10933_v26, 0 }
0x1ae4   :  { %v11015_v61 = vand.u32 4294901760, %v10943_v49  ;;  %v11027_v57 = vand.u32 4294901760, %v11026_v32 }
0x1ae6   :  { %15070 = vmatprep.mubr.f32.mxu1 %v11015_v61  ;;  %v11016_v60 = vsub.f32 %v10943_v49, %v11015_v61  ;;  %v11028_v41 = vsub.f32 %v11026_v32, %v11027_v57 }
0x1ae7   :  { %15071 = vmatmul.mubr.f32.vlgmr.msra.gmra.mxu1 %v11025_v8 }
0x1ae8   :  { %15081 = vmatpush3.msra.mxu1 %v10977_v55  ;;  %v11017_v15 = vand.u32 4294901760, %v11016_v60  ;;  %v11029_v25 = vand.u32 4294901760, %v11028_v41 }
0x1ae9   :  { %15082 = vmatprep.subr.mxu1 %v10980_v36 }
0x1aea   :  { %15083 = vmatpush3.msra.mxu1 %v10980_v36  ;;  %15084 = vmatprep.mubr.f32.mxu1 %v11017_v15  ;;  %v11018_v62 = vsub.f32 %v11016_v60, %v11017_v15  ;;  %v11461_v15 = vpop.permute.xlu0 %11460 }
0x1aeb   :  { %15094 = vmatprep.subr.mxu1 %v10977_v55  ;;  %15085 = vmatmul.mubr.f32.vlgmr.msra.gmra.mxu1 %v11027_v57  ;;  %v11476_v41 = vsel %vm1102_vm2, %v17021_v22, %v11461_v15 }
0x1aec   :  { %15095 = vmatpush3.msra.mxu1 %v10977_v55  ;;  %15098 = vmatprep.mubr.f32.mxu1 %v11015_v61  ;;  %v11019_v10 = vand.u32 4294901760, %v11018_v62  ;;  %v11624_v55 = vand.u32 4294901760, %v11623_v33 }
0x1aed   :  { %15096 = vmatprep.subr.mxu1 %v10980_v36 }
0x1aee   :  { %15097 = vmatpush3.msra.mxu1 %v10980_v36  ;;  %15063 = vmatprep.mubr.f32.mxu0 %v11019_v10 }
0x1aef   :  { %15064 = vmatmul.mubr.f32.vlgmr.msra.gmra.mxu0 %v11029_v25  ;;  %15099 = vmatmul.mubr.f32.vlgmr.msra.gmra.mxu1 %v11025_v8 }
0x1af0   :  { %15074 = vmatpush3.msra.mxu0 %v17010_v54  ;;  %15077 = vmatprep.mubr.f32.mxu0 %v11016_v60  ;;  %v11631_v54 = vand.u32 4294901760, %v11630_v14 }
0x1af1   :  { %15075 = vmatprep.subr.mxu0 %v11072_v5  ;;  %15112 = vmatprep.subr.mxu1 %v11624_v55 }
0x1af2   :  { %15076 = vmatpush3.msra.mxu0 %v11072_v5  ;;  %15113 = vmatpush3.msra.mxu1 %v11624_v55 }
0x1af3   :  { %15087 = vmatprep.subr.mxu0 %v17015_v44  ;;  %15078 = vmatmul.mubr.f32.vlgmr.msra.gmra.mxu0 %v11026_v32 }
0x1af4   :  { %15088 = vmatpush3.msra.mxu0 %v17015_v44  ;;  %15091 = vmatprep.mubr.f32.mxu0 %v11015_v61  ;;  %v17081_v44 = vand.u32 4294901760, %v17074_v11 }
0x1af5   :  { %15089 = vmatprep.subr.mxu0 %v11073_v17  ;;  %15114 = vmatprep.subr.mxu1 %v11631_v54 }
0x1af6   :  { %15090 = vmatpush3.msra.mxu0 %v11073_v17  ;;  %v11637_v59 = vsub.f32 %v17074_v11, %v17081_v44  ;;  %15115 = vmatpush3.msra.mxu1 %v11631_v54 }
0x1af7   :  { %15092 = vmatmul.mubr.f32.vlgmr.msra.gmra.mxu0 %v11025_v8  ;;  %15101 = vmatprep.subr.mxu0 %v17044_v23 }
0x1af8   :  { %15102 = vmatpush3.msra.mxu0 %v17044_v23  ;;  %v11638_v42 = vand.u32 4294901760, %v11637_v59 }
0x1af9   :  { %15103 = vmatprep.subr.mxu0 %v17046_v46 }
0x1afa   :  { %15104 = vmatpush3.msra.mxu0 %v17046_v46  ;;  %15116 = vmatprep.subr.mxu1 %v11638_v42 }
0x1afb   :  { %15105 = vmatprep.subr.mxu0 %v17067_v2  ;;  %15117 = vmatpush3.msra.mxu1 %v11638_v42 }
0x1afc   :  { %15106 = vmatpush3.msra.mxu0 %v17067_v2  ;;  %15118 = vmatprep.subr.mxu1 %v11645_v51 }
0x1afd   :  { %15107 = vmatprep.subr.mxu0 %v17078_v6  ;;  %15119 = vmatpush3.msra.mxu1 %v11645_v51 }
0x1afe   :  { %15108 = vmatpush3.msra.mxu0 %v17078_v6  ;;  %15134 = vmatprep.subr.mxu1 %v17044_v23 }
0x1aff   :  { %15123 = vmatprep.subr.mxu0 %v17054_v53 }
0x1ba7   :  { %v15072_v18 = vpop.f32.mrf.mxu1 }
0x1ba9   :  { %v11112_v13 = vpop.f32.mrf.mxu1 }
0x1bab   :  { %v15086_v19 = vpop.f32.mrf.mxu1 }
0x1bad   :  { %v11276_v36 = vpop.f32.mrf.mxu1 }
0x1baf   :  { %v15065_v9 = vpop.f32.mrf.mxu0  ;;  %v15100_v56 = vpop.f32.mrf.mxu1 }
0x1bb0   :  { %v11119_v45 = vadd.f32 %v15072_v18, %v15065_v9 }
0x1bb1   :  { %v11021_v1 = vpop.f32.mrf.mxu0  ;;  %v11440_v49 = vpop.f32.mrf.mxu1 }
0x1bb2   :  { %v11113_v17 = vadd.f32 %v11112_v13, %v11021_v1 }
0x1bb3   :  { %v15079_v5 = vpop.f32.mrf.mxu0 }
0x1bb4   :  { %v11202_v58 = vadd.f32 %v15079_v5, %v11119_v45 }
0x1bb5   :  { %v11194_v52 = vpop.f32.mrf.mxu0 }
0x1bb6   :  { %v11195_v4 = vadd.f32 %v11194_v52, %v11113_v17  ;;  %v11285_v12 = vadd.f32 %v15086_v19, %v11202_v58 }
0x1bb7   :  { %v15093_v7 = vpop.f32.mrf.mxu0 }
0x1bb8   :  { %v11277_v8 = vadd.f32 %v11276_v36, %v11195_v4  ;;  %v11368_v61 = vadd.f32 %v15093_v7, %v11285_v12 }
0x1bb9   :  { %v11361_v26 = vpop.f32.mrf.mxu0 }
0x1bba   :  { %v11362_v32 = vadd.f32 %v11361_v26, %v11277_v8  ;;  %v11447_v60 = vadd.f32 %v15100_v56, %v11368_v61 }
0x1bbc   :  { %v11441_v57 = vadd.f32 %v11440_v49, %v11362_v32 }
0x1bbe   :  { %11468 = vrot.lane.b32.xlu0 %v11441_v57, %s15515_s22 }
0x1bc2   :  { %11470 = vrot.lane.b32.xlu0 %v11447_v60, %s15515_s22 }
0x1c30   :  { %v11469_v62 = vpop.permute.xlu0 %11468 }
0x1c31   :  { %v11478_v10 = vsel %vm4841_vm3, %v11476_v41, %v11469_v62 }
0x1c32   :  { %v11501_v25 = vsel %vm46_vm0, %v11478_v10, 0  ;;  %v13321_v10 = vld [vmem:[%s17484_s3 + $0x78] sm:$0xff] }
0x1c33   :  { %v11575_v34 = vand.u32 4294901760, %v11501_v25 }
0x1c34   :  { %v11471_v33 = vpop.permute.xlu0 %11470 }
0x1c35   :  { %v11576_v14 = vsub.f32 %v11501_v25, %v11575_v34  ;;  %v11479_v0 = vsel %vm4841_vm3, %v11477_v24, %v11471_v33  ;;  %15120 = vmatprep.mubr.f32.mxu1 %v11575_v34  ;;  %v17159_v25 = vand.u32 4294901760, %v13321_v10 }
0x1c36   :  { %v11504_v55 = vsel %vm46_vm0, %v11479_v0, 0 }
0x1c37   :  { %v11585_v54 = vand.u32 4294901760, %v11504_v55  ;;  %v11577_v59 = vand.u32 4294901760, %v11576_v14  ;;  %v17165_v24 = vsub.f32 %v13321_v10, %v17159_v25  ;;  %v13327_v10 = vld [vmem:[%s17484_s3 + $0xa8] sm:$0xff] }
0x1c39   :  { %v11586_v22 = vsub.f32 %v11504_v55, %v11585_v54  ;;  %15121 = vmatmul.mubr.f32.vlgmr.msra.gmra.mxu1 %v11585_v54  ;;  %v11578_v42 = vsub.f32 %v11576_v14, %v11577_v59  ;;  %v17175_v0 = vand.u32 4294901760, %v17165_v24 }
0x1c3a   :  { %15135 = vmatpush3.msra.mxu1 %v17044_v23  ;;  %15142 = vmatprep.mubr.f32.mxu1 %v11577_v59  ;;  %v13318_v59 = vld [vmem:[%s17484_s3 + $0x60] sm:$0xff] }
0x1c3b   :  { %v11587_v48 = vand.u32 4294901760, %v11586_v22  ;;  %15136 = vmatprep.subr.mxu1 %v17046_v46  ;;  %v11579_v51 = vand.u32 4294901760, %v11578_v42 }
0x1c3c   :  { %15137 = vmatpush3.msra.mxu1 %v17046_v46 }
0x1c3d   :  { %v11588_v47 = vsub.f32 %v11586_v22, %v11587_v48  ;;  %15138 = vmatprep.subr.mxu1 %v17067_v2  ;;  %15109 = vmatprep.mubr.f32.mxu0 %v11579_v51  ;;  %v17196_v51 = vand.u32 4294901760, %v13318_v59 }
0x1c3e   :  { %15139 = vmatpush3.msra.mxu1 %v17067_v2 }
0x1c3f   :  { %v11589_v28 = vand.u32 4294901760, %v11588_v47  ;;  %15140 = vmatprep.subr.mxu1 %v17078_v6 }
0x1c40   :  { %15141 = vmatpush3.msra.mxu1 %v17078_v6 }
0x1c41   :  { %15143 = vmatmul.mubr.f32.vlgmr.msra.gmra.mxu1 %v11587_v48  ;;  %15156 = vmatprep.subr.mxu1 %v17044_v23 }
0x1c42   :  { %15110 = vmatmul.mubr.f32.vlgmr.msra.gmra.mxu0 %v11589_v28  ;;  %15157 = vmatpush3.msra.mxu1 %v17044_v23 }
0x1c43   :  { %15124 = vmatpush3.msra.mxu0 %v17054_v53  ;;  %15164 = vmatprep.mubr.f32.mxu1 %v11575_v34 }
0x1c44   :  { %15125 = vmatprep.subr.mxu0 %v17059_v40  ;;  %15131 = vmatprep.mubr.f32.mxu0 %v11576_v14  ;;  %v13319_v14 = vld [vmem:[%s17484_s3 + $0x68] sm:$0xff] }
0x1c45   :  { %15158 = vmatprep.subr.mxu1 %v17046_v46  ;;  %15126 = vmatpush3.msra.mxu0 %v17059_v40 }
0x1c46   :  { %15159 = vmatpush3.msra.mxu1 %v17046_v46  ;;  %15127 = vmatprep.subr.mxu0 %v17074_v11  ;;  %v17141_v46 = vld [vmem:[%s17485_s4 + $0x8] sm:$0xff] }
0x1c47   :  { %15160 = vmatprep.subr.mxu1 %v17067_v2  ;;  %15128 = vmatpush3.msra.mxu0 %v17074_v11  ;;  %v11483_v53 = vrot.slane %v17141_v46, %v4846_v50 }
0x1c48   :  { %15161 = vmatpush3.msra.mxu1 %v17067_v2  ;;  %15129 = vmatprep.subr.mxu0 %v17084_v20 }
0x1c49   :  { %15162 = vmatprep.subr.mxu1 %v17078_v6  ;;  %15130 = vmatpush3.msra.mxu0 %v17084_v20 }
0x1c4a   :  { %15163 = vmatpush3.msra.mxu1 %v17078_v6  ;;  %15132 = vmatmul.mubr.f32.vlgmr.msra.gmra.mxu0 %v11586_v22  ;;  %v12201_v22 = vsub.f32 %v17165_v24, %v17175_v0 }
0x1c4b   :  { %15145 = vmatprep.subr.mxu0 %v17062_v21  ;;  %15165 = vmatmul.mubr.f32.vlgmr.msra.gmra.mxu1 %v11585_v54 }
0x1c4c   :  { %15146 = vmatpush3.msra.mxu0 %v17062_v21  ;;  %15153 = vmatprep.mubr.f32.mxu0 %v11575_v34  ;;  %v13320_v34 = vld [vmem:[%s17484_s3 + $0x70] sm:$0xff]  ;;  %v12202_v47 = vand.u32 4294901760, %v12201_v22 }
0x1c4d   :  { %15147 = vmatprep.subr.mxu0 %v17065_v35  ;;  %v17167_v33 = vand.u32 4294901760, %v13320_v34 }
0x1c4e   :  { %15148 = vmatpush3.msra.mxu0 %v17065_v35  ;;  %15178 = vmatprep.subr.mxu1 %v12202_v47 }
0x1c4f   :  { %15149 = vmatprep.subr.mxu0 %v17081_v44  ;;  %v17178_v55 = vsub.f32 %v13320_v34, %v17167_v33  ;;  %15179 = vmatpush3.msra.mxu1 %v12202_v47 }
0x1c50   :  { %15150 = vmatpush3.msra.mxu0 %v17081_v44 }
0x1c51   :  { %15151 = vmatprep.subr.mxu0 %v17091_v16  ;;  %v17190_v42 = vand.u32 4294901760, %v17178_v55 }
0x1c52   :  { %15152 = vmatpush3.msra.mxu0 %v17091_v16 }
0x1c53   :  { %15154 = vmatmul.mubr.f32.vlgmr.msra.gmra.mxu0 %v11585_v54  ;;  %15167 = vmatprep.subr.mxu0 %v17159_v25  ;;  %v17180_v54 = vand.u32 4294901760, %v13319_v14  ;;  %v12208_v28 = vsub.f32 %v17178_v55, %v17190_v42 }
0x1c54   :  { %15168 = vmatpush3.msra.mxu0 %v17159_v25 }
0x1c55   :  { %15169 = vmatprep.subr.mxu0 %v17167_v33  ;;  %v17193_v48 = vsub.f32 %v13319_v14, %v17180_v54 }
0x1c56   :  { %15170 = vmatpush3.msra.mxu0 %v17167_v33 }
0x1c57   :  { %15171 = vmatprep.subr.mxu0 %v17180_v54 }
0x1c58   :  { %15172 = vmatpush3.msra.mxu0 %v17180_v54 }
0x1c59   :  { %15173 = vmatprep.subr.mxu0 %v17196_v51 }
0x1c5a   :  { %15174 = vmatpush3.msra.mxu0 %v17196_v51 }
0x1c5b   :  { %15189 = vmatprep.subr.mxu0 %v17165_v24 }
0x1cf9   :  { %v15122_v40 = vpop.f32.mrf.mxu1 }
0x1cfb   :  { %v11682_v6 = vpop.f32.mrf.mxu1 }
0x1d01   :  { %v15144_v20 = vpop.f32.mrf.mxu1 }
0x1d02   :  { %v15111_v23 = vpop.f32.mrf.mxu0 }
0x1d03   :  { %v11592_v35 = vadd.f32 %v15111_v23, %v11483_v53  ;;  %v11852_v9 = vpop.f32.mrf.mxu1  ;;  %v17202_v23 = vand.u32 4294901760, %v17193_v48 }
0x1d04   :  { %v11581_v21 = vpop.f32.mrf.mxu0 }
0x1d05   :  { %v11582_v2 = vadd.f32 %v11581_v21, %v11483_v53  ;;  %v11689_v44 = vadd.f32 %v15122_v40, %v11592_v35  ;;  %v17205_v53 = vsub.f32 %v13318_v59, %v17196_v51  ;;  %v12209_v40 = vand.u32 4294901760, %v12208_v28  ;;  %v13325_v59 = vld [vmem:[%s17484_s3 + $0x98] sm:$0xff]  ;;  %v13324_v28 = vld [vmem:[%s17484_s3 + $0x90] sm:$0xff] }
0x1d06   :  { %v12215_v21 = vsub.f32 %v17193_v48, %v17202_v23  ;;  %v17318_v47 = vand.u32 4294901760, %v13325_v59 }
0x1d07   :  { %v11683_v13 = vadd.f32 %v11682_v6, %v11582_v2  ;;  %v17212_v35 = vand.u32 4294901760, %v17205_v53  ;;  %15180 = vmatprep.subr.mxu1 %v12209_v40 }
0x1d08   :  { %v12216_v2 = vand.u32 4294901760, %v12215_v21  ;;  %15181 = vmatpush3.msra.mxu1 %v12209_v40  ;;  %v17329_v21 = vand.u32 4294901760, %v13324_v28 }
0x1d0a   :  { %v15133_v11 = vpop.f32.mrf.mxu0  ;;  %15182 = vmatprep.subr.mxu1 %v12216_v2 }
0x1d0b   :  { %v11776_v18 = vadd.f32 %v15133_v11, %v11689_v44  ;;  %v15166_v45 = vpop.f32.mrf.mxu1  ;;  %v12222_v11 = vsub.f32 %v17205_v53, %v17212_v35  ;;  %15183 = vmatpush3.msra.mxu1 %v12216_v2  ;;  %v13323_v2 = vld [vmem:[%s17484_s3 + $0x88] sm:$0xff] }
0x1d0c   :  { %v11768_v16 = vpop.f32.mrf.mxu0 }
0x1d0d   :  { %v11769_v19 = vadd.f32 %v11768_v16, %v11683_v13  ;;  %v11861_v1 = vadd.f32 %v15144_v20, %v11776_v18  ;;  %v12024_v4 = vpop.f32.mrf.mxu1  ;;  %v12223_v6 = vand.u32 4294901760, %v12222_v11 }
0x1d0f   :  { %v11853_v17 = vadd.f32 %v11852_v9, %v11769_v19  ;;  %15184 = vmatprep.subr.mxu1 %v12223_v6  ;;  %v12065_v9 = vrot.slane %v17141_v46, %v5429_v63 }
0x1d10   :  { %15185 = vmatpush3.msra.mxu1 %v12223_v6 }
0x1d11   :  { %15200 = vmatprep.subr.mxu1 %v17159_v25 }
0x1d13   :  { %v15155_v36 = vpop.f32.mrf.mxu0 }
0x1d14   :  { %v11950_v5 = vadd.f32 %v15155_v36, %v11861_v1  ;;  %v12071_v36 = vrot.slane %v17141_v46, %v5435_v3 }
0x1d15   :  { %v11943_v58 = vpop.f32.mrf.mxu0 }
0x1d16   :  { %v12031_v50 = vadd.f32 %v15166_v45, %v11950_v5  ;;  %v11944_v52 = vadd.f32 %v11943_v58, %v11853_v17 }
0x1d18   :  { %v12025_v56 = vadd.f32 %v12024_v4, %v11944_v52  ;;  %v12035_v7 = vadd.f32 %v12031_v50, %v16585_v30 }
0x1d1a   :  { %v12039_v12 = vsel %vm46_vm0, %v12035_v7, 0.0  ;;  %v12034_v8 = vadd.f32 %v12025_v56, %v16587_v31 }
0x1d1b   :  { %12040 = vadd.xlane.f32.xlu1 %v12039_v12 }
0x1d1c   :  { %v12036_v26 = vsel %vm46_vm0, %v12034_v8, 0.0 }
0x1d1d   :  { %12037 = vadd.xlane.f32.xlu0 %v12036_v26 }
0x1da4   :  { %v12041_v32 = vpop.xlane.xlu1 %12040 }
0x1da5   :  { %v12043_v49 = vmul.f32 0.03125, %v12041_v32 }
0x1da6   :  { %v12038_v61 = vpop.xlane.xlu0 %12037 }
0x1da7   :  { %v12042_v57 = vmul.f32 0.03125, %v12038_v61  ;;  %v17150_v60 = vsub.f32 %v12035_v7, %v12043_v49 }
0x1da9   :  { %v12044_v15 = vsub.f32 %v12034_v8, %v12042_v57  ;;  %v12047_v30 = vmul.f32 %v17150_v60, %v17150_v60 }
0x1dab   :  { %v12046_v41 = vmul.f32 %v12044_v15, %v12044_v15  ;;  %v12051_v31 = vsel %vm46_vm0, %v12047_v30, 0.0 }
0x1dad   :  { %v12048_v62 = vsel %vm46_vm0, %v12046_v41, 0.0 }
0x1dae   :  { %12049 = vadd.xlane.f32.xlu0 %v12048_v62  ;;  %v13328_v62 = vld [vmem:[%s17484_s3 + $0xb0] sm:$0xff] }
0x1db2   :  { %12052 = vadd.xlane.f32.xlu0 %v12051_v31  ;;  %v17274_v31 = vand.u32 4294901760, %v13328_v62 }
0x1db4   :  { %v17285_v34 = vsub.f32 %v13328_v62, %v17274_v31 }
0x1e37   :  { %v12050_v44 = vpop.xlane.xlu0 %12049 }
0x1e38   :  { %v12054_v20 = vmul.f32 0.03125, %v12050_v44  ;;  %v17341_v44 = vsub.f32 %v13324_v28, %v17329_v21 }
0x1e3a   :  { %v12056_v16 = vadd.f32 1e-05, %v12054_v20  ;;  %v17343_v20 = vand.u32 4294901760, %v13323_v2 }
0x1e3b   :  { %v12053_v18 = vpop.xlane.xlu0 %12052 }
0x1e3c   :  { %15445 = vrsqrt.f32 %v12056_v16  ;;  %v12055_v13 = vmul.f32 0.03125, %v12053_v18  ;;  %v13322_v18 = vld [vmem:[%s17484_s3 + $0x80] sm:$0xff] }
0x1e3e   :  { %v12057_v19 = vadd.f32 1e-05, %v12055_v13 }
0x1e40   :  { %15447 = vrsqrt.f32 %v12057_v19  ;;  %v17354_v19 = vand.u32 4294901760, %v17341_v44 }
0x1e49   :  { %v15446_v1 = vpop.eup %15445 }
0x1e4a   :  { %v12060_v45 = vmul.f32 %v15446_v1, %v12044_v15  ;;  %v13329_v15 = vld [vmem:[%s17484_s3 + $0xb8] sm:$0xff]  ;;  %v17359_v1 = vand.u32 4294901760, %v13322_v18 }
0x1e4b   :  { %v17266_v41 = vand.u32 4294901760, %v13329_v15 }
0x1e4c   :  { %v12066_v5 = vmul.f32 %v12065_v9, %v12060_v45 }
0x1e4d   :  { %v15448_v17 = vpop.eup %15447  ;;  %v17272_v30 = vsub.f32 %v13329_v15, %v17266_v41 }
0x1e4e   :  { %v12061_v58 = vmul.f32 %v15448_v17, %v17150_v60  ;;  %v17225_v50 = vadd.f32 %v12071_v36, %v12066_v5  ;;  %v17371_v17 = vsub.f32 %v13322_v18, %v17359_v1 }
0x1e50   :  { %v12067_v52 = vmul.f32 %v12065_v9, %v12061_v58  ;;  %v12079_v4 = vsel %vm46_vm0, %v17225_v50, 0  ;;  %v17357_v9 = vsub.f32 %v13323_v2, %v17343_v20 }
0x1e51   :  { %v12153_v56 = vand.u32 4294901760, %v12079_v4 }
0x1e52   :  { %v17229_v7 = vadd.f32 %v12071_v36, %v12067_v52  ;;  %v12824_v36 = vsub.f32 %v17341_v44, %v17354_v19  ;;  %v17368_v5 = vand.u32 4294901760, %v17357_v9 }
0x1e53   :  { %15186 = vmatprep.mubr.f32.mxu1 %v12153_v56  ;;  %v12154_v63 = vsub.f32 %v12079_v4, %v12153_v56 }
0x1e54   :  { %v12082_v12 = vsel %vm46_vm0, %v17229_v7, 0  ;;  %v12825_v52 = vand.u32 4294901760, %v12824_v36  ;;  %v12831_v4 = vsub.f32 %v17357_v9, %v17368_v5 }
0x1e55   :  { %v12163_v8 = vand.u32 4294901760, %v12082_v12  ;;  %v12155_v3 = vand.u32 4294901760, %v12154_v63 }
0x1e57   :  { %v12164_v26 = vsub.f32 %v12082_v12, %v12163_v8  ;;  %15187 = vmatmul.mubr.f32.vlgmr.msra.gmra.mxu1 %v12163_v8  ;;  %v12156_v32 = vsub.f32 %v12154_v63, %v12155_v3 }
0x1e58   :  { %15201 = vmatpush3.msra.mxu1 %v17159_v25  ;;  %15208 = vmatprep.mubr.f32.mxu1 %v12155_v3 }
0x1e59   :  { %15202 = vmatprep.subr.mxu1 %v17167_v33  ;;  %v12157_v49 = vand.u32 4294901760, %v12156_v32  ;;  %v12165_v61 = vand.u32 4294901760, %v12164_v26 }
0x1e5a   :  { %15203 = vmatpush3.msra.mxu1 %v17167_v33 }
0x1e5b   :  { %15204 = vmatprep.subr.mxu1 %v17180_v54  ;;  %15175 = vmatprep.mubr.f32.mxu0 %v12157_v49  ;;  %v12166_v57 = vsub.f32 %v12164_v26, %v12165_v61 }
0x1e5c   :  { %15205 = vmatpush3.msra.mxu1 %v17180_v54 }
0x1e5d   :  { %15206 = vmatprep.subr.mxu1 %v17196_v51  ;;  %v12167_v60 = vand.u32 4294901760, %v12166_v57 }
0x1e5e   :  { %15207 = vmatpush3.msra.mxu1 %v17196_v51 }
0x1e5f   :  { %15209 = vmatmul.mubr.f32.vlgmr.msra.gmra.mxu1 %v12165_v61  ;;  %15222 = vmatprep.subr.mxu1 %v17159_v25 }
0x1e60   :  { %15176 = vmatmul.mubr.f32.vlgmr.msra.gmra.mxu0 %v12167_v60  ;;  %15223 = vmatpush3.msra.mxu1 %v17159_v25  ;;  %v17282_v25 = vand.u32 4294901760, %v17272_v30 }
0x1e61   :  { %15190 = vmatpush3.msra.mxu0 %v17165_v24  ;;  %15230 = vmatprep.mubr.f32.mxu1 %v12153_v56  ;;  %v17287_v24 = vand.u32 4294901760, %v13327_v10 }
0x1e62   :  { %15191 = vmatprep.subr.mxu0 %v17178_v55  ;;  %15197 = vmatprep.mubr.f32.mxu0 %v12154_v63  ;;  %v12789_v14 = vsub.f32 %v17272_v30, %v17282_v25  ;;  %v12832_v63 = vand.u32 4294901760, %v12831_v4 }
0x1e63   :  { %15224 = vmatprep.subr.mxu1 %v17167_v33  ;;  %15192 = vmatpush3.msra.mxu0 %v17178_v55  ;;  %v17300_v55 = vsub.f32 %v13327_v10, %v17287_v24 }
0x1e64   :  { %15225 = vmatpush3.msra.mxu1 %v17167_v33  ;;  %15193 = vmatprep.subr.mxu0 %v17193_v48  ;;  %v13326_v33 = vld [vmem:[%s17484_s3 + $0xa0] sm:$0xff]  ;;  %v12790_v22 = vand.u32 4294901760, %v12789_v14  ;;  %s15517_s3 = smov [#allocation2]  }
0x1e65   :  { %15226 = vmatprep.subr.mxu1 %v17180_v54  ;;  %15194 = vmatpush3.msra.mxu0 %v17193_v48  ;;  %v17312_v48 = vand.u32 4294901760, %v17300_v55  ;;  %s13303_s21 = sshll.u32 %s15517_s3, 4  ;;  %s13304_s21 = int_to_ptr.vmem [resolvable:$true] %s13303_s21 }
0x1e66   :  { %15227 = vmatpush3.msra.mxu1 %v17180_v54  ;;  %15195 = vmatprep.subr.mxu0 %v17205_v53  ;;  %v17302_v54 = vand.u32 4294901760, %v13326_v33  ;;  %s15479_s23 = scalar_lea.vmem %s13304_s21, 256  ;;  %p15484_p1 = scmp.lt.s32.totalorder %s13304_s21, %s13304_s21 }
0x1e67   :  { %15228 = vmatprep.subr.mxu1 %v17196_v51  ;;  %15196 = vmatpush3.msra.mxu0 %v17205_v53  ;;  %v12803_v53 = vsub.f32 %v17300_v55, %v17312_v48  ;;  %p15480_p0 = scmp.ne.s32.totalorder %s13304_s21, %s15479_s23  ;;  %p15485_p2 = scmp.lt.s32.totalorder %s15479_s23, %s15479_s23 }
0x1e68   :  { %15229 = vmatpush3.msra.mxu1 %v17196_v51  ;;  %15198 = vmatmul.mubr.f32.vlgmr.msra.gmra.mxu0 %v12164_v26  ;;  %v17315_v51 = vsub.f32 %v13326_v33, %v17302_v54  ;;  %v12077_v26 = vrot.slane %v17141_v46, %v5441_v27 }
0x1e69   :  { %15211 = vmatprep.subr.mxu0 %v17175_v0  ;;  %15231 = vmatmul.mubr.f32.vlgmr.msra.gmra.mxu1 %v12163_v8  ;;  %v12804_v11 = vand.u32 4294901760, %v12803_v53  ;;  %p15486_p3 = por %p15485_p2, %p15484_p1 }
0x1e6a   :  { %15212 = vmatpush3.msra.mxu0 %v17175_v0  ;;  %15219 = vmatprep.mubr.f32.mxu0 %v12153_v56  ;;  %v17297_v0 = vand.u32 4294901760, %v17285_v34  ;;  %v17327_v40 = vand.u32 4294901760, %v17315_v51  ;;  %v17378_v56 = vand.u32 4294901760, %v17371_v17 }
0x1e6b   :  { %15213 = vmatprep.subr.mxu0 %v17190_v42  ;;  %15252 = vmatprep.subr.mxu1 %v12790_v22  ;;  %p15487_p4 = pnand %p15486_p3, %p15480_p0 }
0x1e6c   :  { %15214 = vmatpush3.msra.mxu0 %v17190_v42  ;;  %v12796_v42 = vsub.f32 %v17285_v34, %v17297_v0  ;;  %15253 = vmatpush3.msra.mxu1 %v12790_v22  ;;  %v12810_v6 = vsub.f32 %v17315_v51, %v17327_v40  ;;  %v12838_v12 = vsub.f32 %v17371_v17, %v17378_v56 }
0x1e6d   :  { %15215 = vmatprep.subr.mxu0 %v17202_v23 }
0x1e6e   :  { %15216 = vmatpush3.msra.mxu0 %v17202_v23  ;;  %v12797_v23 = vand.u32 4294901760, %v12796_v42  ;;  %v12811_v13 = vand.u32 4294901760, %v12810_v6 }
0x1e6f   :  { %15217 = vmatprep.subr.mxu0 %v17212_v35 }
0x1e70   :  { %15218 = vmatpush3.msra.mxu0 %v17212_v35  ;;  %v17332_v35 = vsub.f32 %v13325_v59, %v17318_v47  ;;  %15254 = vmatprep.subr.mxu1 %v12797_v23 }
0x1e71   :  { %15220 = vmatmul.mubr.f32.vlgmr.msra.gmra.mxu0 %v12163_v8  ;;  %15233 = vmatprep.subr.mxu0 %v17266_v41  ;;  %v12839_v8 = vand.u32 4294901760, %v12838_v12 }
0x1e72   :  { %15234 = vmatpush3.msra.mxu0 %v17266_v41  ;;  %15255 = vmatpush3.msra.mxu1 %v12797_v23  ;;  %v17347_v16 = vand.u32 4294901760, %v17332_v35 }
0x1e73   :  { %15235 = vmatprep.subr.mxu0 %v17274_v31  ;;  %15256 = vmatprep.subr.mxu1 %v12804_v11 }
0x1e74   :  { %15236 = vmatpush3.msra.mxu0 %v17274_v31  ;;  %15257 = vmatpush3.msra.mxu1 %v12804_v11  ;;  %v12817_v45 = vsub.f32 %v17332_v35, %v17347_v16 }
0x1e75   :  { %15237 = vmatprep.subr.mxu0 %v17287_v24  ;;  %15258 = vmatprep.subr.mxu1 %v12811_v13 }
0x1e76   :  { %15238 = vmatpush3.msra.mxu0 %v17287_v24  ;;  %15259 = vmatpush3.msra.mxu1 %v12811_v13  ;;  %v12818_v58 = vand.u32 4294901760, %v12817_v45 }
0x1e77   :  { %15239 = vmatprep.subr.mxu0 %v17302_v54 }
0x1e78   :  { %15240 = vmatpush3.msra.mxu0 %v17302_v54  ;;  %15260 = vmatprep.subr.mxu1 %v12818_v58 }
0x1e79   :  { %15241 = vmatprep.subr.mxu0 %v17318_v47  ;;  %15261 = vmatpush3.msra.mxu1 %v12818_v58 }
0x1e7a   :  { %15242 = vmatpush3.msra.mxu0 %v17318_v47  ;;  %15262 = vmatprep.subr.mxu1 %v12825_v52 }
0x1e7b   :  { %15243 = vmatprep.subr.mxu0 %v17329_v21  ;;  %15263 = vmatpush3.msra.mxu1 %v12825_v52 }
0x1e7c   :  { %15244 = vmatpush3.msra.mxu0 %v17329_v21  ;;  %15264 = vmatprep.subr.mxu1 %v12832_v63 }
0x1e7d   :  { %15245 = vmatprep.subr.mxu0 %v17343_v20  ;;  %15265 = vmatpush3.msra.mxu1 %v12832_v63 }
0x1e7e   :  { %15246 = vmatpush3.msra.mxu0 %v17343_v20  ;;  %15266 = vmatprep.subr.mxu1 %v12839_v8 }
0x1e7f   :  { %15247 = vmatprep.subr.mxu0 %v17359_v1  ;;  %15267 = vmatpush3.msra.mxu1 %v12839_v8 }
0x1e80   :  { %15248 = vmatpush3.msra.mxu0 %v17359_v1  ;;  %15290 = vmatprep.subr.mxu1 %v17266_v41 }
0x1e81   :  { %15271 = vmatprep.subr.mxu0 %v17272_v30 }
0x1f17   :  { %v15188_v32 = vpop.f32.mrf.mxu1 }
0x1f19   :  { %v12260_v15 = vpop.f32.mrf.mxu1 }
0x1f1f   :  { %v15210_v10 = vpop.f32.mrf.mxu1 }
0x1f20   :  { %v15177_v3 = vpop.f32.mrf.mxu0 }
0x1f21   :  { %v12170_v61 = vadd.f32 %v15177_v3, %v12077_v26  ;;  %v12430_v42 = vpop.f32.mrf.mxu1 }
0x1f22   :  { %v12159_v49 = vpop.f32.mrf.mxu0 }
0x1f23   :  { %v12160_v57 = vadd.f32 %v12159_v49, %v12077_v26  ;;  %v12267_v62 = vadd.f32 %v15188_v32, %v12170_v61 }
0x1f25   :  { %v12261_v59 = vadd.f32 %v12260_v15, %v12160_v57 }
0x1f28   :  { %v15199_v60 = vpop.f32.mrf.mxu0 }
0x1f29   :  { %v12354_v14 = vadd.f32 %v15199_v60, %v12267_v62  ;;  %v15232_v23 = vpop.f32.mrf.mxu1 }
0x1f2a   :  { %v12346_v33 = vpop.f32.mrf.mxu0 }
0x1f2b   :  { %v12347_v22 = vadd.f32 %v12346_v33, %v12261_v59  ;;  %v12439_v28 = vadd.f32 %v15210_v10, %v12354_v14  ;;  %v12602_v13 = vpop.f32.mrf.mxu1 }
0x1f2d   :  { %v12431_v11 = vadd.f32 %v12430_v42, %v12347_v22 }
0x1f31   :  { %v15221_v53 = vpop.f32.mrf.mxu0 }
0x1f32   :  { %v12528_v2 = vadd.f32 %v15221_v53, %v12439_v28 }
0x1f33   :  { %v12521_v6 = vpop.f32.mrf.mxu0 }
0x1f34   :  { %v12609_v27 = vadd.f32 %v15232_v23, %v12528_v2  ;;  %v12522_v18 = vadd.f32 %v12521_v6, %v12431_v11 }
0x1f36   :  { %v12615_v45 = vmul.f32 0.70710677, %v12609_v27  ;;  %v12603_v36 = vadd.f32 %v12602_v13, %v12522_v18 }
0x1f38   :  { %v12621_v58 = vand.u32 2147483647, %v12615_v45  ;;  %v12614_v52 = vmul.f32 0.70710677, %v12603_v36  ;;  %vm12617_vm7 = vcmp.ge.f32.partialorder %v12615_v45, 0.0 }
0x1f3a   :  { %v12623_v4 = vmul.f32 0.3275911, %v12621_v58  ;;  %v12620_v63 = vand.u32 2147483647, %v12614_v52  ;;  %v12649_v26 = vsub.f32 0.0, %v12621_v58  ;;  %vm12616_vm8 = vcmp.ge.f32.partialorder %v12614_v52, 0.0 }
0x1f3c   :  { %v12625_v12 = vadd.f32 1.0, %v12623_v4  ;;  %v12622_v8 = vmul.f32 0.3275911, %v12620_v63  ;;  %v12648_v32 = vsub.f32 0.0, %v12620_v63  ;;  %v12651_v49 = vmul.f32 %v12649_v26, %v12621_v58 }
0x1f3e   :  { %15449 = vrcp.f32 %v12625_v12  ;;  %v12624_v3 = vadd.f32 1.0, %v12622_v8  ;;  %v12650_v57 = vmul.f32 %v12648_v32, %v12620_v63  ;;  %v12654_v15 = vmul.f32 1.442695, %v12651_v49 }
0x1f3f   :  { %v12619_v49 = vsel %vm12617_vm7, 1.0, %v15516_v37 }
0x1f40   :  { %15451 = vrcp.f32 %v12624_v3  ;;  %v12652_v14 = vmul.f32 1.442695, %v12650_v57 }
0x1f41   :  { %15453 = vpow2.f32 %v12654_v15 }
0x1f42   :  { %15455 = vpow2.f32 %v12652_v14  ;;  %v12618_v14 = vsel %vm12616_vm8, 1.0, %v15516_v37 }
0x1f4b   :  { %v15450_v61 = vpop.eup %15449 }
0x1f4c   :  { %v12631_v60 = vmul.f32 1.0614054, %v15450_v61 }
0x1f4d   :  { %v15452_v62 = vpop.eup %15451 }
0x1f4e   :  { %v12633_v10 = vadd.f32 -1.4531521, %v12631_v60  ;;  %v12630_v33 = vmul.f32 1.0614054, %v15452_v62  ;;  %v15454_v63 = vpop.eup %15453 }
0x1f4f   :  { %v15456_v26 = vpop.eup %15455 }
0x1f50   :  { %v12635_v59 = vmul.f32 %v15450_v61, %v12633_v10  ;;  %v12632_v22 = vadd.f32 -1.4531521, %v12630_v33  ;;  %v12613_v10 = vmul.f32 0.5, %v12609_v27 }
0x1f52   :  { %v12637_v42 = vadd.f32 1.4214138, %v12635_v59  ;;  %v12634_v28 = vmul.f32 %v15452_v62, %v12632_v22 }
0x1f54   :  { %v12639_v23 = vmul.f32 %v15450_v61, %v12637_v42  ;;  %v12636_v53 = vadd.f32 1.4214138, %v12634_v28 }
0x1f56   :  { %v12641_v2 = vadd.f32 -0.28449672, %v12639_v23  ;;  %v12638_v11 = vmul.f32 %v15452_v62, %v12636_v53 }
0x1f58   :  { %v12643_v6 = vmul.f32 %v15450_v61, %v12641_v2  ;;  %v12640_v18 = vadd.f32 -0.28449672, %v12638_v11 }
0x1f5a   :  { %v12645_v13 = vadd.f32 0.2548296, %v12643_v6  ;;  %v12642_v58 = vmul.f32 %v15452_v62, %v12640_v18 }
0x1f5c   :  { %v12647_v4 = vmul.f32 %v15450_v61, %v12645_v13  ;;  %v12644_v12 = vadd.f32 0.2548296, %v12642_v58  ;;  %v12612_v61 = vmul.f32 0.5, %v12603_v36 }
0x1f5e   :  { %v12657_v8 = vmul.f32 %v15454_v63, %v12647_v4  ;;  %v12646_v3 = vmul.f32 %v15452_v62, %v12644_v12 }
0x1f60   :  { %v12659_v32 = vsub.f32 1.0, %v12657_v8  ;;  %v12656_v57 = vmul.f32 %v15456_v26, %v12646_v3 }
0x1f62   :  { %v12661_v60 = vmul.f32 %v12659_v32, %v12619_v49  ;;  %v12658_v15 = vsub.f32 1.0, %v12656_v57 }
0x1f64   :  { %v12663_v33 = vadd.f32 1.0, %v12661_v60  ;;  %v12660_v59 = vmul.f32 %v12658_v15, %v12618_v14 }
0x1f66   :  { %v12665_v22 = vmul.f32 %v12663_v33, %v12613_v10  ;;  %v12662_v42 = vadd.f32 1.0, %v12660_v59 }
0x1f68   :  { %v12674_v45 = vsel %vm6035_vm6, %v12665_v22, 0  ;;  %v12664_v62 = vmul.f32 %v12662_v42, %v12612_v61  ;;  %v13287_v61 = vrot.slane %v17141_v46, %v6652_v29 }
0x1f69   :  { %v17391_v28 = vand.u32 4294901760, %v12674_v45 }
0x1f6a   :  { %v12671_v52 = vsel %vm6035_vm6, %v12664_v62, 0 }
0x1f6b   :  { %v12760_v23 = vsub.f32 %v12674_v45, %v17391_v28  ;;  %v12749_v53 = vand.u32 4294901760, %v12671_v52 }
0x1f6d   :  { %v12761_v2 = vand.u32 4294901760, %v12760_v23  ;;  %15268 = vmatprep.mubr.f32.mxu1 %v12749_v53  ;;  %v12750_v27 = vsub.f32 %v12671_v52, %v12749_v53 }
0x1f6e   :  { %15269 = vmatmul.mubr.f32.vlgmr.msra.gmra.mxu1 %v17391_v28 }
0x1f6f   :  { %15291 = vmatpush3.msra.mxu1 %v17266_v41  ;;  %v12751_v37 = vand.u32 4294901760, %v12750_v27  ;;  %v12762_v36 = vsub.f32 %v12760_v23, %v12761_v2 }
0x1f70   :  { %15292 = vmatprep.subr.mxu1 %v17274_v31 }
0x1f71   :  { %15293 = vmatpush3.msra.mxu1 %v17274_v31  ;;  %15306 = vmatprep.mubr.f32.mxu1 %v12751_v37  ;;  %v12752_v11 = vsub.f32 %v12750_v27, %v12751_v37  ;;  %v12763_v18 = vand.u32 4294901760, %v12762_v36 }
0x1f72   :  { %15294 = vmatprep.subr.mxu1 %v17287_v24 }
0x1f73   :  { %15295 = vmatpush3.msra.mxu1 %v17287_v24  ;;  %v12753_v6 = vand.u32 4294901760, %v12752_v11 }
0x1f74   :  { %15296 = vmatprep.subr.mxu1 %v17302_v54 }
0x1f75   :  { %15297 = vmatpush3.msra.mxu1 %v17302_v54  ;;  %15249 = vmatprep.mubr.f32.mxu0 %v12753_v6 }
0x1f76   :  { %15298 = vmatprep.subr.mxu1 %v17318_v47  ;;  %15250 = vmatmul.mubr.f32.vlgmr.msra.gmra.mxu0 %v12763_v18 }
0x1f77   :  { %15272 = vmatpush3.msra.mxu0 %v17272_v30  ;;  %15299 = vmatpush3.msra.mxu1 %v17318_v47  ;;  %v12669_v30 = vrot.slane %v17141_v46, %v6033_v38 }
0x1f78   :  { %15273 = vmatprep.subr.mxu0 %v17285_v34  ;;  %15287 = vmatprep.mubr.f32.mxu0 %v12750_v27 }
0x1f79   :  { %15300 = vmatprep.subr.mxu1 %v17329_v21  ;;  %15274 = vmatpush3.msra.mxu0 %v17285_v34 }
0x1f7a   :  { %15301 = vmatpush3.msra.mxu1 %v17329_v21  ;;  %15275 = vmatprep.subr.mxu0 %v17300_v55 }
0x1f7b   :  { %15302 = vmatprep.subr.mxu1 %v17343_v20  ;;  %15276 = vmatpush3.msra.mxu0 %v17300_v55 }
0x1f7c   :  { %15303 = vmatpush3.msra.mxu1 %v17343_v20  ;;  %15277 = vmatprep.subr.mxu0 %v17315_v51 }
0x1f7d   :  { %15304 = vmatprep.subr.mxu1 %v17359_v1  ;;  %15278 = vmatpush3.msra.mxu0 %v17315_v51 }
0x1f7e   :  { %15305 = vmatpush3.msra.mxu1 %v17359_v1  ;;  %15279 = vmatprep.subr.mxu0 %v17332_v35 }
0x1f7f   :  { %15307 = vmatmul.mubr.f32.vlgmr.msra.gmra.mxu1 %v12761_v2  ;;  %15328 = vmatprep.subr.mxu1 %v17266_v41 }
0x1f80   :  { %15280 = vmatpush3.msra.mxu0 %v17332_v35  ;;  %15329 = vmatpush3.msra.mxu1 %v17266_v41 }
0x1f81   :  { %15344 = vmatprep.mubr.f32.mxu1 %v12749_v53  ;;  %15281 = vmatprep.subr.mxu0 %v17341_v44 }
0x1f82   :  { %15330 = vmatprep.subr.mxu1 %v17274_v31  ;;  %15282 = vmatpush3.msra.mxu0 %v17341_v44 }
0x1f83   :  { %15331 = vmatpush3.msra.mxu1 %v17274_v31  ;;  %15283 = vmatprep.subr.mxu0 %v17357_v9 }
0x1f84   :  { %15332 = vmatprep.subr.mxu1 %v17287_v24  ;;  %15284 = vmatpush3.msra.mxu0 %v17357_v9 }
0x1f85   :  { %15333 = vmatpush3.msra.mxu1 %v17287_v24  ;;  %15285 = vmatprep.subr.mxu0 %v17371_v17 }
0x1f86   :  { %15334 = vmatprep.subr.mxu1 %v17302_v54  ;;  %15286 = vmatpush3.msra.mxu0 %v17371_v17 }
0x1f87   :  { %15335 = vmatpush3.msra.mxu1 %v17302_v54  ;;  %15288 = vmatmul.mubr.f32.vlgmr.msra.gmra.mxu0 %v12760_v23 }
0x1f88   :  { %15309 = vmatprep.subr.mxu0 %v17282_v25  ;;  %15336 = vmatprep.subr.mxu1 %v17318_v47 }
0x1f89   :  { %15310 = vmatpush3.msra.mxu0 %v17282_v25  ;;  %15325 = vmatprep.mubr.f32.mxu0 %v12749_v53 }
0x1f8a   :  { %15337 = vmatpush3.msra.mxu1 %v17318_v47  ;;  %15311 = vmatprep.subr.mxu0 %v17297_v0 }
0x1f8b   :  { %15338 = vmatprep.subr.mxu1 %v17329_v21  ;;  %15312 = vmatpush3.msra.mxu0 %v17297_v0 }
0x1f8c   :  { %15339 = vmatpush3.msra.mxu1 %v17329_v21  ;;  %15313 = vmatprep.subr.mxu0 %v17312_v48 }
0x1f8d   :  { %15340 = vmatprep.subr.mxu1 %v17343_v20  ;;  %15314 = vmatpush3.msra.mxu0 %v17312_v48 }
0x1f8e   :  { %15341 = vmatpush3.msra.mxu1 %v17343_v20  ;;  %15315 = vmatprep.subr.mxu0 %v17327_v40 }
0x1f8f   :  { %15342 = vmatprep.subr.mxu1 %v17359_v1  ;;  %15316 = vmatpush3.msra.mxu0 %v17327_v40 }
0x1f90   :  { %15343 = vmatpush3.msra.mxu1 %v17359_v1  ;;  %15317 = vmatprep.subr.mxu0 %v17347_v16 }
0x1f91   :  { %15345 = vmatmul.mubr.f32.vlgmr.msra.gmra.mxu1 %v17391_v28  ;;  %15318 = vmatpush3.msra.mxu0 %v17347_v16 }
0x1f92   :  { %15319 = vmatprep.subr.mxu0 %v17354_v19 }
0x1f93   :  { %15320 = vmatpush3.msra.mxu0 %v17354_v19 }
0x1f94   :  { %15321 = vmatprep.subr.mxu0 %v17368_v5 }
0x1f95   :  { %15322 = vmatpush3.msra.mxu0 %v17368_v5 }
0x1f96   :  { %15323 = vmatprep.subr.mxu0 %v17378_v56 }
0x1f97   :  { %15324 = vmatpush3.msra.mxu0 %v17378_v56 }
0x1f98   :  { %15326 = vmatmul.mubr.f32.vlgmr.msra.gmra.mxu0 %v17391_v28  ;;  %v13293_v28 = vrot.slane %v17141_v46, %v6658_v43 }
0x202e   :  { %v15270_v31 = vpop.f32.mrf.mxu1 }
0x2030   :  { %v12876_v55 = vpop.f32.mrf.mxu1 }
0x2036   :  { %v15251_v41 = vpop.f32.mrf.mxu0 }
0x2037   :  { %v12766_v34 = vadd.f32 %v15251_v41, %v12669_v30 }
0x2038   :  { %v12755_v25 = vpop.f32.mrf.mxu0 }
0x2039   :  { %v12756_v0 = vadd.f32 %v12755_v25, %v12669_v30  ;;  %v12883_v54 = vadd.f32 %v15270_v31, %v12766_v34 }
0x203b   :  { %v12877_v40 = vadd.f32 %v12876_v55, %v12756_v0 }
0x203f   :  { %v15308_v48 = vpop.f32.mrf.mxu1 }
0x2041   :  { %v13058_v35 = vpop.f32.mrf.mxu1 }
0x2047   :  { %v15289_v24 = vpop.f32.mrf.mxu0 }
0x2048   :  { %v12978_v47 = vadd.f32 %v15289_v24, %v12883_v54 }
0x2049   :  { %v12970_v51 = vpop.f32.mrf.mxu0 }
0x204a   :  { %v12971_v21 = vadd.f32 %v12970_v51, %v12877_v40  ;;  %v13067_v44 = vadd.f32 %v15308_v48, %v12978_v47 }
0x204c   :  { %v13059_v9 = vadd.f32 %v13058_v35, %v12971_v21 }
0x2051   :  { %v15346_v20 = vpop.f32.mrf.mxu1 }
0x2053   :  { %v13246_v17 = vpop.f32.mrf.mxu1 }
0x2058   :  { %v15327_v16 = vpop.f32.mrf.mxu0 }
0x2059   :  { %v13168_v19 = vadd.f32 %v15327_v16, %v13067_v44 }
0x205a   :  { %v13161_v1 = vpop.f32.mrf.mxu0 }
0x205b   :  { %v13253_v38 = vadd.f32 %v15346_v20, %v13168_v19  ;;  %v13162_v5 = vadd.f32 %v13161_v1, %v13059_v9 }
0x205d   :  { %v13247_v56 = vadd.f32 %v13246_v17, %v13162_v5  ;;  %v13257_v13 = vadd.f32 %v13253_v38, %v17229_v7 }
0x205f   :  { %v13261_v58 = vsel %vm46_vm0, %v13257_v13, 0.0  ;;  %v13256_v4 = vadd.f32 %v13247_v56, %v17225_v50 }
0x2060   :  { %13262 = vadd.xlane.f32.xlu0 %v13261_v58 }
0x2061   :  { %v13258_v63 = vsel %vm46_vm0, %v13256_v4, 0.0 }
0x2062   :  { %13259 = vadd.xlane.f32.xlu1 %v13258_v63 }
0x20e9   :  { %v13263_v12 = vpop.xlane.xlu0 %13262 }
0x20ea   :  { %v13265_v8 = vmul.f32 0.03125, %v13263_v12 }
0x20eb   :  { %v13260_v3 = vpop.xlane.xlu1 %13259 }
0x20ec   :  { %v13267_v26 = vsub.f32 %v13257_v13, %v13265_v8  ;;  %v13264_v32 = vmul.f32 0.03125, %v13260_v3 }
0x20ee   :  { %v13266_v49 = vsub.f32 %v13256_v4, %v13264_v32  ;;  %v13269_v57 = vmul.f32 %v13267_v26, %v13267_v26 }
0x20f0   :  { %v13273_v60 = vsel %vm46_vm0, %v13269_v57, 0.0  ;;  %v13268_v15 = vmul.f32 %v13266_v49, %v13266_v49 }
0x20f1   :  { %13274 = vadd.xlane.f32.xlu0 %v13273_v60 }
0x20f2   :  { %v13270_v7 = vsel %vm46_vm0, %v13268_v15, 0.0 }
0x20f3   :  { %13271 = vadd.xlane.f32.xlu1 %v13270_v7 }
0x217a   :  { %v13275_v10 = vpop.xlane.xlu0 %13274 }
0x217b   :  { %v13277_v50 = vmul.f32 0.03125, %v13275_v10 }
0x217c   :  { %v13272_v33 = vpop.xlane.xlu1 %13271 }
0x217d   :  { %v13279_v14 = vadd.f32 1e-05, %v13277_v50  ;;  %v13276_v59 = vmul.f32 0.03125, %v13272_v33 }
0x217f   :  { %15457 = vrsqrt.f32 %v13279_v14  ;;  %v13278_v22 = vadd.f32 1e-05, %v13276_v59 }
0x2181   :  { %15459 = vrsqrt.f32 %v13278_v22 }
0x218c   :  { %v15458_v42 = vpop.eup %15457 }
0x218d   :  { %v13283_v45 = vmul.f32 %v15458_v42, %v13267_v26 }
0x218e   :  { %v15460_v62 = vpop.eup %15459 }
0x218f   :  { %v13282_v23 = vmul.f32 %v15460_v62, %v13266_v49  ;;  %v13289_v52 = vmul.f32 %v13287_v61, %v13283_v45 }
0x2191   :  { %v13288_v53 = vmul.f32 %v13287_v61, %v13282_v23  ;;  %v13295_v2 = vadd.f32 %v13293_v28, %v13289_v52 }
0x2193   :  { %v13294_v27 = vadd.f32 %v13293_v28, %v13288_v53  ;;  %13297 = vst.msk [vmem:[#allocation2 + $0x8] sm:$0xff] %vm46_vm0, %v13295_v2 }
0x2195   :  { %13296 = vst.msk [vmem:[#allocation2] sm:$0xff] %vm46_vm0, %v13294_v27 }
0x2196   :  { %15490 = shalt.err (!%p15487_p4)
}
0x2197   :  { %s15518_s2 = smov 128  }
0x2198   :  { %13309 = dma.vmem_to_hbm [thread:$0]  %s13304_s21, 256, %s17486_s5, [#allocation3], %s15518_s2, %s15518_s2, %s15513_s29  }
0x2199   :  { %15499 = dma.done.wait [#allocation3], 256  }
0x219a   :  { %15500 = vsyncadd [#allocation3], 4294967040 }
0x219b   :  { %13313 = vsyncpa [#allocation3], 1 }

</bundles_post_ra>
